<compile_context>
chip_gen: v5e
topology: v5e:2x2
jax: 0.10.0
libtpu: 0.0.40
codegen_flags: <defaults>
</compile_context>

<pallas_src>
import math
from functools import partial

import jax
import jax.numpy as jnp
from jax import lax
from jax.experimental import pallas as pl
from jax.experimental.pallas import tpu as pltpu


_COMPILER_PARAMS = pltpu.CompilerParams(
    dimension_semantics=("parallel",),          # grid axis = batch (independent rows)
    vmem_limit_bytes=48 * 1024 * 1024,          # above 16/32 MiB defaults, headroom on v7x
)


# ----------------------------- in-kernel helpers -----------------------------

def _layernorm(x, g, b, eps=1e-5):
    mu = jnp.mean(x, axis=-1, keepdims=True)
    xc = x - mu
    var = jnp.mean(xc * xc, axis=-1, keepdims=True)
    return xc * lax.rsqrt(var + eps) * g + b


def _linear(x, w_ref, b_ref, activation=None):
    # bf16 MXU matmul with fp32 accumulation; bias / activation in fp32.
    y = jnp.dot(x.astype(jnp.bfloat16), w_ref[...],
                preferred_element_type=jnp.float32) + b_ref[...]
    if activation == "relu":
        y = jnp.maximum(y, 0.0)
    return y


def _causal_mask(Lq, Lk):
    # additive 0 / -inf mask built in-kernel (no HBM mask input / DMA).
    row = lax.broadcasted_iota(jnp.int32, (Lq, Lk), 0)
    col = lax.broadcasted_iota(jnp.int32, (Lq, Lk), 1)
    return jnp.where(col <= row, 0.0, -jnp.inf).astype(jnp.float32)


def _mha(q, k, v, mask, *, H, Dh):
    """q: [Lq, E] f32 (1/sqrt(Dh) already folded into W_q), k/v: [Lk, E] f32.

    Per-head bf16 MXU matmuls with fp32 softmax stats.  Only an H-iteration
    loop remains (batch lives on the pallas grid); head outputs are gathered
    into a single lane-dense [Lq, E] value (no masked partial ref stores).
    """
    outs = []
    for h in range(H):
        qh = q[:, h * Dh:(h + 1) * Dh].astype(jnp.bfloat16)
        kh = k[:, h * Dh:(h + 1) * Dh].astype(jnp.bfloat16)
        vh = v[:, h * Dh:(h + 1) * Dh].astype(jnp.bfloat16)
        # q @ k^T without materializing a transpose (bf16 x bf16 -> fp32 acc)
        s = lax.dot_general(qh, kh, (((1,), (1,)), ((), ())),
                            preferred_element_type=jnp.float32)
        if mask is not None:
            s = s + mask
        m = jnp.max(s, axis=-1, keepdims=True)
        p = jnp.exp(s - m)
        p = p * pl.reciprocal(jnp.sum(p, axis=-1, keepdims=True), approx=True)
        outs.append(jnp.dot(p.astype(jnp.bfloat16), vh,
                            preferred_element_type=jnp.float32))
    return jnp.concatenate(outs, axis=-1)            # [Lq, E] lane-dense


# ----------------------------- Pallas kernels -----------------------------

def _encoder_layer_kernel(x_ref, qkv_w_ref, qkv_b_ref, out_w_ref, out_b_ref,
                          ln1_g_ref, ln1_b_ref,
                          ff_w1_ref, ff_b1_ref, ff_w2_ref, ff_b2_ref,
                          ln2_g_ref, ln2_b_ref, o_ref, *, H, Dh):
    E = H * Dh
    x = x_ref[...]                                   # [L, E] bf16 (one batch)
    x32 = x.astype(jnp.float32)

    qkv = _linear(x, qkv_w_ref, qkv_b_ref)           # [L, 3E] f32, q pre-scaled
    attn = _mha(qkv[:, :E], qkv[:, E:2 * E], qkv[:, 2 * E:], None, H=H, Dh=Dh)
    sa = _linear(attn, out_w_ref, out_b_ref)
    h = _layernorm(x32 + sa, ln1_g_ref[...], ln1_b_ref[...])

    ff = _linear(h, ff_w1_ref, ff_b1_ref, activation="relu")
    ff = _linear(ff, ff_w2_ref, ff_b2_ref)
    o_ref[...] = _layernorm(h + ff, ln2_g_ref[...], ln2_b_ref[...]).astype(o_ref.dtype)


def _decoder_layer_kernel(x_ref, mem_ref,
                          sa_qkv_w_ref, sa_qkv_b_ref, sa_out_w_ref, sa_out_b_ref,
                          ln1_g_ref, ln1_b_ref,
                          ca_q_w_ref, ca_q_b_ref, ca_kv_w_ref, ca_kv_b_ref,
                          ca_out_w_ref, ca_out_b_ref,
                          ln2_g_ref, ln2_b_ref,
                          ff_w1_ref, ff_b1_ref, ff_w2_ref, ff_b2_ref,
                          ln3_g_ref, ln3_b_ref,
                          o_ref, *, H, Dh):
    E = H * Dh
    x = x_ref[...]                                   # [Lt, E] bf16 (one batch)
    x32 = x.astype(jnp.float32)
    mem = mem_ref[...]                               # [Ls, E] bf16 (one batch)
    Lt = x.shape[0]

    # ---- masked self-attention ----
    qkv = _linear(x, sa_qkv_w_ref, sa_qkv_b_ref)
    mask = _causal_mask(Lt, Lt)
    attn = _mha(qkv[:, :E], qkv[:, E:2 * E], qkv[:, 2 * E:], mask, H=H, Dh=Dh)
    sa = _linear(attn, sa_out_w_ref, sa_out_b_ref)
    h = _layernorm(x32 + sa, ln1_g_ref[...], ln1_b_ref[...])

    # ---- cross-attention (q from tgt, k/v from encoder memory) ----
    q = _linear(h, ca_q_w_ref, ca_q_b_ref)           # scale folded into ca_q_w
    kv = _linear(mem, ca_kv_w_ref, ca_kv_b_ref)
    attn = _mha(q, kv[:, :E], kv[:, E:], None, H=H, Dh=Dh)
    ca = _linear(attn, ca_out_w_ref, ca_out_b_ref)
    h = _layernorm(h + ca, ln2_g_ref[...], ln2_b_ref[...])

    # ---- feed-forward ----
    ff = _linear(h, ff_w1_ref, ff_b1_ref, activation="relu")
    ff = _linear(ff, ff_w2_ref, ff_b2_ref)
    o_ref[...] = _layernorm(h + ff, ln3_g_ref[...], ln3_b_ref[...]).astype(o_ref.dtype)


def _layernorm_kernel(x_ref, g_ref, b_ref, o_ref):
    o_ref[...] = _layernorm(x_ref[...].astype(jnp.float32),
                            g_ref[...], b_ref[...]).astype(o_ref.dtype)


def _norm_proj_logsoftmax_kernel(y_ref, g_ref, b_ref, w_ref, bias_ref, o_ref):
    # fused: decoder final LayerNorm + vocab projection + log_softmax.
    # TODO(synk): at realistic vocab (V>=30k) tile the V axis with an online
    #             running-max / log-sum-exp accumulator instead of full-V rows.
    y = _layernorm(y_ref[...].astype(jnp.float32), g_ref[...], b_ref[...])
    logits = jnp.dot(y.astype(jnp.bfloat16), w_ref[...],
                     preferred_element_type=jnp.float32) + bias_ref[...]
    m = jnp.max(logits, axis=-1, keepdims=True)
    lse = m + jnp.log(jnp.sum(jnp.exp(logits - m), axis=-1, keepdims=True))
    o_ref[...] = logits - lse


# ----------------------------- Pallas wrappers -----------------------------

def _resident_spec(w):
    # weight block covering the full array; same block at every grid step.
    return pl.BlockSpec(w.shape, lambda i: (0,) * w.ndim)


def encoder_layer(x, p, *, B, L, H, Dh):
    E = H * Dh
    weights = (p["qkv_w"], p["qkv_b"], p["out_w"], p["out_b"],
               p["ln1_g"], p["ln1_b"],
               p["ff_w1"], p["ff_b1"], p["ff_w2"], p["ff_b2"],
               p["ln2_g"], p["ln2_b"])
    return pl.pallas_call(
        partial(_encoder_layer_kernel, H=H, Dh=Dh),
        out_shape=jax.ShapeDtypeStruct((B * L, E), jnp.bfloat16),
        grid=(B,),
        in_specs=[pl.BlockSpec((L, E), lambda b: (b, 0))]
                 + [_resident_spec(w) for w in weights],
        out_specs=pl.BlockSpec((L, E), lambda b: (b, 0)),
        compiler_params=_COMPILER_PARAMS,
    )(x, *weights)


def decoder_layer(x, memory, p, *, B, Lt, Ls, H, Dh):
    E = H * Dh
    weights = (p["sa_qkv_w"], p["sa_qkv_b"], p["sa_out_w"], p["sa_out_b"],
               p["ln1_g"], p["ln1_b"],
               p["ca_q_w"], p["ca_q_b"], p["ca_kv_w"], p["ca_kv_b"],
               p["ca_out_w"], p["ca_out_b"],
               p["ln2_g"], p["ln2_b"],
               p["ff_w1"], p["ff_b1"], p["ff_w2"], p["ff_b2"],
               p["ln3_g"], p["ln3_b"])
    return pl.pallas_call(
        partial(_decoder_layer_kernel, H=H, Dh=Dh),
        out_shape=jax.ShapeDtypeStruct((B * Lt, E), jnp.bfloat16),
        grid=(B,),
        in_specs=[pl.BlockSpec((Lt, E), lambda b: (b, 0)),
                  pl.BlockSpec((Ls, E), lambda b: (b, 0))]
                 + [_resident_spec(w) for w in weights],
        out_specs=pl.BlockSpec((Lt, E), lambda b: (b, 0)),
        compiler_params=_COMPILER_PARAMS,
    )(x, memory, *weights)


def final_layernorm(x, g, b, *, B, L, E):
    return pl.pallas_call(
        _layernorm_kernel,
        out_shape=jax.ShapeDtypeStruct((B * L, E), jnp.bfloat16),
        grid=(B,),
        in_specs=[pl.BlockSpec((L, E), lambda i: (i, 0)),
                  _resident_spec(g), _resident_spec(b)],
        out_specs=pl.BlockSpec((L, E), lambda i: (i, 0)),
        compiler_params=_COMPILER_PARAMS,
    )(x, g, b)


def norm_project_logsoftmax(y, g, b, w, bias, *, N, E, V, tm):
    return pl.pallas_call(
        _norm_proj_logsoftmax_kernel,
        out_shape=jax.ShapeDtypeStruct((N, V), jnp.float32),
        grid=(N // tm,),
        in_specs=[pl.BlockSpec((tm, E), lambda i: (i, 0)),
                  _resident_spec(g), _resident_spec(b),
                  _resident_spec(w), _resident_spec(bias)],
        out_specs=pl.BlockSpec((tm, V), lambda i: (i, 0)),
        compiler_params=_COMPILER_PARAMS,
    )(y, g, b, w, bias)


def embed_and_encode(tokens, emb_table, pe, d_model):
    # TODO(synk): token-id gather is data-dependent -> kept in XLA glue; the
    # sqrt(d_model) scale and positional-encoding add fuse into its epilogue
    # (no separate Pallas elementwise kernel / extra HBM round trip).
    L, B = tokens.shape
    e = jnp.take(emb_table, tokens.T, axis=0) * math.sqrt(d_model)   # [B, L, E]
    x = e + pe[None, :L, :]
    return x.reshape(B * L, d_model).astype(jnp.bfloat16)


def transformer_forward(params, src, tgt, *, nhead, d_model):
    H = nhead
    Dh = d_model // nhead
    Ls, B = src.shape
    Lt, _ = tgt.shape
    pe = params["pe"]

    # ---- encoder ----
    x = embed_and_encode(src, params["enc_emb"], pe, d_model)         # [B*Ls, E] bf16
    for lp in params["enc_layers"]:
        x = encoder_layer(x, lp, B=B, L=Ls, H=H, Dh=Dh)
    memory = final_layernorm(x, params["enc_norm_g"], params["enc_norm_b"],
                             B=B, L=Ls, E=d_model)

    # ---- decoder (causal mask generated inside each layer kernel) ----
    y = embed_and_encode(tgt, params["dec_emb"], pe, d_model)
    for lp in params["dec_layers"]:
        y = decoder_layer(y, memory, lp, B=B, Lt=Lt, Ls=Ls, H=H, Dh=Dh)

    # reorder the SMALL E-wide activation to (l, b) row order so that the big
    # [*, V] log-prob tensor is emitted directly in [Lt, B, V] layout.
    y = y.reshape(B, Lt, d_model).transpose(1, 0, 2).reshape(Lt * B, d_model)

    # ---- fused final LayerNorm + output projection + log_softmax ----
    V = params["lin_w"].shape[1]
    N = Lt * B
    logp = norm_project_logsoftmax(y, params["dec_norm_g"], params["dec_norm_b"],
                                   params["lin_w"], params["lin_b"],
                                   N=N, E=d_model, V=V, tm=N)
    return logp.reshape(Lt, B, V)


# ----------------------------- parameter init -----------------------------

def _xavier(key, shape):
    rows, cols = shape
    a = math.sqrt(6.0 / (rows + cols))
    return jax.random.uniform(key, shape, jnp.float32, -a, a)


def _ln_params(E):
    return jnp.ones((1, E), jnp.float32), jnp.zeros((1, E), jnp.float32)


def _init_packed_attn(key, E, H):
    # packed in_proj pre-transposed to [E, 3E]; 1/sqrt(Dh) folded into the q
    # columns (weight and bias) so no in-kernel q scaling is needed.
    Dh = E // H
    k1, k2 = jax.random.split(key)
    in_w = _xavier(k1, (E, 3 * E))
    scale = jnp.concatenate([jnp.full((E,), 1.0 / math.sqrt(Dh), jnp.float32),
                             jnp.ones((2 * E,), jnp.float32)])
    in_w = (in_w * scale[None, :]).astype(jnp.bfloat16)
    in_b = jnp.zeros((1, 3 * E), jnp.float32) * scale[None, :]
    out_w = _xavier(k2, (E, E)).astype(jnp.bfloat16)
    out_b = jnp.zeros((1, E), jnp.float32)
    return in_w, in_b, out_w, out_b


def _init_enc_layer(key, E, F, H):
    ks = jax.random.split(key, 3)
    qkv_w, qkv_b, out_w, out_b = _init_packed_attn(ks[0], E, H)
    g1, b1 = _ln_params(E)
    g2, b2 = _ln_params(E)
    return {
        "qkv_w": qkv_w, "qkv_b": qkv_b, "out_w": out_w, "out_b": out_b,
        "ff_w1": _xavier(ks[1], (E, F)).astype(jnp.bfloat16),
        "ff_b1": jnp.zeros((1, F), jnp.float32),
        "ff_w2": _xavier(ks[2], (F, E)).astype(jnp.bfloat16),
        "ff_b2": jnp.zeros((1, E), jnp.float32),
        "ln1_g": g1, "ln1_b": b1, "ln2_g": g2, "ln2_b": b2,
    }


def _init_dec_layer(key, E, F, H):
    ks = jax.random.split(key, 4)
    sa_qkv_w, sa_qkv_b, sa_out_w, sa_out_b = _init_packed_attn(ks[0], E, H)
    ca_in_w, ca_in_b, ca_out_w, ca_out_b = _init_packed_attn(ks[1], E, H)
    g1, b1 = _ln_params(E)
    g2, b2 = _ln_params(E)
    g3, b3 = _ln_params(E)
    return {
        "sa_qkv_w": sa_qkv_w, "sa_qkv_b": sa_qkv_b,
        "sa_out_w": sa_out_w, "sa_out_b": sa_out_b,
        # cross-attn packed in_proj split into q / kv columns so the kernel
        # never slices weight refs at non-aligned lane offsets.
        "ca_q_w": ca_in_w[:, :E], "ca_q_b": ca_in_b[:, :E],
        "ca_kv_w": ca_in_w[:, E:], "ca_kv_b": ca_in_b[:, E:],
        "ca_out_w": ca_out_w, "ca_out_b": ca_out_b,
        "ff_w1": _xavier(ks[2], (E, F)).astype(jnp.bfloat16),
        "ff_b1": jnp.zeros((1, F), jnp.float32),
        "ff_w2": _xavier(ks[3], (F, E)).astype(jnp.bfloat16),
        "ff_b2": jnp.zeros((1, E), jnp.float32),
        "ln1_g": g1, "ln1_b": b1, "ln2_g": g2, "ln2_b": b2,
        "ln3_g": g3, "ln3_b": b3,
    }


def make_positional_encoding(max_len, d_model):
    pos = jnp.arange(max_len, dtype=jnp.float32)[:, None]
    div = jnp.exp(
        jnp.arange(0, d_model, 2, dtype=jnp.float32) * (-math.log(10000.0) / d_model))
    pe = jnp.zeros((max_len, d_model), jnp.float32)
    pe = pe.at[:, 0::2].set(jnp.sin(pos * div))
    pe = pe.at[:, 1::2].set(jnp.cos(pos * div))
    return pe                                            # [max_len, d_model]


def init_params(key, *, in_vocab, out_vocab, d_model, dff, nhead,
                n_enc, n_dec, max_len=64):
    keys = jax.random.split(key, 4 + n_enc + n_dec)
    eg, eb = _ln_params(d_model)
    dg, db = _ln_params(d_model)
    return {
        "enc_emb": _xavier(keys[0], (in_vocab, d_model)),
        "dec_emb": _xavier(keys[1], (out_vocab, d_model)),
        "lin_w": _xavier(keys[2], (d_model, out_vocab)).astype(jnp.bfloat16),
        "lin_b": jnp.zeros((1, out_vocab), jnp.float32),
        "enc_norm_g": eg, "enc_norm_b": eb,
        "dec_norm_g": dg, "dec_norm_b": db,
        "pe": make_positional_encoding(max_len, d_model),
        "enc_layers": [_init_enc_layer(keys[4 + i], d_model, dff, nhead)
                       for i in range(n_enc)],
        "dec_layers": [_init_dec_layer(keys[4 + n_enc + i], d_model, dff, nhead)
                       for i in range(n_dec)],
    }


# ----------------------------- main -----------------------------

if __name__ == "__main__":
    D_MODEL = 32
    NHEAD = 4
    DFF = 64
    N_ENC = 2
    N_DEC = 2
    IN_VOCAB = 50
    OUT_VOCAB = 40
    S_SRC = 8
    S_TGT = 8
    BATCH = 2

    root = jax.random.PRNGKey(0)
    k_params, k_src, k_tgt = jax.random.split(root, 3)

    params = init_params(
        k_params,
        in_vocab=IN_VOCAB, out_vocab=OUT_VOCAB,
        d_model=D_MODEL, dff=DFF, nhead=NHEAD,
        n_enc=N_ENC, n_dec=N_DEC,
        max_len=max(S_SRC, S_TGT),
    )

    src = jax.random.randint(k_src, (S_SRC, BATCH), 0, IN_VOCAB, dtype=jnp.int32)
    tgt = jax.random.randint(k_tgt, (S_TGT, BATCH), 0, OUT_VOCAB, dtype=jnp.int32)

    fwd = jax.jit(partial(transformer_forward, nhead=NHEAD, d_model=D_MODEL))
    out = fwd(params, src, tgt)
    out = jax.block_until_ready(out)

    assert out.shape == (S_TGT, BATCH, OUT_VOCAB)
    assert bool(jnp.all(jnp.isfinite(out)))
    # rows of log_softmax should sum to ~1 in prob space
    assert bool(jnp.allclose(jnp.exp(out).sum(-1), 1.0, atol=1e-4))
    print("KERNEL_OK")
</pallas_src>

<mosaic_0001>
module attributes {stable_mosaic.version = 11 : i64} {
  func.func @_encoder_layer_kernel(%arg0: i32, %arg1: memref<8x32xbf16, #tpu.memory_space<vmem>>, %arg2: memref<32x96xbf16, #tpu.memory_space<vmem>>, %arg3: memref<1x96xf32, #tpu.memory_space<vmem>>, %arg4: memref<32x32xbf16, #tpu.memory_space<vmem>>, %arg5: memref<1x32xf32, #tpu.memory_space<vmem>>, %arg6: memref<1x32xf32, #tpu.memory_space<vmem>>, %arg7: memref<1x32xf32, #tpu.memory_space<vmem>>, %arg8: memref<32x64xbf16, #tpu.memory_space<vmem>>, %arg9: memref<1x64xf32, #tpu.memory_space<vmem>>, %arg10: memref<64x32xbf16, #tpu.memory_space<vmem>>, %arg11: memref<1x32xf32, #tpu.memory_space<vmem>>, %arg12: memref<1x32xf32, #tpu.memory_space<vmem>>, %arg13: memref<1x32xf32, #tpu.memory_space<vmem>>, %arg14: memref<8x32xbf16, #tpu.memory_space<vmem>>) attributes {dimension_semantics = [#tpu.dimension_semantics<parallel>], iteration_bounds = array<i64: 2>, scalar_prefetch = 0 : i64, scratch_operands = 0 : i64, tpu.core_type = #tpu.core_type<tc>, window_params = [{transform_indices = @transform_0, window_bounds = array<i64: 8, 32>}, {pipeline_mode = #tpu.pipeline_mode<synchronous>, transform_indices = @transform_1, window_bounds = array<i64: 32, 96>}, {pipeline_mode = #tpu.pipeline_mode<synchronous>, transform_indices = @transform_2, window_bounds = array<i64: 1, 96>}, {pipeline_mode = #tpu.pipeline_mode<synchronous>, transform_indices = @transform_3, window_bounds = array<i64: 32, 32>}, {pipeline_mode = #tpu.pipeline_mode<synchronous>, transform_indices = @transform_4, window_bounds = array<i64: 1, 32>}, {pipeline_mode = #tpu.pipeline_mode<synchronous>, transform_indices = @transform_5, window_bounds = array<i64: 1, 32>}, {pipeline_mode = #tpu.pipeline_mode<synchronous>, transform_indices = @transform_6, window_bounds = array<i64: 1, 32>}, {pipeline_mode = #tpu.pipeline_mode<synchronous>, transform_indices = @transform_7, window_bounds = array<i64: 32, 64>}, {pipeline_mode = #tpu.pipeline_mode<synchronous>, transform_indices = @transform_8, window_bounds = array<i64: 1, 64>}, {pipeline_mode = #tpu.pipeline_mode<synchronous>, transform_indices = @transform_9, window_bounds = array<i64: 64, 32>}, {pipeline_mode = #tpu.pipeline_mode<synchronous>, transform_indices = @transform_10, window_bounds = array<i64: 1, 32>}, {pipeline_mode = #tpu.pipeline_mode<synchronous>, transform_indices = @transform_11, window_bounds = array<i64: 1, 32>}, {pipeline_mode = #tpu.pipeline_mode<synchronous>, transform_indices = @transform_12, window_bounds = array<i64: 1, 32>}, {transform_indices = @transform_13, window_bounds = array<i64: 8, 32>}]} {
    %c0 = arith.constant 0 : index
    %c0_0 = arith.constant 0 : index
    %0 = vector.load %arg1[%c0, %c0_0] : memref<8x32xbf16, #tpu.memory_space<vmem>>, vector<8x32xbf16>
    %1 = arith.extf %0 : vector<8x32xbf16> to vector<8x32xf32>
    %c0_1 = arith.constant 0 : index
    %c0_2 = arith.constant 0 : index
    %2 = vector.load %arg2[%c0_1, %c0_2] : memref<32x96xbf16, #tpu.memory_space<vmem>>, vector<32x96xbf16>
    %cst = arith.constant dense<0.000000e+00> : vector<8x96xf32>
    %3 = tpu.matmul %0, %2, %cst {dimension_numbers = #tpu.dot_dimension_numbers<[1], [0], [0], [1], [0, 0, 1, 1], [], []>} : vector<8x32xbf16>, vector<32x96xbf16>, vector<8x96xf32> -> vector<8x96xf32>
    %c0_3 = arith.constant 0 : index
    %c0_4 = arith.constant 0 : index
    %4 = vector.load %arg3[%c0_3, %c0_4] : memref<1x96xf32, #tpu.memory_space<vmem>>, vector<1x96xf32>
    %5 = vector.broadcast %4 : vector<1x96xf32> to vector<8x96xf32>
    %6 = arith.addf %3, %5 : vector<8x96xf32>
    %7 = vector.extract_strided_slice %6 {offsets = [0, 0], sizes = [8, 32], strides = [1, 1]} : vector<8x96xf32> to vector<8x32xf32>
    %8 = vector.extract_strided_slice %6 {offsets = [0, 32], sizes = [8, 32], strides = [1, 1]} : vector<8x96xf32> to vector<8x32xf32>
    %9 = vector.extract_strided_slice %6 {offsets = [0, 64], sizes = [8, 32], strides = [1, 1]} : vector<8x96xf32> to vector<8x32xf32>
    %10 = vector.extract_strided_slice %7 {offsets = [0, 0], sizes = [8, 8], strides = [1, 1]} : vector<8x32xf32> to vector<8x8xf32>
    %11 = arith.truncf %10 : vector<8x8xf32> to vector<8x8xbf16>
    %12 = vector.extract_strided_slice %8 {offsets = [0, 0], sizes = [8, 8], strides = [1, 1]} : vector<8x32xf32> to vector<8x8xf32>
    %13 = arith.truncf %12 : vector<8x8xf32> to vector<8x8xbf16>
    %14 = vector.extract_strided_slice %9 {offsets = [0, 0], sizes = [8, 8], strides = [1, 1]} : vector<8x32xf32> to vector<8x8xf32>
    %15 = arith.truncf %14 : vector<8x8xf32> to vector<8x8xbf16>
    %cst_5 = arith.constant dense<0.000000e+00> : vector<8x8xf32>
    %16 = tpu.matmul %11, %13, %cst_5 {dimension_numbers = #tpu.dot_dimension_numbers<[1], [1], [0], [0], [0, 0, 1, 0], [], []>} : vector<8x8xbf16>, vector<8x8xbf16>, vector<8x8xf32> -> vector<8x8xf32>
    %cst_6 = arith.constant dense<0xFF800000> : vector<8xf32>
    %17 = vector.multi_reduction <maximumf>, %16, %cst_6 [1] : vector<8x8xf32> to vector<8xf32>
    %18 = vector.shape_cast %17 : vector<8xf32> to vector<8x1xf32>
    %19 = vector.broadcast %18 : vector<8x1xf32> to vector<8x8xf32>
    %20 = arith.subf %16, %19 : vector<8x8xf32>
    %21 = math.exp %20 : vector<8x8xf32>
    %cst_7 = arith.constant dense<0.000000e+00> : vector<8xf32>
    %22 = vector.multi_reduction <add>, %21, %cst_7 [1] : vector<8x8xf32> to vector<8xf32>
    %23 = vector.shape_cast %22 : vector<8xf32> to vector<8x1xf32>
    %24 = tpu.reciprocal %23 {approx = true} : vector<8x1xf32> -> vector<8x1xf32>
    %25 = vector.broadcast %24 : vector<8x1xf32> to vector<8x8xf32>
    %26 = arith.mulf %21, %25 : vector<8x8xf32>
    %27 = arith.truncf %26 : vector<8x8xf32> to vector<8x8xbf16>
    %cst_8 = arith.constant dense<0.000000e+00> : vector<8x8xf32>
    %28 = tpu.matmul %27, %15, %cst_8 {dimension_numbers = #tpu.dot_dimension_numbers<[1], [0], [0], [1], [0, 0, 1, 1], [], []>} : vector<8x8xbf16>, vector<8x8xbf16>, vector<8x8xf32> -> vector<8x8xf32>
    %29 = vector.extract_strided_slice %7 {offsets = [0, 8], sizes = [8, 8], strides = [1, 1]} : vector<8x32xf32> to vector<8x8xf32>
    %30 = arith.truncf %29 : vector<8x8xf32> to vector<8x8xbf16>
    %31 = vector.extract_strided_slice %8 {offsets = [0, 8], sizes = [8, 8], strides = [1, 1]} : vector<8x32xf32> to vector<8x8xf32>
    %32 = arith.truncf %31 : vector<8x8xf32> to vector<8x8xbf16>
    %33 = vector.extract_strided_slice %9 {offsets = [0, 8], sizes = [8, 8], strides = [1, 1]} : vector<8x32xf32> to vector<8x8xf32>
    %34 = arith.truncf %33 : vector<8x8xf32> to vector<8x8xbf16>
    %cst_9 = arith.constant dense<0.000000e+00> : vector<8x8xf32>
    %35 = tpu.matmul %30, %32, %cst_9 {dimension_numbers = #tpu.dot_dimension_numbers<[1], [1], [0], [0], [0, 0, 1, 0], [], []>} : vector<8x8xbf16>, vector<8x8xbf16>, vector<8x8xf32> -> vector<8x8xf32>
    %cst_10 = arith.constant dense<0xFF800000> : vector<8xf32>
    %36 = vector.multi_reduction <maximumf>, %35, %cst_10 [1] : vector<8x8xf32> to vector<8xf32>
    %37 = vector.shape_cast %36 : vector<8xf32> to vector<8x1xf32>
    %38 = vector.broadcast %37 : vector<8x1xf32> to vector<8x8xf32>
    %39 = arith.subf %35, %38 : vector<8x8xf32>
    %40 = math.exp %39 : vector<8x8xf32>
    %cst_11 = arith.constant dense<0.000000e+00> : vector<8xf32>
    %41 = vector.multi_reduction <add>, %40, %cst_11 [1] : vector<8x8xf32> to vector<8xf32>
    %42 = vector.shape_cast %41 : vector<8xf32> to vector<8x1xf32>
    %43 = tpu.reciprocal %42 {approx = true} : vector<8x1xf32> -> vector<8x1xf32>
    %44 = vector.broadcast %43 : vector<8x1xf32> to vector<8x8xf32>
    %45 = arith.mulf %40, %44 : vector<8x8xf32>
    %46 = arith.truncf %45 : vector<8x8xf32> to vector<8x8xbf16>
    %cst_12 = arith.constant dense<0.000000e+00> : vector<8x8xf32>
    %47 = tpu.matmul %46, %34, %cst_12 {dimension_numbers = #tpu.dot_dimension_numbers<[1], [0], [0], [1], [0, 0, 1, 1], [], []>} : vector<8x8xbf16>, vector<8x8xbf16>, vector<8x8xf32> -> vector<8x8xf32>
    %48 = vector.extract_strided_slice %7 {offsets = [0, 16], sizes = [8, 8], strides = [1, 1]} : vector<8x32xf32> to vector<8x8xf32>
    %49 = arith.truncf %48 : vector<8x8xf32> to vector<8x8xbf16>
    %50 = vector.extract_strided_slice %8 {offsets = [0, 16], sizes = [8, 8], strides = [1, 1]} : vector<8x32xf32> to vector<8x8xf32>
    %51 = arith.truncf %50 : vector<8x8xf32> to vector<8x8xbf16>
    %52 = vector.extract_strided_slice %9 {offsets = [0, 16], sizes = [8, 8], strides = [1, 1]} : vector<8x32xf32> to vector<8x8xf32>
    %53 = arith.truncf %52 : vector<8x8xf32> to vector<8x8xbf16>
    %cst_13 = arith.constant dense<0.000000e+00> : vector<8x8xf32>
    %54 = tpu.matmul %49, %51, %cst_13 {dimension_numbers = #tpu.dot_dimension_numbers<[1], [1], [0], [0], [0, 0, 1, 0], [], []>} : vector<8x8xbf16>, vector<8x8xbf16>, vector<8x8xf32> -> vector<8x8xf32>
    %cst_14 = arith.constant dense<0xFF800000> : vector<8xf32>
    %55 = vector.multi_reduction <maximumf>, %54, %cst_14 [1] : vector<8x8xf32> to vector<8xf32>
    %56 = vector.shape_cast %55 : vector<8xf32> to vector<8x1xf32>
    %57 = vector.broadcast %56 : vector<8x1xf32> to vector<8x8xf32>
    %58 = arith.subf %54, %57 : vector<8x8xf32>
    %59 = math.exp %58 : vector<8x8xf32>
    %cst_15 = arith.constant dense<0.000000e+00> : vector<8xf32>
    %60 = vector.multi_reduction <add>, %59, %cst_15 [1] : vector<8x8xf32> to vector<8xf32>
    %61 = vector.shape_cast %60 : vector<8xf32> to vector<8x1xf32>
    %62 = tpu.reciprocal %61 {approx = true} : vector<8x1xf32> -> vector<8x1xf32>
    %63 = vector.broadcast %62 : vector<8x1xf32> to vector<8x8xf32>
    %64 = arith.mulf %59, %63 : vector<8x8xf32>
    %65 = arith.truncf %64 : vector<8x8xf32> to vector<8x8xbf16>
    %cst_16 = arith.constant dense<0.000000e+00> : vector<8x8xf32>
    %66 = tpu.matmul %65, %53, %cst_16 {dimension_numbers = #tpu.dot_dimension_numbers<[1], [0], [0], [1], [0, 0, 1, 1], [], []>} : vector<8x8xbf16>, vector<8x8xbf16>, vector<8x8xf32> -> vector<8x8xf32>
    %67 = vector.extract_strided_slice %7 {offsets = [0, 24], sizes = [8, 8], strides = [1, 1]} : vector<8x32xf32> to vector<8x8xf32>
    %68 = arith.truncf %67 : vector<8x8xf32> to vector<8x8xbf16>
    %69 = vector.extract_strided_slice %8 {offsets = [0, 24], sizes = [8, 8], strides = [1, 1]} : vector<8x32xf32> to vector<8x8xf32>
    %70 = arith.truncf %69 : vector<8x8xf32> to vector<8x8xbf16>
    %71 = vector.extract_strided_slice %9 {offsets = [0, 24], sizes = [8, 8], strides = [1, 1]} : vector<8x32xf32> to vector<8x8xf32>
    %72 = arith.truncf %71 : vector<8x8xf32> to vector<8x8xbf16>
    %cst_17 = arith.constant dense<0.000000e+00> : vector<8x8xf32>
    %73 = tpu.matmul %68, %70, %cst_17 {dimension_numbers = #tpu.dot_dimension_numbers<[1], [1], [0], [0], [0, 0, 1, 0], [], []>} : vector<8x8xbf16>, vector<8x8xbf16>, vector<8x8xf32> -> vector<8x8xf32>
    %cst_18 = arith.constant dense<0xFF800000> : vector<8xf32>
    %74 = vector.multi_reduction <maximumf>, %73, %cst_18 [1] : vector<8x8xf32> to vector<8xf32>
    %75 = vector.shape_cast %74 : vector<8xf32> to vector<8x1xf32>
    %76 = vector.broadcast %75 : vector<8x1xf32> to vector<8x8xf32>
    %77 = arith.subf %73, %76 : vector<8x8xf32>
    %78 = math.exp %77 : vector<8x8xf32>
    %cst_19 = arith.constant dense<0.000000e+00> : vector<8xf32>
    %79 = vector.multi_reduction <add>, %78, %cst_19 [1] : vector<8x8xf32> to vector<8xf32>
    %80 = vector.shape_cast %79 : vector<8xf32> to vector<8x1xf32>
    %81 = tpu.reciprocal %80 {approx = true} : vector<8x1xf32> -> vector<8x1xf32>
    %82 = vector.broadcast %81 : vector<8x1xf32> to vector<8x8xf32>
    %83 = arith.mulf %78, %82 : vector<8x8xf32>
    %84 = arith.truncf %83 : vector<8x8xf32> to vector<8x8xbf16>
    %cst_20 = arith.constant dense<0.000000e+00> : vector<8x8xf32>
    %85 = tpu.matmul %84, %72, %cst_20 {dimension_numbers = #tpu.dot_dimension_numbers<[1], [0], [0], [1], [0, 0, 1, 1], [], []>} : vector<8x8xbf16>, vector<8x8xbf16>, vector<8x8xf32> -> vector<8x8xf32>
    %86 = tpu.concatenate %28, %47, %66, %85 in 1 : vector<8x8xf32>, vector<8x8xf32>, vector<8x8xf32>, vector<8x8xf32> -> vector<8x32xf32>
    %87 = arith.truncf %86 : vector<8x32xf32> to vector<8x32xbf16>
    %c0_21 = arith.constant 0 : index
    %c0_22 = arith.constant 0 : index
    %88 = vector.load %arg4[%c0_21, %c0_22] : memref<32x32xbf16, #tpu.memory_space<vmem>>, vector<32x32xbf16>
    %cst_23 = arith.constant dense<0.000000e+00> : vector<8x32xf32>
    %89 = tpu.matmul %87, %88, %cst_23 {dimension_numbers = #tpu.dot_dimension_numbers<[1], [0], [0], [1], [0, 0, 1, 1], [], []>} : vector<8x32xbf16>, vector<32x32xbf16>, vector<8x32xf32> -> vector<8x32xf32>
    %c0_24 = arith.constant 0 : index
    %c0_25 = arith.constant 0 : index
    %90 = vector.load %arg5[%c0_24, %c0_25] : memref<1x32xf32, #tpu.memory_space<vmem>>, vector<1x32xf32>
    %91 = vector.broadcast %90 : vector<1x32xf32> to vector<8x32xf32>
    %92 = arith.addf %89, %91 : vector<8x32xf32>
    %93 = arith.addf %1, %92 : vector<8x32xf32>
    %c0_26 = arith.constant 0 : index
    %c0_27 = arith.constant 0 : index
    %94 = vector.load %arg6[%c0_26, %c0_27] : memref<1x32xf32, #tpu.memory_space<vmem>>, vector<1x32xf32>
    %c0_28 = arith.constant 0 : index
    %c0_29 = arith.constant 0 : index
    %95 = vector.load %arg7[%c0_28, %c0_29] : memref<1x32xf32, #tpu.memory_space<vmem>>, vector<1x32xf32>
    %cst_30 = arith.constant dense<0.000000e+00> : vector<8xf32>
    %96 = vector.multi_reduction <add>, %93, %cst_30 [1] : vector<8x32xf32> to vector<8xf32>
    %97 = vector.shape_cast %96 : vector<8xf32> to vector<8x1xf32>
    %cst_31 = arith.constant 3.200000e+01 : f32
    %98 = vector.broadcast %cst_31 : f32 to vector<8x1xf32>
    %99 = arith.divf %97, %98 : vector<8x1xf32>
    %100 = vector.broadcast %99 : vector<8x1xf32> to vector<8x32xf32>
    %101 = arith.subf %93, %100 : vector<8x32xf32>
    %102 = arith.mulf %101, %101 : vector<8x32xf32>
    %cst_32 = arith.constant dense<0.000000e+00> : vector<8xf32>
    %103 = vector.multi_reduction <add>, %102, %cst_32 [1] : vector<8x32xf32> to vector<8xf32>
    %104 = vector.shape_cast %103 : vector<8xf32> to vector<8x1xf32>
    %cst_33 = arith.constant 3.200000e+01 : f32
    %105 = vector.broadcast %cst_33 : f32 to vector<8x1xf32>
    %106 = arith.divf %104, %105 : vector<8x1xf32>
    %cst_34 = arith.constant 9.99999974E-6 : f32
    %107 = vector.broadcast %cst_34 : f32 to vector<8x1xf32>
    %108 = arith.addf %106, %107 : vector<8x1xf32>
    %109 = math.rsqrt %108 : vector<8x1xf32>
    %110 = vector.broadcast %109 : vector<8x1xf32> to vector<8x32xf32>
    %111 = arith.mulf %101, %110 : vector<8x32xf32>
    %112 = vector.broadcast %94 : vector<1x32xf32> to vector<8x32xf32>
    %113 = arith.mulf %111, %112 : vector<8x32xf32>
    %114 = vector.broadcast %95 : vector<1x32xf32> to vector<8x32xf32>
    %115 = arith.addf %113, %114 : vector<8x32xf32>
    %116 = arith.truncf %115 : vector<8x32xf32> to vector<8x32xbf16>
    %c0_35 = arith.constant 0 : index
    %c0_36 = arith.constant 0 : index
    %117 = vector.load %arg8[%c0_35, %c0_36] : memref<32x64xbf16, #tpu.memory_space<vmem>>, vector<32x64xbf16>
    %cst_37 = arith.constant dense<0.000000e+00> : vector<8x64xf32>
    %118 = tpu.matmul %116, %117, %cst_37 {dimension_numbers = #tpu.dot_dimension_numbers<[1], [0], [0], [1], [0, 0, 1, 1], [], []>} : vector<8x32xbf16>, vector<32x64xbf16>, vector<8x64xf32> -> vector<8x64xf32>
    %c0_38 = arith.constant 0 : index
    %c0_39 = arith.constant 0 : index
    %119 = vector.load %arg9[%c0_38, %c0_39] : memref<1x64xf32, #tpu.memory_space<vmem>>, vector<1x64xf32>
    %120 = vector.broadcast %119 : vector<1x64xf32> to vector<8x64xf32>
    %121 = arith.addf %118, %120 : vector<8x64xf32>
    %cst_40 = arith.constant 0.000000e+00 : f32
    %122 = vector.broadcast %cst_40 : f32 to vector<8x64xf32>
    %123 = arith.maximumf %121, %122 : vector<8x64xf32>
    %124 = arith.truncf %123 : vector<8x64xf32> to vector<8x64xbf16>
    %c0_41 = arith.constant 0 : index
    %c0_42 = arith.constant 0 : index
    %125 = vector.load %arg10[%c0_41, %c0_42] : memref<64x32xbf16, #tpu.memory_space<vmem>>, vector<64x32xbf16>
    %cst_43 = arith.constant dense<0.000000e+00> : vector<8x32xf32>
    %126 = tpu.matmul %124, %125, %cst_43 {dimension_numbers = #tpu.dot_dimension_numbers<[1], [0], [0], [1], [0, 0, 1, 1], [], []>} : vector<8x64xbf16>, vector<64x32xbf16>, vector<8x32xf32> -> vector<8x32xf32>
    %c0_44 = arith.constant 0 : index
    %c0_45 = arith.constant 0 : index
    %127 = vector.load %arg11[%c0_44, %c0_45] : memref<1x32xf32, #tpu.memory_space<vmem>>, vector<1x32xf32>
    %128 = vector.broadcast %127 : vector<1x32xf32> to vector<8x32xf32>
    %129 = arith.addf %126, %128 : vector<8x32xf32>
    %130 = arith.addf %115, %129 : vector<8x32xf32>
    %c0_46 = arith.constant 0 : index
    %c0_47 = arith.constant 0 : index
    %131 = vector.load %arg12[%c0_46, %c0_47] : memref<1x32xf32, #tpu.memory_space<vmem>>, vector<1x32xf32>
    %c0_48 = arith.constant 0 : index
    %c0_49 = arith.constant 0 : index
    %132 = vector.load %arg13[%c0_48, %c0_49] : memref<1x32xf32, #tpu.memory_space<vmem>>, vector<1x32xf32>
    %cst_50 = arith.constant dense<0.000000e+00> : vector<8xf32>
    %133 = vector.multi_reduction <add>, %130, %cst_50 [1] : vector<8x32xf32> to vector<8xf32>
    %134 = vector.shape_cast %133 : vector<8xf32> to vector<8x1xf32>
    %cst_51 = arith.constant 3.200000e+01 : f32
    %135 = vector.broadcast %cst_51 : f32 to vector<8x1xf32>
    %136 = arith.divf %134, %135 : vector<8x1xf32>
    %137 = vector.broadcast %136 : vector<8x1xf32> to vector<8x32xf32>
    %138 = arith.subf %130, %137 : vector<8x32xf32>
    %139 = arith.mulf %138, %138 : vector<8x32xf32>
    %cst_52 = arith.constant dense<0.000000e+00> : vector<8xf32>
    %140 = vector.multi_reduction <add>, %139, %cst_52 [1] : vector<8x32xf32> to vector<8xf32>
    %141 = vector.shape_cast %140 : vector<8xf32> to vector<8x1xf32>
    %cst_53 = arith.constant 3.200000e+01 : f32
    %142 = vector.broadcast %cst_53 : f32 to vector<8x1xf32>
    %143 = arith.divf %141, %142 : vector<8x1xf32>
    %cst_54 = arith.constant 9.99999974E-6 : f32
    %144 = vector.broadcast %cst_54 : f32 to vector<8x1xf32>
    %145 = arith.addf %143, %144 : vector<8x1xf32>
    %146 = math.rsqrt %145 : vector<8x1xf32>
    %147 = vector.broadcast %146 : vector<8x1xf32> to vector<8x32xf32>
    %148 = arith.mulf %138, %147 : vector<8x32xf32>
    %149 = vector.broadcast %131 : vector<1x32xf32> to vector<8x32xf32>
    %150 = arith.mulf %148, %149 : vector<8x32xf32>
    %151 = vector.broadcast %132 : vector<1x32xf32> to vector<8x32xf32>
    %152 = arith.addf %150, %151 : vector<8x32xf32>
    %153 = arith.truncf %152 : vector<8x32xf32> to vector<8x32xbf16>
    %c0_55 = arith.constant 0 : index
    %c0_56 = arith.constant 0 : index
    %154 = vector.load %arg14[%c0_55, %c0_56] : memref<8x32xbf16, #tpu.memory_space<vmem>>, vector<8x32xbf16>
    tpu.vector_store %arg14[%c0_55, %c0_56], %153 {strides = array<i32>} : memref<8x32xbf16, #tpu.memory_space<vmem>>, vector<8x32xbf16>,
    return
  }
  func.func @transform_0(%arg0: i32) -> (i32, i32) {
    %c0_i32 = arith.constant 0 : i32
    %c0_i32_0 = arith.constant 0 : i32
    return %arg0, %c0_i32 : i32, i32
  }
  func.func @transform_1(%arg0: i32) -> (i32, i32) {
    %c0_i32 = arith.constant 0 : i32
    %c0_i32_0 = arith.constant 0 : i32
    %c0_i32_1 = arith.constant 0 : i32
    return %c0_i32, %c0_i32_0 : i32, i32
  }
  func.func @transform_2(%arg0: i32) -> (i32, i32) {
    %c0_i32 = arith.constant 0 : i32
    %c0_i32_0 = arith.constant 0 : i32
    %c0_i32_1 = arith.constant 0 : i32
    return %c0_i32, %c0_i32_0 : i32, i32
  }
  func.func @transform_3(%arg0: i32) -> (i32, i32) {
    %c0_i32 = arith.constant 0 : i32
    %c0_i32_0 = arith.constant 0 : i32
    %c0_i32_1 = arith.constant 0 : i32
    return %c0_i32, %c0_i32_0 : i32, i32
  }
  func.func @transform_4(%arg0: i32) -> (i32, i32) {
    %c0_i32 = arith.constant 0 : i32
    %c0_i32_0 = arith.constant 0 : i32
    %c0_i32_1 = arith.constant 0 : i32
    return %c0_i32, %c0_i32_0 : i32, i32
  }
  func.func @transform_5(%arg0: i32) -> (i32, i32) {
    %c0_i32 = arith.constant 0 : i32
    %c0_i32_0 = arith.constant 0 : i32
    %c0_i32_1 = arith.constant 0 : i32
    return %c0_i32, %c0_i32_0 : i32, i32
  }
  func.func @transform_6(%arg0: i32) -> (i32, i32) {
    %c0_i32 = arith.constant 0 : i32
    %c0_i32_0 = arith.constant 0 : i32
    %c0_i32_1 = arith.constant 0 : i32
    return %c0_i32, %c0_i32_0 : i32, i32
  }
  func.func @transform_7(%arg0: i32) -> (i32, i32) {
    %c0_i32 = arith.constant 0 : i32
    %c0_i32_0 = arith.constant 0 : i32
    %c0_i32_1 = arith.constant 0 : i32
    return %c0_i32, %c0_i32_0 : i32, i32
  }
  func.func @transform_8(%arg0: i32) -> (i32, i32) {
    %c0_i32 = arith.constant 0 : i32
    %c0_i32_0 = arith.constant 0 : i32
    %c0_i32_1 = arith.constant 0 : i32
    return %c0_i32, %c0_i32_0 : i32, i32
  }
  func.func @transform_9(%arg0: i32) -> (i32, i32) {
    %c0_i32 = arith.constant 0 : i32
    %c0_i32_0 = arith.constant 0 : i32
    %c0_i32_1 = arith.constant 0 : i32
    return %c0_i32, %c0_i32_0 : i32, i32
  }
  func.func @transform_10(%arg0: i32) -> (i32, i32) {
    %c0_i32 = arith.constant 0 : i32
    %c0_i32_0 = arith.constant 0 : i32
    %c0_i32_1 = arith.constant 0 : i32
    return %c0_i32, %c0_i32_0 : i32, i32
  }
  func.func @transform_11(%arg0: i32) -> (i32, i32) {
    %c0_i32 = arith.constant 0 : i32
    %c0_i32_0 = arith.constant 0 : i32
    %c0_i32_1 = arith.constant 0 : i32
    return %c0_i32, %c0_i32_0 : i32, i32
  }
  func.func @transform_12(%arg0: i32) -> (i32, i32) {
    %c0_i32 = arith.constant 0 : i32
    %c0_i32_0 = arith.constant 0 : i32
    %c0_i32_1 = arith.constant 0 : i32
    return %c0_i32, %c0_i32_0 : i32, i32
  }
  func.func @transform_13(%arg0: i32) -> (i32, i32) {
    %c0_i32 = arith.constant 0 : i32
    %c0_i32_0 = arith.constant 0 : i32
    return %arg0, %c0_i32 : i32, i32
  }
}

module attributes {stable_mosaic.version = 11 : i64} {
  func.func @_layernorm_kernel(%arg0: i32, %arg1: memref<8x32xbf16, #tpu.memory_space<vmem>>, %arg2: memref<1x32xf32, #tpu.memory_space<vmem>>, %arg3: memref<1x32xf32, #tpu.memory_space<vmem>>, %arg4: memref<8x32xbf16, #tpu.memory_space<vmem>>) attributes {dimension_semantics = [#tpu.dimension_semantics<parallel>], iteration_bounds = array<i64: 2>, scalar_prefetch = 0 : i64, scratch_operands = 0 : i64, tpu.core_type = #tpu.core_type<tc>, window_params = [{transform_indices = @transform_0, window_bounds = array<i64: 8, 32>}, {pipeline_mode = #tpu.pipeline_mode<synchronous>, transform_indices = @transform_1, window_bounds = array<i64: 1, 32>}, {pipeline_mode = #tpu.pipeline_mode<synchronous>, transform_indices = @transform_2, window_bounds = array<i64: 1, 32>}, {transform_indices = @transform_3, window_bounds = array<i64: 8, 32>}]} {
    %c0 = arith.constant 0 : index
    %c0_0 = arith.constant 0 : index
    %0 = vector.load %arg1[%c0, %c0_0] : memref<8x32xbf16, #tpu.memory_space<vmem>>, vector<8x32xbf16>
    %1 = arith.extf %0 : vector<8x32xbf16> to vector<8x32xf32>
    %c0_1 = arith.constant 0 : index
    %c0_2 = arith.constant 0 : index
    %2 = vector.load %arg2[%c0_1, %c0_2] : memref<1x32xf32, #tpu.memory_space<vmem>>, vector<1x32xf32>
    %c0_3 = arith.constant 0 : index
    %c0_4 = arith.constant 0 : index
    %3 = vector.load %arg3[%c0_3, %c0_4] : memref<1x32xf32, #tpu.memory_space<vmem>>, vector<1x32xf32>
    %cst = arith.constant dense<0.000000e+00> : vector<8xf32>
    %4 = vector.multi_reduction <add>, %1, %cst [1] : vector<8x32xf32> to vector<8xf32>
    %5 = vector.shape_cast %4 : vector<8xf32> to vector<8x1xf32>
    %cst_5 = arith.constant 3.200000e+01 : f32
    %6 = vector.broadcast %cst_5 : f32 to vector<8x1xf32>
    %7 = arith.divf %5, %6 : vector<8x1xf32>
    %8 = vector.broadcast %7 : vector<8x1xf32> to vector<8x32xf32>
    %9 = arith.subf %1, %8 : vector<8x32xf32>
    %10 = arith.mulf %9, %9 : vector<8x32xf32>
    %cst_6 = arith.constant dense<0.000000e+00> : vector<8xf32>
    %11 = vector.multi_reduction <add>, %10, %cst_6 [1] : vector<8x32xf32> to vector<8xf32>
    %12 = vector.shape_cast %11 : vector<8xf32> to vector<8x1xf32>
    %cst_7 = arith.constant 3.200000e+01 : f32
    %13 = vector.broadcast %cst_7 : f32 to vector<8x1xf32>
    %14 = arith.divf %12, %13 : vector<8x1xf32>
    %cst_8 = arith.constant 9.99999974E-6 : f32
    %15 = vector.broadcast %cst_8 : f32 to vector<8x1xf32>
    %16 = arith.addf %14, %15 : vector<8x1xf32>
    %17 = math.rsqrt %16 : vector<8x1xf32>
    %18 = vector.broadcast %17 : vector<8x1xf32> to vector<8x32xf32>
    %19 = arith.mulf %9, %18 : vector<8x32xf32>
    %20 = vector.broadcast %2 : vector<1x32xf32> to vector<8x32xf32>
    %21 = arith.mulf %19, %20 : vector<8x32xf32>
    %22 = vector.broadcast %3 : vector<1x32xf32> to vector<8x32xf32>
    %23 = arith.addf %21, %22 : vector<8x32xf32>
    %24 = arith.truncf %23 : vector<8x32xf32> to vector<8x32xbf16>
    %c0_9 = arith.constant 0 : index
    %c0_10 = arith.constant 0 : index
    %25 = vector.load %arg4[%c0_9, %c0_10] : memref<8x32xbf16, #tpu.memory_space<vmem>>, vector<8x32xbf16>
    tpu.vector_store %arg4[%c0_9, %c0_10], %24 {strides = array<i32>} : memref<8x32xbf16, #tpu.memory_space<vmem>>, vector<8x32xbf16>,
    return
  }
  func.func @transform_0(%arg0: i32) -> (i32, i32) {
    %c0_i32 = arith.constant 0 : i32
    %c0_i32_0 = arith.constant 0 : i32
    return %arg0, %c0_i32 : i32, i32
  }
  func.func @transform_1(%arg0: i32) -> (i32, i32) {
    %c0_i32 = arith.constant 0 : i32
    %c0_i32_0 = arith.constant 0 : i32
    %c0_i32_1 = arith.constant 0 : i32
    return %c0_i32, %c0_i32_0 : i32, i32
  }
  func.func @transform_2(%arg0: i32) -> (i32, i32) {
    %c0_i32 = arith.constant 0 : i32
    %c0_i32_0 = arith.constant 0 : i32
    %c0_i32_1 = arith.constant 0 : i32
    return %c0_i32, %c0_i32_0 : i32, i32
  }
  func.func @transform_3(%arg0: i32) -> (i32, i32) {
    %c0_i32 = arith.constant 0 : i32
    %c0_i32_0 = arith.constant 0 : i32
    return %arg0, %c0_i32 : i32, i32
  }
}

module attributes {stable_mosaic.version = 11 : i64} {
  func.func @_decoder_layer_kernel(%arg0: i32, %arg1: memref<8x32xbf16, #tpu.memory_space<vmem>>, %arg2: memref<8x32xbf16, #tpu.memory_space<vmem>>, %arg3: memref<32x96xbf16, #tpu.memory_space<vmem>>, %arg4: memref<1x96xf32, #tpu.memory_space<vmem>>, %arg5: memref<32x32xbf16, #tpu.memory_space<vmem>>, %arg6: memref<1x32xf32, #tpu.memory_space<vmem>>, %arg7: memref<1x32xf32, #tpu.memory_space<vmem>>, %arg8: memref<1x32xf32, #tpu.memory_space<vmem>>, %arg9: memref<32x32xbf16, #tpu.memory_space<vmem>>, %arg10: memref<1x32xf32, #tpu.memory_space<vmem>>, %arg11: memref<32x64xbf16, #tpu.memory_space<vmem>>, %arg12: memref<1x64xf32, #tpu.memory_space<vmem>>, %arg13: memref<32x32xbf16, #tpu.memory_space<vmem>>, %arg14: memref<1x32xf32, #tpu.memory_space<vmem>>, %arg15: memref<1x32xf32, #tpu.memory_space<vmem>>, %arg16: memref<1x32xf32, #tpu.memory_space<vmem>>, %arg17: memref<32x64xbf16, #tpu.memory_space<vmem>>, %arg18: memref<1x64xf32, #tpu.memory_space<vmem>>, %arg19: memref<64x32xbf16, #tpu.memory_space<vmem>>, %arg20: memref<1x32xf32, #tpu.memory_space<vmem>>, %arg21: memref<1x32xf32, #tpu.memory_space<vmem>>, %arg22: memref<1x32xf32, #tpu.memory_space<vmem>>, %arg23: memref<8x32xbf16, #tpu.memory_space<vmem>>) attributes {dimension_semantics = [#tpu.dimension_semantics<parallel>], iteration_bounds = array<i64: 2>, scalar_prefetch = 0 : i64, scratch_operands = 0 : i64, tpu.core_type = #tpu.core_type<tc>, window_params = [{transform_indices = @transform_0, window_bounds = array<i64: 8, 32>}, {transform_indices = @transform_1, window_bounds = array<i64: 8, 32>}, {pipeline_mode = #tpu.pipeline_mode<synchronous>, transform_indices = @transform_2, window_bounds = array<i64: 32, 96>}, {pipeline_mode = #tpu.pipeline_mode<synchronous>, transform_indices = @transform_3, window_bounds = array<i64: 1, 96>}, {pipeline_mode = #tpu.pipeline_mode<synchronous>, transform_indices = @transform_4, window_bounds = array<i64: 32, 32>}, {pipeline_mode = #tpu.pipeline_mode<synchronous>, transform_indices = @transform_5, window_bounds = array<i64: 1, 32>}, {pipeline_mode = #tpu.pipeline_mode<synchronous>, transform_indices = @transform_6, window_bounds = array<i64: 1, 32>}, {pipeline_mode = #tpu.pipeline_mode<synchronous>, transform_indices = @transform_7, window_bounds = array<i64: 1, 32>}, {pipeline_mode = #tpu.pipeline_mode<synchronous>, transform_indices = @transform_8, window_bounds = array<i64: 32, 32>}, {pipeline_mode = #tpu.pipeline_mode<synchronous>, transform_indices = @transform_9, window_bounds = array<i64: 1, 32>}, {pipeline_mode = #tpu.pipeline_mode<synchronous>, transform_indices = @transform_10, window_bounds = array<i64: 32, 64>}, {pipeline_mode = #tpu.pipeline_mode<synchronous>, transform_indices = @transform_11, window_bounds = array<i64: 1, 64>}, {pipeline_mode = #tpu.pipeline_mode<synchronous>, transform_indices = @transform_12, window_bounds = array<i64: 32, 32>}, {pipeline_mode = #tpu.pipeline_mode<synchronous>, transform_indices = @transform_13, window_bounds = array<i64: 1, 32>}, {pipeline_mode = #tpu.pipeline_mode<synchronous>, transform_indices = @transform_14, window_bounds = array<i64: 1, 32>}, {pipeline_mode = #tpu.pipeline_mode<synchronous>, transform_indices = @transform_15, window_bounds = array<i64: 1, 32>}, {pipeline_mode = #tpu.pipeline_mode<synchronous>, transform_indices = @transform_16, window_bounds = array<i64: 32, 64>}, {pipeline_mode = #tpu.pipeline_mode<synchronous>, transform_indices = @transform_17, window_bounds = array<i64: 1, 64>}, {pipeline_mode = #tpu.pipeline_mode<synchronous>, transform_indices = @transform_18, window_bounds = array<i64: 64, 32>}, {pipeline_mode = #tpu.pipeline_mode<synchronous>, transform_indices = @transform_19, window_bounds = array<i64: 1, 32>}, {pipeline_mode = #tpu.pipeline_mode<synchronous>, transform_indices = @transform_20, window_bounds = array<i64: 1, 32>}, {pipeline_mode = #tpu.pipeline_mode<synchronous>, transform_indices = @transform_21, window_bounds = array<i64: 1, 32>}, {transform_indices = @transform_22, window_bounds = array<i64: 8, 32>}]} {
    %c0 = arith.constant 0 : index
    %c0_0 = arith.constant 0 : index
    %0 = vector.load %arg1[%c0, %c0_0] : memref<8x32xbf16, #tpu.memory_space<vmem>>, vector<8x32xbf16>
    %1 = arith.extf %0 : vector<8x32xbf16> to vector<8x32xf32>
    %c0_1 = arith.constant 0 : index
    %c0_2 = arith.constant 0 : index
    %2 = vector.load %arg2[%c0_1, %c0_2] : memref<8x32xbf16, #tpu.memory_space<vmem>>, vector<8x32xbf16>
    %c0_3 = arith.constant 0 : index
    %c0_4 = arith.constant 0 : index
    %3 = vector.load %arg3[%c0_3, %c0_4] : memref<32x96xbf16, #tpu.memory_space<vmem>>, vector<32x96xbf16>
    %cst = arith.constant dense<0.000000e+00> : vector<8x96xf32>
    %4 = tpu.matmul %0, %3, %cst {dimension_numbers = #tpu.dot_dimension_numbers<[1], [0], [0], [1], [0, 0, 1, 1], [], []>} : vector<8x32xbf16>, vector<32x96xbf16>, vector<8x96xf32> -> vector<8x96xf32>
    %c0_5 = arith.constant 0 : index
    %c0_6 = arith.constant 0 : index
    %5 = vector.load %arg4[%c0_5, %c0_6] : memref<1x96xf32, #tpu.memory_space<vmem>>, vector<1x96xf32>
    %6 = vector.broadcast %5 : vector<1x96xf32> to vector<8x96xf32>
    %7 = arith.addf %4, %6 : vector<8x96xf32>
    %8 = tpu.iota {dimensions = array<i32: 0>} : vector<8x8xi32>
    %9 = tpu.iota {dimensions = array<i32: 1>} : vector<8x8xi32>
    %10 = arith.cmpi sle, %9, %8 : vector<8x8xi32>
    %cst_7 = arith.constant 0.000000e+00 : f32
    %cst_8 = arith.constant 0xFF800000 : f32
    %11 = vector.broadcast %cst_7 : f32 to vector<8x8xf32>
    %12 = vector.broadcast %cst_8 : f32 to vector<8x8xf32>
    %13 = arith.select %10, %11, %12 : vector<8x8xi1>, vector<8x8xf32>
    %14 = vector.extract_strided_slice %7 {offsets = [0, 0], sizes = [8, 32], strides = [1, 1]} : vector<8x96xf32> to vector<8x32xf32>
    %15 = vector.extract_strided_slice %7 {offsets = [0, 32], sizes = [8, 32], strides = [1, 1]} : vector<8x96xf32> to vector<8x32xf32>
    %16 = vector.extract_strided_slice %7 {offsets = [0, 64], sizes = [8, 32], strides = [1, 1]} : vector<8x96xf32> to vector<8x32xf32>
    %17 = vector.extract_strided_slice %14 {offsets = [0, 0], sizes = [8, 8], strides = [1, 1]} : vector<8x32xf32> to vector<8x8xf32>
    %18 = arith.truncf %17 : vector<8x8xf32> to vector<8x8xbf16>
    %19 = vector.extract_strided_slice %15 {offsets = [0, 0], sizes = [8, 8], strides = [1, 1]} : vector<8x32xf32> to vector<8x8xf32>
    %20 = arith.truncf %19 : vector<8x8xf32> to vector<8x8xbf16>
    %21 = vector.extract_strided_slice %16 {offsets = [0, 0], sizes = [8, 8], strides = [1, 1]} : vector<8x32xf32> to vector<8x8xf32>
    %22 = arith.truncf %21 : vector<8x8xf32> to vector<8x8xbf16>
    %cst_9 = arith.constant dense<0.000000e+00> : vector<8x8xf32>
    %23 = tpu.matmul %18, %20, %cst_9 {dimension_numbers = #tpu.dot_dimension_numbers<[1], [1], [0], [0], [0, 0, 1, 0], [], []>} : vector<8x8xbf16>, vector<8x8xbf16>, vector<8x8xf32> -> vector<8x8xf32>
    %24 = arith.addf %23, %13 : vector<8x8xf32>
    %cst_10 = arith.constant dense<0xFF800000> : vector<8xf32>
    %25 = vector.multi_reduction <maximumf>, %24, %cst_10 [1] : vector<8x8xf32> to vector<8xf32>
    %26 = vector.shape_cast %25 : vector<8xf32> to vector<8x1xf32>
    %27 = vector.broadcast %26 : vector<8x1xf32> to vector<8x8xf32>
    %28 = arith.subf %24, %27 : vector<8x8xf32>
    %29 = math.exp %28 : vector<8x8xf32>
    %cst_11 = arith.constant dense<0.000000e+00> : vector<8xf32>
    %30 = vector.multi_reduction <add>, %29, %cst_11 [1] : vector<8x8xf32> to vector<8xf32>
    %31 = vector.shape_cast %30 : vector<8xf32> to vector<8x1xf32>
    %32 = tpu.reciprocal %31 {approx = true} : vector<8x1xf32> -> vector<8x1xf32>
    %33 = vector.broadcast %32 : vector<8x1xf32> to vector<8x8xf32>
    %34 = arith.mulf %29, %33 : vector<8x8xf32>
    %35 = arith.truncf %34 : vector<8x8xf32> to vector<8x8xbf16>
    %cst_12 = arith.constant dense<0.000000e+00> : vector<8x8xf32>
    %36 = tpu.matmul %35, %22, %cst_12 {dimension_numbers = #tpu.dot_dimension_numbers<[1], [0], [0], [1], [0, 0, 1, 1], [], []>} : vector<8x8xbf16>, vector<8x8xbf16>, vector<8x8xf32> -> vector<8x8xf32>
    %37 = vector.extract_strided_slice %14 {offsets = [0, 8], sizes = [8, 8], strides = [1, 1]} : vector<8x32xf32> to vector<8x8xf32>
    %38 = arith.truncf %37 : vector<8x8xf32> to vector<8x8xbf16>
    %39 = vector.extract_strided_slice %15 {offsets = [0, 8], sizes = [8, 8], strides = [1, 1]} : vector<8x32xf32> to vector<8x8xf32>
    %40 = arith.truncf %39 : vector<8x8xf32> to vector<8x8xbf16>
    %41 = vector.extract_strided_slice %16 {offsets = [0, 8], sizes = [8, 8], strides = [1, 1]} : vector<8x32xf32> to vector<8x8xf32>
    %42 = arith.truncf %41 : vector<8x8xf32> to vector<8x8xbf16>
    %cst_13 = arith.constant dense<0.000000e+00> : vector<8x8xf32>
    %43 = tpu.matmul %38, %40, %cst_13 {dimension_numbers = #tpu.dot_dimension_numbers<[1], [1], [0], [0], [0, 0, 1, 0], [], []>} : vector<8x8xbf16>, vector<8x8xbf16>, vector<8x8xf32> -> vector<8x8xf32>
    %44 = arith.addf %43, %13 : vector<8x8xf32>
    %cst_14 = arith.constant dense<0xFF800000> : vector<8xf32>
    %45 = vector.multi_reduction <maximumf>, %44, %cst_14 [1] : vector<8x8xf32> to vector<8xf32>
    %46 = vector.shape_cast %45 : vector<8xf32> to vector<8x1xf32>
    %47 = vector.broadcast %46 : vector<8x1xf32> to vector<8x8xf32>
    %48 = arith.subf %44, %47 : vector<8x8xf32>
    %49 = math.exp %48 : vector<8x8xf32>
    %cst_15 = arith.constant dense<0.000000e+00> : vector<8xf32>
    %50 = vector.multi_reduction <add>, %49, %cst_15 [1] : vector<8x8xf32> to vector<8xf32>
    %51 = vector.shape_cast %50 : vector<8xf32> to vector<8x1xf32>
    %52 = tpu.reciprocal %51 {approx = true} : vector<8x1xf32> -> vector<8x1xf32>
    %53 = vector.broadcast %52 : vector<8x1xf32> to vector<8x8xf32>
    %54 = arith.mulf %49, %53 : vector<8x8xf32>
    %55 = arith.truncf %54 : vector<8x8xf32> to vector<8x8xbf16>
    %cst_16 = arith.constant dense<0.000000e+00> : vector<8x8xf32>
    %56 = tpu.matmul %55, %42, %cst_16 {dimension_numbers = #tpu.dot_dimension_numbers<[1], [0], [0], [1], [0, 0, 1, 1], [], []>} : vector<8x8xbf16>, vector<8x8xbf16>, vector<8x8xf32> -> vector<8x8xf32>
    %57 = vector.extract_strided_slice %14 {offsets = [0, 16], sizes = [8, 8], strides = [1, 1]} : vector<8x32xf32> to vector<8x8xf32>
    %58 = arith.truncf %57 : vector<8x8xf32> to vector<8x8xbf16>
    %59 = vector.extract_strided_slice %15 {offsets = [0, 16], sizes = [8, 8], strides = [1, 1]} : vector<8x32xf32> to vector<8x8xf32>
    %60 = arith.truncf %59 : vector<8x8xf32> to vector<8x8xbf16>
    %61 = vector.extract_strided_slice %16 {offsets = [0, 16], sizes = [8, 8], strides = [1, 1]} : vector<8x32xf32> to vector<8x8xf32>
    %62 = arith.truncf %61 : vector<8x8xf32> to vector<8x8xbf16>
    %cst_17 = arith.constant dense<0.000000e+00> : vector<8x8xf32>
    %63 = tpu.matmul %58, %60, %cst_17 {dimension_numbers = #tpu.dot_dimension_numbers<[1], [1], [0], [0], [0, 0, 1, 0], [], []>} : vector<8x8xbf16>, vector<8x8xbf16>, vector<8x8xf32> -> vector<8x8xf32>
    %64 = arith.addf %63, %13 : vector<8x8xf32>
    %cst_18 = arith.constant dense<0xFF800000> : vector<8xf32>
    %65 = vector.multi_reduction <maximumf>, %64, %cst_18 [1] : vector<8x8xf32> to vector<8xf32>
    %66 = vector.shape_cast %65 : vector<8xf32> to vector<8x1xf32>
    %67 = vector.broadcast %66 : vector<8x1xf32> to vector<8x8xf32>
    %68 = arith.subf %64, %67 : vector<8x8xf32>
    %69 = math.exp %68 : vector<8x8xf32>
    %cst_19 = arith.constant dense<0.000000e+00> : vector<8xf32>
    %70 = vector.multi_reduction <add>, %69, %cst_19 [1] : vector<8x8xf32> to vector<8xf32>
    %71 = vector.shape_cast %70 : vector<8xf32> to vector<8x1xf32>
    %72 = tpu.reciprocal %71 {approx = true} : vector<8x1xf32> -> vector<8x1xf32>
    %73 = vector.broadcast %72 : vector<8x1xf32> to vector<8x8xf32>
    %74 = arith.mulf %69, %73 : vector<8x8xf32>
    %75 = arith.truncf %74 : vector<8x8xf32> to vector<8x8xbf16>
    %cst_20 = arith.constant dense<0.000000e+00> : vector<8x8xf32>
    %76 = tpu.matmul %75, %62, %cst_20 {dimension_numbers = #tpu.dot_dimension_numbers<[1], [0], [0], [1], [0, 0, 1, 1], [], []>} : vector<8x8xbf16>, vector<8x8xbf16>, vector<8x8xf32> -> vector<8x8xf32>
    %77 = vector.extract_strided_slice %14 {offsets = [0, 24], sizes = [8, 8], strides = [1, 1]} : vector<8x32xf32> to vector<8x8xf32>
    %78 = arith.truncf %77 : vector<8x8xf32> to vector<8x8xbf16>
    %79 = vector.extract_strided_slice %15 {offsets = [0, 24], sizes = [8, 8], strides = [1, 1]} : vector<8x32xf32> to vector<8x8xf32>
    %80 = arith.truncf %79 : vector<8x8xf32> to vector<8x8xbf16>
    %81 = vector.extract_strided_slice %16 {offsets = [0, 24], sizes = [8, 8], strides = [1, 1]} : vector<8x32xf32> to vector<8x8xf32>
    %82 = arith.truncf %81 : vector<8x8xf32> to vector<8x8xbf16>
    %cst_21 = arith.constant dense<0.000000e+00> : vector<8x8xf32>
    %83 = tpu.matmul %78, %80, %cst_21 {dimension_numbers = #tpu.dot_dimension_numbers<[1], [1], [0], [0], [0, 0, 1, 0], [], []>} : vector<8x8xbf16>, vector<8x8xbf16>, vector<8x8xf32> -> vector<8x8xf32>
    %84 = arith.addf %83, %13 : vector<8x8xf32>
    %cst_22 = arith.constant dense<0xFF800000> : vector<8xf32>
    %85 = vector.multi_reduction <maximumf>, %84, %cst_22 [1] : vector<8x8xf32> to vector<8xf32>
    %86 = vector.shape_cast %85 : vector<8xf32> to vector<8x1xf32>
    %87 = vector.broadcast %86 : vector<8x1xf32> to vector<8x8xf32>
    %88 = arith.subf %84, %87 : vector<8x8xf32>
    %89 = math.exp %88 : vector<8x8xf32>
    %cst_23 = arith.constant dense<0.000000e+00> : vector<8xf32>
    %90 = vector.multi_reduction <add>, %89, %cst_23 [1] : vector<8x8xf32> to vector<8xf32>
    %91 = vector.shape_cast %90 : vector<8xf32> to vector<8x1xf32>
    %92 = tpu.reciprocal %91 {approx = true} : vector<8x1xf32> -> vector<8x1xf32>
    %93 = vector.broadcast %92 : vector<8x1xf32> to vector<8x8xf32>
    %94 = arith.mulf %89, %93 : vector<8x8xf32>
    %95 = arith.truncf %94 : vector<8x8xf32> to vector<8x8xbf16>
    %cst_24 = arith.constant dense<0.000000e+00> : vector<8x8xf32>
    %96 = tpu.matmul %95, %82, %cst_24 {dimension_numbers = #tpu.dot_dimension_numbers<[1], [0], [0], [1], [0, 0, 1, 1], [], []>} : vector<8x8xbf16>, vector<8x8xbf16>, vector<8x8xf32> -> vector<8x8xf32>
    %97 = tpu.concatenate %36, %56, %76, %96 in 1 : vector<8x8xf32>, vector<8x8xf32>, vector<8x8xf32>, vector<8x8xf32> -> vector<8x32xf32>
    %98 = arith.truncf %97 : vector<8x32xf32> to vector<8x32xbf16>
    %c0_25 = arith.constant 0 : index
    %c0_26 = arith.constant 0 : index
    %99 = vector.load %arg5[%c0_25, %c0_26] : memref<32x32xbf16, #tpu.memory_space<vmem>>, vector<32x32xbf16>
    %cst_27 = arith.constant dense<0.000000e+00> : vector<8x32xf32>
    %100 = tpu.matmul %98, %99, %cst_27 {dimension_numbers = #tpu.dot_dimension_numbers<[1], [0], [0], [1], [0, 0, 1, 1], [], []>} : vector<8x32xbf16>, vector<32x32xbf16>, vector<8x32xf32> -> vector<8x32xf32>
    %c0_28 = arith.constant 0 : index
    %c0_29 = arith.constant 0 : index
    %101 = vector.load %arg6[%c0_28, %c0_29] : memref<1x32xf32, #tpu.memory_space<vmem>>, vector<1x32xf32>
    %102 = vector.broadcast %101 : vector<1x32xf32> to vector<8x32xf32>
    %103 = arith.addf %100, %102 : vector<8x32xf32>
    %104 = arith.addf %1, %103 : vector<8x32xf32>
    %c0_30 = arith.constant 0 : index
    %c0_31 = arith.constant 0 : index
    %105 = vector.load %arg7[%c0_30, %c0_31] : memref<1x32xf32, #tpu.memory_space<vmem>>, vector<1x32xf32>
    %c0_32 = arith.constant 0 : index
    %c0_33 = arith.constant 0 : index
    %106 = vector.load %arg8[%c0_32, %c0_33] : memref<1x32xf32, #tpu.memory_space<vmem>>, vector<1x32xf32>
    %cst_34 = arith.constant dense<0.000000e+00> : vector<8xf32>
    %107 = vector.multi_reduction <add>, %104, %cst_34 [1] : vector<8x32xf32> to vector<8xf32>
    %108 = vector.shape_cast %107 : vector<8xf32> to vector<8x1xf32>
    %cst_35 = arith.constant 3.200000e+01 : f32
    %109 = vector.broadcast %cst_35 : f32 to vector<8x1xf32>
    %110 = arith.divf %108, %109 : vector<8x1xf32>
    %111 = vector.broadcast %110 : vector<8x1xf32> to vector<8x32xf32>
    %112 = arith.subf %104, %111 : vector<8x32xf32>
    %113 = arith.mulf %112, %112 : vector<8x32xf32>
    %cst_36 = arith.constant dense<0.000000e+00> : vector<8xf32>
    %114 = vector.multi_reduction <add>, %113, %cst_36 [1] : vector<8x32xf32> to vector<8xf32>
    %115 = vector.shape_cast %114 : vector<8xf32> to vector<8x1xf32>
    %cst_37 = arith.constant 3.200000e+01 : f32
    %116 = vector.broadcast %cst_37 : f32 to vector<8x1xf32>
    %117 = arith.divf %115, %116 : vector<8x1xf32>
    %cst_38 = arith.constant 9.99999974E-6 : f32
    %118 = vector.broadcast %cst_38 : f32 to vector<8x1xf32>
    %119 = arith.addf %117, %118 : vector<8x1xf32>
    %120 = math.rsqrt %119 : vector<8x1xf32>
    %121 = vector.broadcast %120 : vector<8x1xf32> to vector<8x32xf32>
    %122 = arith.mulf %112, %121 : vector<8x32xf32>
    %123 = vector.broadcast %105 : vector<1x32xf32> to vector<8x32xf32>
    %124 = arith.mulf %122, %123 : vector<8x32xf32>
    %125 = vector.broadcast %106 : vector<1x32xf32> to vector<8x32xf32>
    %126 = arith.addf %124, %125 : vector<8x32xf32>
    %127 = arith.truncf %126 : vector<8x32xf32> to vector<8x32xbf16>
    %c0_39 = arith.constant 0 : index
    %c0_40 = arith.constant 0 : index
    %128 = vector.load %arg9[%c0_39, %c0_40] : memref<32x32xbf16, #tpu.memory_space<vmem>>, vector<32x32xbf16>
    %cst_41 = arith.constant dense<0.000000e+00> : vector<8x32xf32>
    %129 = tpu.matmul %127, %128, %cst_41 {dimension_numbers = #tpu.dot_dimension_numbers<[1], [0], [0], [1], [0, 0, 1, 1], [], []>} : vector<8x32xbf16>, vector<32x32xbf16>, vector<8x32xf32> -> vector<8x32xf32>
    %c0_42 = arith.constant 0 : index
    %c0_43 = arith.constant 0 : index
    %130 = vector.load %arg10[%c0_42, %c0_43] : memref<1x32xf32, #tpu.memory_space<vmem>>, vector<1x32xf32>
    %131 = vector.broadcast %130 : vector<1x32xf32> to vector<8x32xf32>
    %132 = arith.addf %129, %131 : vector<8x32xf32>
    %c0_44 = arith.constant 0 : index
    %c0_45 = arith.constant 0 : index
    %133 = vector.load %arg11[%c0_44, %c0_45] : memref<32x64xbf16, #tpu.memory_space<vmem>>, vector<32x64xbf16>
    %cst_46 = arith.constant dense<0.000000e+00> : vector<8x64xf32>
    %134 = tpu.matmul %2, %133, %cst_46 {dimension_numbers = #tpu.dot_dimension_numbers<[1], [0], [0], [1], [0, 0, 1, 1], [], []>} : vector<8x32xbf16>, vector<32x64xbf16>, vector<8x64xf32> -> vector<8x64xf32>
    %c0_47 = arith.constant 0 : index
    %c0_48 = arith.constant 0 : index
    %135 = vector.load %arg12[%c0_47, %c0_48] : memref<1x64xf32, #tpu.memory_space<vmem>>, vector<1x64xf32>
    %136 = vector.broadcast %135 : vector<1x64xf32> to vector<8x64xf32>
    %137 = arith.addf %134, %136 : vector<8x64xf32>
    %138 = vector.extract_strided_slice %137 {offsets = [0, 0], sizes = [8, 32], strides = [1, 1]} : vector<8x64xf32> to vector<8x32xf32>
    %139 = vector.extract_strided_slice %137 {offsets = [0, 32], sizes = [8, 32], strides = [1, 1]} : vector<8x64xf32> to vector<8x32xf32>
    %140 = vector.extract_strided_slice %132 {offsets = [0, 0], sizes = [8, 8], strides = [1, 1]} : vector<8x32xf32> to vector<8x8xf32>
    %141 = arith.truncf %140 : vector<8x8xf32> to vector<8x8xbf16>
    %142 = vector.extract_strided_slice %138 {offsets = [0, 0], sizes = [8, 8], strides = [1, 1]} : vector<8x32xf32> to vector<8x8xf32>
    %143 = arith.truncf %142 : vector<8x8xf32> to vector<8x8xbf16>
    %144 = vector.extract_strided_slice %139 {offsets = [0, 0], sizes = [8, 8], strides = [1, 1]} : vector<8x32xf32> to vector<8x8xf32>
    %145 = arith.truncf %144 : vector<8x8xf32> to vector<8x8xbf16>
    %cst_49 = arith.constant dense<0.000000e+00> : vector<8x8xf32>
    %146 = tpu.matmul %141, %143, %cst_49 {dimension_numbers = #tpu.dot_dimension_numbers<[1], [1], [0], [0], [0, 0, 1, 0], [], []>} : vector<8x8xbf16>, vector<8x8xbf16>, vector<8x8xf32> -> vector<8x8xf32>
    %cst_50 = arith.constant dense<0xFF800000> : vector<8xf32>
    %147 = vector.multi_reduction <maximumf>, %146, %cst_50 [1] : vector<8x8xf32> to vector<8xf32>
    %148 = vector.shape_cast %147 : vector<8xf32> to vector<8x1xf32>
    %149 = vector.broadcast %148 : vector<8x1xf32> to vector<8x8xf32>
    %150 = arith.subf %146, %149 : vector<8x8xf32>
    %151 = math.exp %150 : vector<8x8xf32>
    %cst_51 = arith.constant dense<0.000000e+00> : vector<8xf32>
    %152 = vector.multi_reduction <add>, %151, %cst_51 [1] : vector<8x8xf32> to vector<8xf32>
    %153 = vector.shape_cast %152 : vector<8xf32> to vector<8x1xf32>
    %154 = tpu.reciprocal %153 {approx = true} : vector<8x1xf32> -> vector<8x1xf32>
    %155 = vector.broadcast %154 : vector<8x1xf32> to vector<8x8xf32>
    %156 = arith.mulf %151, %155 : vector<8x8xf32>
    %157 = arith.truncf %156 : vector<8x8xf32> to vector<8x8xbf16>
    %cst_52 = arith.constant dense<0.000000e+00> : vector<8x8xf32>
    %158 = tpu.matmul %157, %145, %cst_52 {dimension_numbers = #tpu.dot_dimension_numbers<[1], [0], [0], [1], [0, 0, 1, 1], [], []>} : vector<8x8xbf16>, vector<8x8xbf16>, vector<8x8xf32> -> vector<8x8xf32>
    %159 = vector.extract_strided_slice %132 {offsets = [0, 8], sizes = [8, 8], strides = [1, 1]} : vector<8x32xf32> to vector<8x8xf32>
    %160 = arith.truncf %159 : vector<8x8xf32> to vector<8x8xbf16>
    %161 = vector.extract_strided_slice %138 {offsets = [0, 8], sizes = [8, 8], strides = [1, 1]} : vector<8x32xf32> to vector<8x8xf32>
    %162 = arith.truncf %161 : vector<8x8xf32> to vector<8x8xbf16>
    %163 = vector.extract_strided_slice %139 {offsets = [0, 8], sizes = [8, 8], strides = [1, 1]} : vector<8x32xf32> to vector<8x8xf32>
    %164 = arith.truncf %163 : vector<8x8xf32> to vector<8x8xbf16>
    %cst_53 = arith.constant dense<0.000000e+00> : vector<8x8xf32>
    %165 = tpu.matmul %160, %162, %cst_53 {dimension_numbers = #tpu.dot_dimension_numbers<[1], [1], [0], [0], [0, 0, 1, 0], [], []>} : vector<8x8xbf16>, vector<8x8xbf16>, vector<8x8xf32> -> vector<8x8xf32>
    %cst_54 = arith.constant dense<0xFF800000> : vector<8xf32>
    %166 = vector.multi_reduction <maximumf>, %165, %cst_54 [1] : vector<8x8xf32> to vector<8xf32>
    %167 = vector.shape_cast %166 : vector<8xf32> to vector<8x1xf32>
    %168 = vector.broadcast %167 : vector<8x1xf32> to vector<8x8xf32>
    %169 = arith.subf %165, %168 : vector<8x8xf32>
    %170 = math.exp %169 : vector<8x8xf32>
    %cst_55 = arith.constant dense<0.000000e+00> : vector<8xf32>
    %171 = vector.multi_reduction <add>, %170, %cst_55 [1] : vector<8x8xf32> to vector<8xf32>
    %172 = vector.shape_cast %171 : vector<8xf32> to vector<8x1xf32>
    %173 = tpu.reciprocal %172 {approx = true} : vector<8x1xf32> -> vector<8x1xf32>
    %174 = vector.broadcast %173 : vector<8x1xf32> to vector<8x8xf32>
    %175 = arith.mulf %170, %174 : vector<8x8xf32>
    %176 = arith.truncf %175 : vector<8x8xf32> to vector<8x8xbf16>
    %cst_56 = arith.constant dense<0.000000e+00> : vector<8x8xf32>
    %177 = tpu.matmul %176, %164, %cst_56 {dimension_numbers = #tpu.dot_dimension_numbers<[1], [0], [0], [1], [0, 0, 1, 1], [], []>} : vector<8x8xbf16>, vector<8x8xbf16>, vector<8x8xf32> -> vector<8x8xf32>
    %178 = vector.extract_strided_slice %132 {offsets = [0, 16], sizes = [8, 8], strides = [1, 1]} : vector<8x32xf32> to vector<8x8xf32>
    %179 = arith.truncf %178 : vector<8x8xf32> to vector<8x8xbf16>
    %180 = vector.extract_strided_slice %138 {offsets = [0, 16], sizes = [8, 8], strides = [1, 1]} : vector<8x32xf32> to vector<8x8xf32>
    %181 = arith.truncf %180 : vector<8x8xf32> to vector<8x8xbf16>
    %182 = vector.extract_strided_slice %139 {offsets = [0, 16], sizes = [8, 8], strides = [1, 1]} : vector<8x32xf32> to vector<8x8xf32>
    %183 = arith.truncf %182 : vector<8x8xf32> to vector<8x8xbf16>
    %cst_57 = arith.constant dense<0.000000e+00> : vector<8x8xf32>
    %184 = tpu.matmul %179, %181, %cst_57 {dimension_numbers = #tpu.dot_dimension_numbers<[1], [1], [0], [0], [0, 0, 1, 0], [], []>} : vector<8x8xbf16>, vector<8x8xbf16>, vector<8x8xf32> -> vector<8x8xf32>
    %cst_58 = arith.constant dense<0xFF800000> : vector<8xf32>
    %185 = vector.multi_reduction <maximumf>, %184, %cst_58 [1] : vector<8x8xf32> to vector<8xf32>
    %186 = vector.shape_cast %185 : vector<8xf32> to vector<8x1xf32>
    %187 = vector.broadcast %186 : vector<8x1xf32> to vector<8x8xf32>
    %188 = arith.subf %184, %187 : vector<8x8xf32>
    %189 = math.exp %188 : vector<8x8xf32>
    %cst_59 = arith.constant dense<0.000000e+00> : vector<8xf32>
    %190 = vector.multi_reduction <add>, %189, %cst_59 [1] : vector<8x8xf32> to vector<8xf32>
    %191 = vector.shape_cast %190 : vector<8xf32> to vector<8x1xf32>
    %192 = tpu.reciprocal %191 {approx = true} : vector<8x1xf32> -> vector<8x1xf32>
    %193 = vector.broadcast %192 : vector<8x1xf32> to vector<8x8xf32>
    %194 = arith.mulf %189, %193 : vector<8x8xf32>
    %195 = arith.truncf %194 : vector<8x8xf32> to vector<8x8xbf16>
    %cst_60 = arith.constant dense<0.000000e+00> : vector<8x8xf32>
    %196 = tpu.matmul %195, %183, %cst_60 {dimension_numbers = #tpu.dot_dimension_numbers<[1], [0], [0], [1], [0, 0, 1, 1], [], []>} : vector<8x8xbf16>, vector<8x8xbf16>, vector<8x8xf32> -> vector<8x8xf32>
    %197 = vector.extract_strided_slice %132 {offsets = [0, 24], sizes = [8, 8], strides = [1, 1]} : vector<8x32xf32> to vector<8x8xf32>
    %198 = arith.truncf %197 : vector<8x8xf32> to vector<8x8xbf16>
    %199 = vector.extract_strided_slice %138 {offsets = [0, 24], sizes = [8, 8], strides = [1, 1]} : vector<8x32xf32> to vector<8x8xf32>
    %200 = arith.truncf %199 : vector<8x8xf32> to vector<8x8xbf16>
    %201 = vector.extract_strided_slice %139 {offsets = [0, 24], sizes = [8, 8], strides = [1, 1]} : vector<8x32xf32> to vector<8x8xf32>
    %202 = arith.truncf %201 : vector<8x8xf32> to vector<8x8xbf16>
    %cst_61 = arith.constant dense<0.000000e+00> : vector<8x8xf32>
    %203 = tpu.matmul %198, %200, %cst_61 {dimension_numbers = #tpu.dot_dimension_numbers<[1], [1], [0], [0], [0, 0, 1, 0], [], []>} : vector<8x8xbf16>, vector<8x8xbf16>, vector<8x8xf32> -> vector<8x8xf32>
    %cst_62 = arith.constant dense<0xFF800000> : vector<8xf32>
    %204 = vector.multi_reduction <maximumf>, %203, %cst_62 [1] : vector<8x8xf32> to vector<8xf32>
    %205 = vector.shape_cast %204 : vector<8xf32> to vector<8x1xf32>
    %206 = vector.broadcast %205 : vector<8x1xf32> to vector<8x8xf32>
    %207 = arith.subf %203, %206 : vector<8x8xf32>
    %208 = math.exp %207 : vector<8x8xf32>
    %cst_63 = arith.constant dense<0.000000e+00> : vector<8xf32>
    %209 = vector.multi_reduction <add>, %208, %cst_63 [1] : vector<8x8xf32> to vector<8xf32>
    %210 = vector.shape_cast %209 : vector<8xf32> to vector<8x1xf32>
    %211 = tpu.reciprocal %210 {approx = true} : vector<8x1xf32> -> vector<8x1xf32>
    %212 = vector.broadcast %211 : vector<8x1xf32> to vector<8x8xf32>
    %213 = arith.mulf %208, %212 : vector<8x8xf32>
    %214 = arith.truncf %213 : vector<8x8xf32> to vector<8x8xbf16>
    %cst_64 = arith.constant dense<0.000000e+00> : vector<8x8xf32>
    %215 = tpu.matmul %214, %202, %cst_64 {dimension_numbers = #tpu.dot_dimension_numbers<[1], [0], [0], [1], [0, 0, 1, 1], [], []>} : vector<8x8xbf16>, vector<8x8xbf16>, vector<8x8xf32> -> vector<8x8xf32>
    %216 = tpu.concatenate %158, %177, %196, %215 in 1 : vector<8x8xf32>, vector<8x8xf32>, vector<8x8xf32>, vector<8x8xf32> -> vector<8x32xf32>
    %217 = arith.truncf %216 : vector<8x32xf32> to vector<8x32xbf16>
    %c0_65 = arith.constant 0 : index
    %c0_66 = arith.constant 0 : index
    %218 = vector.load %arg13[%c0_65, %c0_66] : memref<32x32xbf16, #tpu.memory_space<vmem>>, vector<32x32xbf16>
    %cst_67 = arith.constant dense<0.000000e+00> : vector<8x32xf32>
    %219 = tpu.matmul %217, %218, %cst_67 {dimension_numbers = #tpu.dot_dimension_numbers<[1], [0], [0], [1], [0, 0, 1, 1], [], []>} : vector<8x32xbf16>, vector<32x32xbf16>, vector<8x32xf32> -> vector<8x32xf32>
    %c0_68 = arith.constant 0 : index
    %c0_69 = arith.constant 0 : index
    %220 = vector.load %arg14[%c0_68, %c0_69] : memref<1x32xf32, #tpu.memory_space<vmem>>, vector<1x32xf32>
    %221 = vector.broadcast %220 : vector<1x32xf32> to vector<8x32xf32>
    %222 = arith.addf %219, %221 : vector<8x32xf32>
    %223 = arith.addf %126, %222 : vector<8x32xf32>
    %c0_70 = arith.constant 0 : index
    %c0_71 = arith.constant 0 : index
    %224 = vector.load %arg15[%c0_70, %c0_71] : memref<1x32xf32, #tpu.memory_space<vmem>>, vector<1x32xf32>
    %c0_72 = arith.constant 0 : index
    %c0_73 = arith.constant 0 : index
    %225 = vector.load %arg16[%c0_72, %c0_73] : memref<1x32xf32, #tpu.memory_space<vmem>>, vector<1x32xf32>
    %cst_74 = arith.constant dense<0.000000e+00> : vector<8xf32>
    %226 = vector.multi_reduction <add>, %223, %cst_74 [1] : vector<8x32xf32> to vector<8xf32>
    %227 = vector.shape_cast %226 : vector<8xf32> to vector<8x1xf32>
    %cst_75 = arith.constant 3.200000e+01 : f32
    %228 = vector.broadcast %cst_75 : f32 to vector<8x1xf32>
    %229 = arith.divf %227, %228 : vector<8x1xf32>
    %230 = vector.broadcast %229 : vector<8x1xf32> to vector<8x32xf32>
    %231 = arith.subf %223, %230 : vector<8x32xf32>
    %232 = arith.mulf %231, %231 : vector<8x32xf32>
    %cst_76 = arith.constant dense<0.000000e+00> : vector<8xf32>
    %233 = vector.multi_reduction <add>, %232, %cst_76 [1] : vector<8x32xf32> to vector<8xf32>
    %234 = vector.shape_cast %233 : vector<8xf32> to vector<8x1xf32>
    %cst_77 = arith.constant 3.200000e+01 : f32
    %235 = vector.broadcast %cst_77 : f32 to vector<8x1xf32>
    %236 = arith.divf %234, %235 : vector<8x1xf32>
    %cst_78 = arith.constant 9.99999974E-6 : f32
    %237 = vector.broadcast %cst_78 : f32 to vector<8x1xf32>
    %238 = arith.addf %236, %237 : vector<8x1xf32>
    %239 = math.rsqrt %238 : vector<8x1xf32>
    %240 = vector.broadcast %239 : vector<8x1xf32> to vector<8x32xf32>
    %241 = arith.mulf %231, %240 : vector<8x32xf32>
    %242 = vector.broadcast %224 : vector<1x32xf32> to vector<8x32xf32>
    %243 = arith.mulf %241, %242 : vector<8x32xf32>
    %244 = vector.broadcast %225 : vector<1x32xf32> to vector<8x32xf32>
    %245 = arith.addf %243, %244 : vector<8x32xf32>
    %246 = arith.truncf %245 : vector<8x32xf32> to vector<8x32xbf16>
    %c0_79 = arith.constant 0 : index
    %c0_80 = arith.constant 0 : index
    %247 = vector.load %arg17[%c0_79, %c0_80] : memref<32x64xbf16, #tpu.memory_space<vmem>>, vector<32x64xbf16>
    %cst_81 = arith.constant dense<0.000000e+00> : vector<8x64xf32>
    %248 = tpu.matmul %246, %247, %cst_81 {dimension_numbers = #tpu.dot_dimension_numbers<[1], [0], [0], [1], [0, 0, 1, 1], [], []>} : vector<8x32xbf16>, vector<32x64xbf16>, vector<8x64xf32> -> vector<8x64xf32>
    %c0_82 = arith.constant 0 : index
    %c0_83 = arith.constant 0 : index
    %249 = vector.load %arg18[%c0_82, %c0_83] : memref<1x64xf32, #tpu.memory_space<vmem>>, vector<1x64xf32>
    %250 = vector.broadcast %249 : vector<1x64xf32> to vector<8x64xf32>
    %251 = arith.addf %248, %250 : vector<8x64xf32>
    %cst_84 = arith.constant 0.000000e+00 : f32
    %252 = vector.broadcast %cst_84 : f32 to vector<8x64xf32>
    %253 = arith.maximumf %251, %252 : vector<8x64xf32>
    %254 = arith.truncf %253 : vector<8x64xf32> to vector<8x64xbf16>
    %c0_85 = arith.constant 0 : index
    %c0_86 = arith.constant 0 : index
    %255 = vector.load %arg19[%c0_85, %c0_86] : memref<64x32xbf16, #tpu.memory_space<vmem>>, vector<64x32xbf16>
    %cst_87 = arith.constant dense<0.000000e+00> : vector<8x32xf32>
    %256 = tpu.matmul %254, %255, %cst_87 {dimension_numbers = #tpu.dot_dimension_numbers<[1], [0], [0], [1], [0, 0, 1, 1], [], []>} : vector<8x64xbf16>, vector<64x32xbf16>, vector<8x32xf32> -> vector<8x32xf32>
    %c0_88 = arith.constant 0 : index
    %c0_89 = arith.constant 0 : index
    %257 = vector.load %arg20[%c0_88, %c0_89] : memref<1x32xf32, #tpu.memory_space<vmem>>, vector<1x32xf32>
    %258 = vector.broadcast %257 : vector<1x32xf32> to vector<8x32xf32>
    %259 = arith.addf %256, %258 : vector<8x32xf32>
    %260 = arith.addf %245, %259 : vector<8x32xf32>
    %c0_90 = arith.constant 0 : index
    %c0_91 = arith.constant 0 : index
    %261 = vector.load %arg21[%c0_90, %c0_91] : memref<1x32xf32, #tpu.memory_space<vmem>>, vector<1x32xf32>
    %c0_92 = arith.constant 0 : index
    %c0_93 = arith.constant 0 : index
    %262 = vector.load %arg22[%c0_92, %c0_93] : memref<1x32xf32, #tpu.memory_space<vmem>>, vector<1x32xf32>
    %cst_94 = arith.constant dense<0.000000e+00> : vector<8xf32>
    %263 = vector.multi_reduction <add>, %260, %cst_94 [1] : vector<8x32xf32> to vector<8xf32>
    %264 = vector.shape_cast %263 : vector<8xf32> to vector<8x1xf32>
    %cst_95 = arith.constant 3.200000e+01 : f32
    %265 = vector.broadcast %cst_95 : f32 to vector<8x1xf32>
    %266 = arith.divf %264, %265 : vector<8x1xf32>
    %267 = vector.broadcast %266 : vector<8x1xf32> to vector<8x32xf32>
    %268 = arith.subf %260, %267 : vector<8x32xf32>
    %269 = arith.mulf %268, %268 : vector<8x32xf32>
    %cst_96 = arith.constant dense<0.000000e+00> : vector<8xf32>
    %270 = vector.multi_reduction <add>, %269, %cst_96 [1] : vector<8x32xf32> to vector<8xf32>
    %271 = vector.shape_cast %270 : vector<8xf32> to vector<8x1xf32>
    %cst_97 = arith.constant 3.200000e+01 : f32
    %272 = vector.broadcast %cst_97 : f32 to vector<8x1xf32>
    %273 = arith.divf %271, %272 : vector<8x1xf32>
    %cst_98 = arith.constant 9.99999974E-6 : f32
    %274 = vector.broadcast %cst_98 : f32 to vector<8x1xf32>
    %275 = arith.addf %273, %274 : vector<8x1xf32>
    %276 = math.rsqrt %275 : vector<8x1xf32>
    %277 = vector.broadcast %276 : vector<8x1xf32> to vector<8x32xf32>
    %278 = arith.mulf %268, %277 : vector<8x32xf32>
    %279 = vector.broadcast %261 : vector<1x32xf32> to vector<8x32xf32>
    %280 = arith.mulf %278, %279 : vector<8x32xf32>
    %281 = vector.broadcast %262 : vector<1x32xf32> to vector<8x32xf32>
    %282 = arith.addf %280, %281 : vector<8x32xf32>
    %283 = arith.truncf %282 : vector<8x32xf32> to vector<8x32xbf16>
    %c0_99 = arith.constant 0 : index
    %c0_100 = arith.constant 0 : index
    %284 = vector.load %arg23[%c0_99, %c0_100] : memref<8x32xbf16, #tpu.memory_space<vmem>>, vector<8x32xbf16>
    tpu.vector_store %arg23[%c0_99, %c0_100], %283 {strides = array<i32>} : memref<8x32xbf16, #tpu.memory_space<vmem>>, vector<8x32xbf16>,
    return
  }
  func.func @transform_0(%arg0: i32) -> (i32, i32) {
    %c0_i32 = arith.constant 0 : i32
    %c0_i32_0 = arith.constant 0 : i32
    return %arg0, %c0_i32 : i32, i32
  }
  func.func @transform_1(%arg0: i32) -> (i32, i32) {
    %c0_i32 = arith.constant 0 : i32
    %c0_i32_0 = arith.constant 0 : i32
    return %arg0, %c0_i32 : i32, i32
  }
  func.func @transform_2(%arg0: i32) -> (i32, i32) {
    %c0_i32 = arith.constant 0 : i32
    %c0_i32_0 = arith.constant 0 : i32
    %c0_i32_1 = arith.constant 0 : i32
    return %c0_i32, %c0_i32_0 : i32, i32
  }
  func.func @transform_3(%arg0: i32) -> (i32, i32) {
    %c0_i32 = arith.constant 0 : i32
    %c0_i32_0 = arith.constant 0 : i32
    %c0_i32_1 = arith.constant 0 : i32
    return %c0_i32, %c0_i32_0 : i32, i32
  }
  func.func @transform_4(%arg0: i32) -> (i32, i32) {
    %c0_i32 = arith.constant 0 : i32
    %c0_i32_0 = arith.constant 0 : i32
    %c0_i32_1 = arith.constant 0 : i32
    return %c0_i32, %c0_i32_0 : i32, i32
  }
  func.func @transform_5(%arg0: i32) -> (i32, i32) {
    %c0_i32 = arith.constant 0 : i32
    %c0_i32_0 = arith.constant 0 : i32
    %c0_i32_1 = arith.constant 0 : i32
    return %c0_i32, %c0_i32_0 : i32, i32
  }
  func.func @transform_6(%arg0: i32) -> (i32, i32) {
    %c0_i32 = arith.constant 0 : i32
    %c0_i32_0 = arith.constant 0 : i32
    %c0_i32_1 = arith.constant 0 : i32
    return %c0_i32, %c0_i32_0 : i32, i32
  }
  func.func @transform_7(%arg0: i32) -> (i32, i32) {
    %c0_i32 = arith.constant 0 : i32
    %c0_i32_0 = arith.constant 0 : i32
    %c0_i32_1 = arith.constant 0 : i32
    return %c0_i32, %c0_i32_0 : i32, i32
  }
  func.func @transform_8(%arg0: i32) -> (i32, i32) {
    %c0_i32 = arith.constant 0 : i32
    %c0_i32_0 = arith.constant 0 : i32
    %c0_i32_1 = arith.constant 0 : i32
    return %c0_i32, %c0_i32_0 : i32, i32
  }
  func.func @transform_9(%arg0: i32) -> (i32, i32) {
    %c0_i32 = arith.constant 0 : i32
    %c0_i32_0 = arith.constant 0 : i32
    %c0_i32_1 = arith.constant 0 : i32
    return %c0_i32, %c0_i32_0 : i32, i32
  }
  func.func @transform_10(%arg0: i32) -> (i32, i32) {
    %c0_i32 = arith.constant 0 : i32
    %c0_i32_0 = arith.constant 0 : i32
    %c0_i32_1 = arith.constant 0 : i32
    return %c0_i32, %c0_i32_0 : i32, i32
  }
  func.func @transform_11(%arg0: i32) -> (i32, i32) {
    %c0_i32 = arith.constant 0 : i32
    %c0_i32_0 = arith.constant 0 : i32
    %c0_i32_1 = arith.constant 0 : i32
    return %c0_i32, %c0_i32_0 : i32, i32
  }
  func.func @transform_12(%arg0: i32) -> (i32, i32) {
    %c0_i32 = arith.constant 0 : i32
    %c0_i32_0 = arith.constant 0 : i32
    %c0_i32_1 = arith.constant 0 : i32
    return %c0_i32, %c0_i32_0 : i32, i32
  }
  func.func @transform_13(%arg0: i32) -> (i32, i32) {
    %c0_i32 = arith.constant 0 : i32
    %c0_i32_0 = arith.constant 0 : i32
    %c0_i32_1 = arith.constant 0 : i32
    return %c0_i32, %c0_i32_0 : i32, i32
  }
  func.func @transform_14(%arg0: i32) -> (i32, i32) {
    %c0_i32 = arith.constant 0 : i32
    %c0_i32_0 = arith.constant 0 : i32
    %c0_i32_1 = arith.constant 0 : i32
    return %c0_i32, %c0_i32_0 : i32, i32
  }
  func.func @transform_15(%arg0: i32) -> (i32, i32) {
    %c0_i32 = arith.constant 0 : i32
    %c0_i32_0 = arith.constant 0 : i32
    %c0_i32_1 = arith.constant 0 : i32
    return %c0_i32, %c0_i32_0 : i32, i32
  }
  func.func @transform_16(%arg0: i32) -> (i32, i32) {
    %c0_i32 = arith.constant 0 : i32
    %c0_i32_0 = arith.constant 0 : i32
    %c0_i32_1 = arith.constant 0 : i32
    return %c0_i32, %c0_i32_0 : i32, i32
  }
  func.func @transform_17(%arg0: i32) -> (i32, i32) {
    %c0_i32 = arith.constant 0 : i32
    %c0_i32_0 = arith.constant 0 : i32
    %c0_i32_1 = arith.constant 0 : i32
    return %c0_i32, %c0_i32_0 : i32, i32
  }
  func.func @transform_18(%arg0: i32) -> (i32, i32) {
    %c0_i32 = arith.constant 0 : i32
    %c0_i32_0 = arith.constant 0 : i32
    %c0_i32_1 = arith.constant 0 : i32
    return %c0_i32, %c0_i32_0 : i32, i32
  }
  func.func @transform_19(%arg0: i32) -> (i32, i32) {
    %c0_i32 = arith.constant 0 : i32
    %c0_i32_0 = arith.constant 0 : i32
    %c0_i32_1 = arith.constant 0 : i32
    return %c0_i32, %c0_i32_0 : i32, i32
  }
  func.func @transform_20(%arg0: i32) -> (i32, i32) {
    %c0_i32 = arith.constant 0 : i32
    %c0_i32_0 = arith.constant 0 : i32
    %c0_i32_1 = arith.constant 0 : i32
    return %c0_i32, %c0_i32_0 : i32, i32
  }
  func.func @transform_21(%arg0: i32) -> (i32, i32) {
    %c0_i32 = arith.constant 0 : i32
    %c0_i32_0 = arith.constant 0 : i32
    %c0_i32_1 = arith.constant 0 : i32
    return %c0_i32, %c0_i32_0 : i32, i32
  }
  func.func @transform_22(%arg0: i32) -> (i32, i32) {
    %c0_i32 = arith.constant 0 : i32
    %c0_i32_0 = arith.constant 0 : i32
    return %arg0, %c0_i32 : i32, i32
  }
}

module attributes {stable_mosaic.version = 11 : i64} {
  func.func @_decoder_layer_kernel(%arg0: i32, %arg1: memref<8x32xbf16, #tpu.memory_space<vmem>>, %arg2: memref<8x32xbf16, #tpu.memory_space<vmem>>, %arg3: memref<32x96xbf16, #tpu.memory_space<vmem>>, %arg4: memref<1x96xf32, #tpu.memory_space<vmem>>, %arg5: memref<32x32xbf16, #tpu.memory_space<vmem>>, %arg6: memref<1x32xf32, #tpu.memory_space<vmem>>, %arg7: memref<1x32xf32, #tpu.memory_space<vmem>>, %arg8: memref<1x32xf32, #tpu.memory_space<vmem>>, %arg9: memref<32x32xbf16, #tpu.memory_space<vmem>>, %arg10: memref<1x32xf32, #tpu.memory_space<vmem>>, %arg11: memref<32x64xbf16, #tpu.memory_space<vmem>>, %arg12: memref<1x64xf32, #tpu.memory_space<vmem>>, %arg13: memref<32x32xbf16, #tpu.memory_space<vmem>>, %arg14: memref<1x32xf32, #tpu.memory_space<vmem>>, %arg15: memref<1x32xf32, #tpu.memory_space<vmem>>, %arg16: memref<1x32xf32, #tpu.memory_space<vmem>>, %arg17: memref<32x64xbf16, #tpu.memory_space<vmem>>, %arg18: memref<1x64xf32, #tpu.memory_space<vmem>>, %arg19: memref<64x32xbf16, #tpu.memory_space<vmem>>, %arg20: memref<1x32xf32, #tpu.memory_space<vmem>>, %arg21: memref<1x32xf32, #tpu.memory_space<vmem>>, %arg22: memref<1x32xf32, #tpu.memory_space<vmem>>, %arg23: memref<8x32xbf16, #tpu.memory_space<vmem>>) attributes {dimension_semantics = [#tpu.dimension_semantics<parallel>], iteration_bounds = array<i64: 2>, scalar_prefetch = 0 : i64, scratch_operands = 0 : i64, tpu.core_type = #tpu.core_type<tc>, window_params = [{transform_indices = @transform_0, window_bounds = array<i64: 8, 32>}, {transform_indices = @transform_1, window_bounds = array<i64: 8, 32>}, {pipeline_mode = #tpu.pipeline_mode<synchronous>, transform_indices = @transform_2, window_bounds = array<i64: 32, 96>}, {pipeline_mode = #tpu.pipeline_mode<synchronous>, transform_indices = @transform_3, window_bounds = array<i64: 1, 96>}, {pipeline_mode = #tpu.pipeline_mode<synchronous>, transform_indices = @transform_4, window_bounds = array<i64: 32, 32>}, {pipeline_mode = #tpu.pipeline_mode<synchronous>, transform_indices = @transform_5, window_bounds = array<i64: 1, 32>}, {pipeline_mode = #tpu.pipeline_mode<synchronous>, transform_indices = @transform_6, window_bounds = array<i64: 1, 32>}, {pipeline_mode = #tpu.pipeline_mode<synchronous>, transform_indices = @transform_7, window_bounds = array<i64: 1, 32>}, {pipeline_mode = #tpu.pipeline_mode<synchronous>, transform_indices = @transform_8, window_bounds = array<i64: 32, 32>}, {pipeline_mode = #tpu.pipeline_mode<synchronous>, transform_indices = @transform_9, window_bounds = array<i64: 1, 32>}, {pipeline_mode = #tpu.pipeline_mode<synchronous>, transform_indices = @transform_10, window_bounds = array<i64: 32, 64>}, {pipeline_mode = #tpu.pipeline_mode<synchronous>, transform_indices = @transform_11, window_bounds = array<i64: 1, 64>}, {pipeline_mode = #tpu.pipeline_mode<synchronous>, transform_indices = @transform_12, window_bounds = array<i64: 32, 32>}, {pipeline_mode = #tpu.pipeline_mode<synchronous>, transform_indices = @transform_13, window_bounds = array<i64: 1, 32>}, {pipeline_mode = #tpu.pipeline_mode<synchronous>, transform_indices = @transform_14, window_bounds = array<i64: 1, 32>}, {pipeline_mode = #tpu.pipeline_mode<synchronous>, transform_indices = @transform_15, window_bounds = array<i64: 1, 32>}, {pipeline_mode = #tpu.pipeline_mode<synchronous>, transform_indices = @transform_16, window_bounds = array<i64: 32, 64>}, {pipeline_mode = #tpu.pipeline_mode<synchronous>, transform_indices = @transform_17, window_bounds = array<i64: 1, 64>}, {pipeline_mode = #tpu.pipeline_mode<synchronous>, transform_indices = @transform_18, window_bounds = array<i64: 64, 32>}, {pipeline_mode = #tpu.pipeline_mode<synchronous>, transform_indices = @transform_19, window_bounds = array<i64: 1, 32>}, {pipeline_mode = #tpu.pipeline_mode<synchronous>, transform_indices = @transform_20, window_bounds = array<i64: 1, 32>}, {pipeline_mode = #tpu.pipeline_mode<synchronous>, transform_indices = @transform_21, window_bounds = array<i64: 1, 32>}, {transform_indices = @transform_22, window_bounds = array<i64: 8, 32>}]} {
    %c0 = arith.constant 0 : index
    %c0_0 = arith.constant 0 : index
    %0 = vector.load %arg1[%c0, %c0_0] : memref<8x32xbf16, #tpu.memory_space<vmem>>, vector<8x32xbf16>
    %1 = arith.extf %0 : vector<8x32xbf16> to vector<8x32xf32>
    %c0_1 = arith.constant 0 : index
    %c0_2 = arith.constant 0 : index
    %2 = vector.load %arg2[%c0_1, %c0_2] : memref<8x32xbf16, #tpu.memory_space<vmem>>, vector<8x32xbf16>
    %c0_3 = arith.constant 0 : index
    %c0_4 = arith.constant 0 : index
    %3 = vector.load %arg3[%c0_3, %c0_4] : memref<32x96xbf16, #tpu.memory_space<vmem>>, vector<32x96xbf16>
    %cst = arith.constant dense<0.000000e+00> : vector<8x96xf32>
    %4 = tpu.matmul %0, %3, %cst {dimension_numbers = #tpu.dot_dimension_numbers<[1], [0], [0], [1], [0, 0, 1, 1], [], []>} : vector<8x32xbf16>, vector<32x96xbf16>, vector<8x96xf32> -> vector<8x96xf32>
    %c0_5 = arith.constant 0 : index
    %c0_6 = arith.constant 0 : index
    %5 = vector.load %arg4[%c0_5, %c0_6] : memref<1x96xf32, #tpu.memory_space<vmem>>, vector<1x96xf32>
    %6 = vector.broadcast %5 : vector<1x96xf32> to vector<8x96xf32>
    %7 = arith.addf %4, %6 : vector<8x96xf32>
    %8 = tpu.iota {dimensions = array<i32: 0>} : vector<8x8xi32>
    %9 = tpu.iota {dimensions = array<i32: 1>} : vector<8x8xi32>
    %10 = arith.cmpi sle, %9, %8 : vector<8x8xi32>
    %cst_7 = arith.constant 0.000000e+00 : f32
    %cst_8 = arith.constant 0xFF800000 : f32
    %11 = vector.broadcast %cst_7 : f32 to vector<8x8xf32>
    %12 = vector.broadcast %cst_8 : f32 to vector<8x8xf32>
    %13 = arith.select %10, %11, %12 : vector<8x8xi1>, vector<8x8xf32>
    %14 = vector.extract_strided_slice %7 {offsets = [0, 0], sizes = [8, 32], strides = [1, 1]} : vector<8x96xf32> to vector<8x32xf32>
    %15 = vector.extract_strided_slice %7 {offsets = [0, 32], sizes = [8, 32], strides = [1, 1]} : vector<8x96xf32> to vector<8x32xf32>
    %16 = vector.extract_strided_slice %7 {offsets = [0, 64], sizes = [8, 32], strides = [1, 1]} : vector<8x96xf32> to vector<8x32xf32>
    %17 = vector.extract_strided_slice %14 {offsets = [0, 0], sizes = [8, 8], strides = [1, 1]} : vector<8x32xf32> to vector<8x8xf32>
    %18 = arith.truncf %17 : vector<8x8xf32> to vector<8x8xbf16>
    %19 = vector.extract_strided_slice %15 {offsets = [0, 0], sizes = [8, 8], strides = [1, 1]} : vector<8x32xf32> to vector<8x8xf32>
    %20 = arith.truncf %19 : vector<8x8xf32> to vector<8x8xbf16>
    %21 = vector.extract_strided_slice %16 {offsets = [0, 0], sizes = [8, 8], strides = [1, 1]} : vector<8x32xf32> to vector<8x8xf32>
    %22 = arith.truncf %21 : vector<8x8xf32> to vector<8x8xbf16>
    %cst_9 = arith.constant dense<0.000000e+00> : vector<8x8xf32>
    %23 = tpu.matmul %18, %20, %cst_9 {dimension_numbers = #tpu.dot_dimension_numbers<[1], [1], [0], [0], [0, 0, 1, 0], [], []>} : vector<8x8xbf16>, vector<8x8xbf16>, vector<8x8xf32> -> vector<8x8xf32>
    %24 = arith.addf %23, %13 : vector<8x8xf32>
    %cst_10 = arith.constant dense<0xFF800000> : vector<8xf32>
    %25 = vector.multi_reduction <maximumf>, %24, %cst_10 [1] : vector<8x8xf32> to vector<8xf32>
    %26 = vector.shape_cast %25 : vector<8xf32> to vector<8x1xf32>
    %27 = vector.broadcast %26 : vector<8x1xf32> to vector<8x8xf32>
    %28 = arith.subf %24, %27 : vector<8x8xf32>
    %29 = math.exp %28 : vector<8x8xf32>
    %cst_11 = arith.constant dense<0.000000e+00> : vector<8xf32>
    %30 = vector.multi_reduction <add>, %29, %cst_11 [1] : vector<8x8xf32> to vector<8xf32>
    %31 = vector.shape_cast %30 : vector<8xf32> to vector<8x1xf32>
    %32 = tpu.reciprocal %31 {approx = true} : vector<8x1xf32> -> vector<8x1xf32>
    %33 = vector.broadcast %32 : vector<8x1xf32> to vector<8x8xf32>
    %34 = arith.mulf %29, %33 : vector<8x8xf32>
    %35 = arith.truncf %34 : vector<8x8xf32> to vector<8x8xbf16>
    %cst_12 = arith.constant dense<0.000000e+00> : vector<8x8xf32>
    %36 = tpu.matmul %35, %22, %cst_12 {dimension_numbers = #tpu.dot_dimension_numbers<[1], [0], [0], [1], [0, 0, 1, 1], [], []>} : vector<8x8xbf16>, vector<8x8xbf16>, vector<8x8xf32> -> vector<8x8xf32>
    %37 = vector.extract_strided_slice %14 {offsets = [0, 8], sizes = [8, 8], strides = [1, 1]} : vector<8x32xf32> to vector<8x8xf32>
    %38 = arith.truncf %37 : vector<8x8xf32> to vector<8x8xbf16>
    %39 = vector.extract_strided_slice %15 {offsets = [0, 8], sizes = [8, 8], strides = [1, 1]} : vector<8x32xf32> to vector<8x8xf32>
    %40 = arith.truncf %39 : vector<8x8xf32> to vector<8x8xbf16>
    %41 = vector.extract_strided_slice %16 {offsets = [0, 8], sizes = [8, 8], strides = [1, 1]} : vector<8x32xf32> to vector<8x8xf32>
    %42 = arith.truncf %41 : vector<8x8xf32> to vector<8x8xbf16>
    %cst_13 = arith.constant dense<0.000000e+00> : vector<8x8xf32>
    %43 = tpu.matmul %38, %40, %cst_13 {dimension_numbers = #tpu.dot_dimension_numbers<[1], [1], [0], [0], [0, 0, 1, 0], [], []>} : vector<8x8xbf16>, vector<8x8xbf16>, vector<8x8xf32> -> vector<8x8xf32>
    %44 = arith.addf %43, %13 : vector<8x8xf32>
    %cst_14 = arith.constant dense<0xFF800000> : vector<8xf32>
    %45 = vector.multi_reduction <maximumf>, %44, %cst_14 [1] : vector<8x8xf32> to vector<8xf32>
    %46 = vector.shape_cast %45 : vector<8xf32> to vector<8x1xf32>
    %47 = vector.broadcast %46 : vector<8x1xf32> to vector<8x8xf32>
    %48 = arith.subf %44, %47 : vector<8x8xf32>
    %49 = math.exp %48 : vector<8x8xf32>
    %cst_15 = arith.constant dense<0.000000e+00> : vector<8xf32>
    %50 = vector.multi_reduction <add>, %49, %cst_15 [1] : vector<8x8xf32> to vector<8xf32>
    %51 = vector.shape_cast %50 : vector<8xf32> to vector<8x1xf32>
    %52 = tpu.reciprocal %51 {approx = true} : vector<8x1xf32> -> vector<8x1xf32>
    %53 = vector.broadcast %52 : vector<8x1xf32> to vector<8x8xf32>
    %54 = arith.mulf %49, %53 : vector<8x8xf32>
    %55 = arith.truncf %54 : vector<8x8xf32> to vector<8x8xbf16>
    %cst_16 = arith.constant dense<0.000000e+00> : vector<8x8xf32>
    %56 = tpu.matmul %55, %42, %cst_16 {dimension_numbers = #tpu.dot_dimension_numbers<[1], [0], [0], [1], [0, 0, 1, 1], [], []>} : vector<8x8xbf16>, vector<8x8xbf16>, vector<8x8xf32> -> vector<8x8xf32>
    %57 = vector.extract_strided_slice %14 {offsets = [0, 16], sizes = [8, 8], strides = [1, 1]} : vector<8x32xf32> to vector<8x8xf32>
    %58 = arith.truncf %57 : vector<8x8xf32> to vector<8x8xbf16>
    %59 = vector.extract_strided_slice %15 {offsets = [0, 16], sizes = [8, 8], strides = [1, 1]} : vector<8x32xf32> to vector<8x8xf32>
    %60 = arith.truncf %59 : vector<8x8xf32> to vector<8x8xbf16>
    %61 = vector.extract_strided_slice %16 {offsets = [0, 16], sizes = [8, 8], strides = [1, 1]} : vector<8x32xf32> to vector<8x8xf32>
    %62 = arith.truncf %61 : vector<8x8xf32> to vector<8x8xbf16>
    %cst_17 = arith.constant dense<0.000000e+00> : vector<8x8xf32>
    %63 = tpu.matmul %58, %60, %cst_17 {dimension_numbers = #tpu.dot_dimension_numbers<[1], [1], [0], [0], [0, 0, 1, 0], [], []>} : vector<8x8xbf16>, vector<8x8xbf16>, vector<8x8xf32> -> vector<8x8xf32>
    %64 = arith.addf %63, %13 : vector<8x8xf32>
    %cst_18 = arith.constant dense<0xFF800000> : vector<8xf32>
    %65 = vector.multi_reduction <maximumf>, %64, %cst_18 [1] : vector<8x8xf32> to vector<8xf32>
    %66 = vector.shape_cast %65 : vector<8xf32> to vector<8x1xf32>
    %67 = vector.broadcast %66 : vector<8x1xf32> to vector<8x8xf32>
    %68 = arith.subf %64, %67 : vector<8x8xf32>
    %69 = math.exp %68 : vector<8x8xf32>
    %cst_19 = arith.constant dense<0.000000e+00> : vector<8xf32>
    %70 = vector.multi_reduction <add>, %69, %cst_19 [1] : vector<8x8xf32> to vector<8xf32>
    %71 = vector.shape_cast %70 : vector<8xf32> to vector<8x1xf32>
    %72 = tpu.reciprocal %71 {approx = true} : vector<8x1xf32> -> vector<8x1xf32>
    %73 = vector.broadcast %72 : vector<8x1xf32> to vector<8x8xf32>
    %74 = arith.mulf %69, %73 : vector<8x8xf32>
    %75 = arith.truncf %74 : vector<8x8xf32> to vector<8x8xbf16>
    %cst_20 = arith.constant dense<0.000000e+00> : vector<8x8xf32>
    %76 = tpu.matmul %75, %62, %cst_20 {dimension_numbers = #tpu.dot_dimension_numbers<[1], [0], [0], [1], [0, 0, 1, 1], [], []>} : vector<8x8xbf16>, vector<8x8xbf16>, vector<8x8xf32> -> vector<8x8xf32>
    %77 = vector.extract_strided_slice %14 {offsets = [0, 24], sizes = [8, 8], strides = [1, 1]} : vector<8x32xf32> to vector<8x8xf32>
    %78 = arith.truncf %77 : vector<8x8xf32> to vector<8x8xbf16>
    %79 = vector.extract_strided_slice %15 {offsets = [0, 24], sizes = [8, 8], strides = [1, 1]} : vector<8x32xf32> to vector<8x8xf32>
    %80 = arith.truncf %79 : vector<8x8xf32> to vector<8x8xbf16>
    %81 = vector.extract_strided_slice %16 {offsets = [0, 24], sizes = [8, 8], strides = [1, 1]} : vector<8x32xf32> to vector<8x8xf32>
    %82 = arith.truncf %81 : vector<8x8xf32> to vector<8x8xbf16>
    %cst_21 = arith.constant dense<0.000000e+00> : vector<8x8xf32>
    %83 = tpu.matmul %78, %80, %cst_21 {dimension_numbers = #tpu.dot_dimension_numbers<[1], [1], [0], [0], [0, 0, 1, 0], [], []>} : vector<8x8xbf16>, vector<8x8xbf16>, vector<8x8xf32> -> vector<8x8xf32>
    %84 = arith.addf %83, %13 : vector<8x8xf32>
    %cst_22 = arith.constant dense<0xFF800000> : vector<8xf32>
    %85 = vector.multi_reduction <maximumf>, %84, %cst_22 [1] : vector<8x8xf32> to vector<8xf32>
    %86 = vector.shape_cast %85 : vector<8xf32> to vector<8x1xf32>
    %87 = vector.broadcast %86 : vector<8x1xf32> to vector<8x8xf32>
    %88 = arith.subf %84, %87 : vector<8x8xf32>
    %89 = math.exp %88 : vector<8x8xf32>
    %cst_23 = arith.constant dense<0.000000e+00> : vector<8xf32>
    %90 = vector.multi_reduction <add>, %89, %cst_23 [1] : vector<8x8xf32> to vector<8xf32>
    %91 = vector.shape_cast %90 : vector<8xf32> to vector<8x1xf32>
    %92 = tpu.reciprocal %91 {approx = true} : vector<8x1xf32> -> vector<8x1xf32>
    %93 = vector.broadcast %92 : vector<8x1xf32> to vector<8x8xf32>
    %94 = arith.mulf %89, %93 : vector<8x8xf32>
    %95 = arith.truncf %94 : vector<8x8xf32> to vector<8x8xbf16>
    %cst_24 = arith.constant dense<0.000000e+00> : vector<8x8xf32>
    %96 = tpu.matmul %95, %82, %cst_24 {dimension_numbers = #tpu.dot_dimension_numbers<[1], [0], [0], [1], [0, 0, 1, 1], [], []>} : vector<8x8xbf16>, vector<8x8xbf16>, vector<8x8xf32> -> vector<8x8xf32>
    %97 = tpu.concatenate %36, %56, %76, %96 in 1 : vector<8x8xf32>, vector<8x8xf32>, vector<8x8xf32>, vector<8x8xf32> -> vector<8x32xf32>
    %98 = arith.truncf %97 : vector<8x32xf32> to vector<8x32xbf16>
    %c0_25 = arith.constant 0 : index
    %c0_26 = arith.constant 0 : index
    %99 = vector.load %arg5[%c0_25, %c0_26] : memref<32x32xbf16, #tpu.memory_space<vmem>>, vector<32x32xbf16>
    %cst_27 = arith.constant dense<0.000000e+00> : vector<8x32xf32>
    %100 = tpu.matmul %98, %99, %cst_27 {dimension_numbers = #tpu.dot_dimension_numbers<[1], [0], [0], [1], [0, 0, 1, 1], [], []>} : vector<8x32xbf16>, vector<32x32xbf16>, vector<8x32xf32> -> vector<8x32xf32>
    %c0_28 = arith.constant 0 : index
    %c0_29 = arith.constant 0 : index
    %101 = vector.load %arg6[%c0_28, %c0_29] : memref<1x32xf32, #tpu.memory_space<vmem>>, vector<1x32xf32>
    %102 = vector.broadcast %101 : vector<1x32xf32> to vector<8x32xf32>
    %103 = arith.addf %100, %102 : vector<8x32xf32>
    %104 = arith.addf %1, %103 : vector<8x32xf32>
    %c0_30 = arith.constant 0 : index
    %c0_31 = arith.constant 0 : index
    %105 = vector.load %arg7[%c0_30, %c0_31] : memref<1x32xf32, #tpu.memory_space<vmem>>, vector<1x32xf32>
    %c0_32 = arith.constant 0 : index
    %c0_33 = arith.constant 0 : index
    %106 = vector.load %arg8[%c0_32, %c0_33] : memref<1x32xf32, #tpu.memory_space<vmem>>, vector<1x32xf32>
    %cst_34 = arith.constant dense<0.000000e+00> : vector<8xf32>
    %107 = vector.multi_reduction <add>, %104, %cst_34 [1] : vector<8x32xf32> to vector<8xf32>
    %108 = vector.shape_cast %107 : vector<8xf32> to vector<8x1xf32>
    %cst_35 = arith.constant 3.200000e+01 : f32
    %109 = vector.broadcast %cst_35 : f32 to vector<8x1xf32>
    %110 = arith.divf %108, %109 : vector<8x1xf32>
    %111 = vector.broadcast %110 : vector<8x1xf32> to vector<8x32xf32>
    %112 = arith.subf %104, %111 : vector<8x32xf32>
    %113 = arith.mulf %112, %112 : vector<8x32xf32>
    %cst_36 = arith.constant dense<0.000000e+00> : vector<8xf32>
    %114 = vector.multi_reduction <add>, %113, %cst_36 [1] : vector<8x32xf32> to vector<8xf32>
    %115 = vector.shape_cast %114 : vector<8xf32> to vector<8x1xf32>
    %cst_37 = arith.constant 3.200000e+01 : f32
    %116 = vector.broadcast %cst_37 : f32 to vector<8x1xf32>
    %117 = arith.divf %115, %116 : vector<8x1xf32>
    %cst_38 = arith.constant 9.99999974E-6 : f32
    %118 = vector.broadcast %cst_38 : f32 to vector<8x1xf32>
    %119 = arith.addf %117, %118 : vector<8x1xf32>
    %120 = math.rsqrt %119 : vector<8x1xf32>
    %121 = vector.broadcast %120 : vector<8x1xf32> to vector<8x32xf32>
    %122 = arith.mulf %112, %121 : vector<8x32xf32>
    %123 = vector.broadcast %105 : vector<1x32xf32> to vector<8x32xf32>
    %124 = arith.mulf %122, %123 : vector<8x32xf32>
    %125 = vector.broadcast %106 : vector<1x32xf32> to vector<8x32xf32>
    %126 = arith.addf %124, %125 : vector<8x32xf32>
    %127 = arith.truncf %126 : vector<8x32xf32> to vector<8x32xbf16>
    %c0_39 = arith.constant 0 : index
    %c0_40 = arith.constant 0 : index
    %128 = vector.load %arg9[%c0_39, %c0_40] : memref<32x32xbf16, #tpu.memory_space<vmem>>, vector<32x32xbf16>
    %cst_41 = arith.constant dense<0.000000e+00> : vector<8x32xf32>
    %129 = tpu.matmul %127, %128, %cst_41 {dimension_numbers = #tpu.dot_dimension_numbers<[1], [0], [0], [1], [0, 0, 1, 1], [], []>} : vector<8x32xbf16>, vector<32x32xbf16>, vector<8x32xf32> -> vector<8x32xf32>
    %c0_42 = arith.constant 0 : index
    %c0_43 = arith.constant 0 : index
    %130 = vector.load %arg10[%c0_42, %c0_43] : memref<1x32xf32, #tpu.memory_space<vmem>>, vector<1x32xf32>
    %131 = vector.broadcast %130 : vector<1x32xf32> to vector<8x32xf32>
    %132 = arith.addf %129, %131 : vector<8x32xf32>
    %c0_44 = arith.constant 0 : index
    %c0_45 = arith.constant 0 : index
    %133 = vector.load %arg11[%c0_44, %c0_45] : memref<32x64xbf16, #tpu.memory_space<vmem>>, vector<32x64xbf16>
    %cst_46 = arith.constant dense<0.000000e+00> : vector<8x64xf32>
    %134 = tpu.matmul %2, %133, %cst_46 {dimension_numbers = #tpu.dot_dimension_numbers<[1], [0], [0], [1], [0, 0, 1, 1], [], []>} : vector<8x32xbf16>, vector<32x64xbf16>, vector<8x64xf32> -> vector<8x64xf32>
    %c0_47 = arith.constant 0 : index
    %c0_48 = arith.constant 0 : index
    %135 = vector.load %arg12[%c0_47, %c0_48] : memref<1x64xf32, #tpu.memory_space<vmem>>, vector<1x64xf32>
    %136 = vector.broadcast %135 : vector<1x64xf32> to vector<8x64xf32>
    %137 = arith.addf %134, %136 : vector<8x64xf32>
    %138 = vector.extract_strided_slice %137 {offsets = [0, 0], sizes = [8, 32], strides = [1, 1]} : vector<8x64xf32> to vector<8x32xf32>
    %139 = vector.extract_strided_slice %137 {offsets = [0, 32], sizes = [8, 32], strides = [1, 1]} : vector<8x64xf32> to vector<8x32xf32>
    %140 = vector.extract_strided_slice %132 {offsets = [0, 0], sizes = [8, 8], strides = [1, 1]} : vector<8x32xf32> to vector<8x8xf32>
    %141 = arith.truncf %140 : vector<8x8xf32> to vector<8x8xbf16>
    %142 = vector.extract_strided_slice %138 {offsets = [0, 0], sizes = [8, 8], strides = [1, 1]} : vector<8x32xf32> to vector<8x8xf32>
    %143 = arith.truncf %142 : vector<8x8xf32> to vector<8x8xbf16>
    %144 = vector.extract_strided_slice %139 {offsets = [0, 0], sizes = [8, 8], strides = [1, 1]} : vector<8x32xf32> to vector<8x8xf32>
    %145 = arith.truncf %144 : vector<8x8xf32> to vector<8x8xbf16>
    %cst_49 = arith.constant dense<0.000000e+00> : vector<8x8xf32>
    %146 = tpu.matmul %141, %143, %cst_49 {dimension_numbers = #tpu.dot_dimension_numbers<[1], [1], [0], [0], [0, 0, 1, 0], [], []>} : vector<8x8xbf16>, vector<8x8xbf16>, vector<8x8xf32> -> vector<8x8xf32>
    %cst_50 = arith.constant dense<0xFF800000> : vector<8xf32>
    %147 = vector.multi_reduction <maximumf>, %146, %cst_50 [1] : vector<8x8xf32> to vector<8xf32>
    %148 = vector.shape_cast %147 : vector<8xf32> to vector<8x1xf32>
    %149 = vector.broadcast %148 : vector<8x1xf32> to vector<8x8xf32>
    %150 = arith.subf %146, %149 : vector<8x8xf32>
    %151 = math.exp %150 : vector<8x8xf32>
    %cst_51 = arith.constant dense<0.000000e+00> : vector<8xf32>
    %152 = vector.multi_reduction <add>, %151, %cst_51 [1] : vector<8x8xf32> to vector<8xf32>
    %153 = vector.shape_cast %152 : vector<8xf32> to vector<8x1xf32>
    %154 = tpu.reciprocal %153 {approx = true} : vector<8x1xf32> -> vector<8x1xf32>
    %155 = vector.broadcast %154 : vector<8x1xf32> to vector<8x8xf32>
    %156 = arith.mulf %151, %155 : vector<8x8xf32>
    %157 = arith.truncf %156 : vector<8x8xf32> to vector<8x8xbf16>
    %cst_52 = arith.constant dense<0.000000e+00> : vector<8x8xf32>
    %158 = tpu.matmul %157, %145, %cst_52 {dimension_numbers = #tpu.dot_dimension_numbers<[1], [0], [0], [1], [0, 0, 1, 1], [], []>} : vector<8x8xbf16>, vector<8x8xbf16>, vector<8x8xf32> -> vector<8x8xf32>
    %159 = vector.extract_strided_slice %132 {offsets = [0, 8], sizes = [8, 8], strides = [1, 1]} : vector<8x32xf32> to vector<8x8xf32>
    %160 = arith.truncf %159 : vector<8x8xf32> to vector<8x8xbf16>
    %161 = vector.extract_strided_slice %138 {offsets = [0, 8], sizes = [8, 8], strides = [1, 1]} : vector<8x32xf32> to vector<8x8xf32>
    %162 = arith.truncf %161 : vector<8x8xf32> to vector<8x8xbf16>
    %163 = vector.extract_strided_slice %139 {offsets = [0, 8], sizes = [8, 8], strides = [1, 1]} : vector<8x32xf32> to vector<8x8xf32>
    %164 = arith.truncf %163 : vector<8x8xf32> to vector<8x8xbf16>
    %cst_53 = arith.constant dense<0.000000e+00> : vector<8x8xf32>
    %165 = tpu.matmul %160, %162, %cst_53 {dimension_numbers = #tpu.dot_dimension_numbers<[1], [1], [0], [0], [0, 0, 1, 0], [], []>} : vector<8x8xbf16>, vector<8x8xbf16>, vector<8x8xf32> -> vector<8x8xf32>
    %cst_54 = arith.constant dense<0xFF800000> : vector<8xf32>
    %166 = vector.multi_reduction <maximumf>, %165, %cst_54 [1] : vector<8x8xf32> to vector<8xf32>
    %167 = vector.shape_cast %166 : vector<8xf32> to vector<8x1xf32>
    %168 = vector.broadcast %167 : vector<8x1xf32> to vector<8x8xf32>
    %169 = arith.subf %165, %168 : vector<8x8xf32>
    %170 = math.exp %169 : vector<8x8xf32>
    %cst_55 = arith.constant dense<0.000000e+00> : vector<8xf32>
    %171 = vector.multi_reduction <add>, %170, %cst_55 [1] : vector<8x8xf32> to vector<8xf32>
    %172 = vector.shape_cast %171 : vector<8xf32> to vector<8x1xf32>
    %173 = tpu.reciprocal %172 {approx = true} : vector<8x1xf32> -> vector<8x1xf32>
    %174 = vector.broadcast %173 : vector<8x1xf32> to vector<8x8xf32>
    %175 = arith.mulf %170, %174 : vector<8x8xf32>
    %176 = arith.truncf %175 : vector<8x8xf32> to vector<8x8xbf16>
    %cst_56 = arith.constant dense<0.000000e+00> : vector<8x8xf32>
    %177 = tpu.matmul %176, %164, %cst_56 {dimension_numbers = #tpu.dot_dimension_numbers<[1], [0], [0], [1], [0, 0, 1, 1], [], []>} : vector<8x8xbf16>, vector<8x8xbf16>, vector<8x8xf32> -> vector<8x8xf32>
    %178 = vector.extract_strided_slice %132 {offsets = [0, 16], sizes = [8, 8], strides = [1, 1]} : vector<8x32xf32> to vector<8x8xf32>
    %179 = arith.truncf %178 : vector<8x8xf32> to vector<8x8xbf16>
    %180 = vector.extract_strided_slice %138 {offsets = [0, 16], sizes = [8, 8], strides = [1, 1]} : vector<8x32xf32> to vector<8x8xf32>
    %181 = arith.truncf %180 : vector<8x8xf32> to vector<8x8xbf16>
    %182 = vector.extract_strided_slice %139 {offsets = [0, 16], sizes = [8, 8], strides = [1, 1]} : vector<8x32xf32> to vector<8x8xf32>
    %183 = arith.truncf %182 : vector<8x8xf32> to vector<8x8xbf16>
    %cst_57 = arith.constant dense<0.000000e+00> : vector<8x8xf32>
    %184 = tpu.matmul %179, %181, %cst_57 {dimension_numbers = #tpu.dot_dimension_numbers<[1], [1], [0], [0], [0, 0, 1, 0], [], []>} : vector<8x8xbf16>, vector<8x8xbf16>, vector<8x8xf32> -> vector<8x8xf32>
    %cst_58 = arith.constant dense<0xFF800000> : vector<8xf32>
    %185 = vector.multi_reduction <maximumf>, %184, %cst_58 [1] : vector<8x8xf32> to vector<8xf32>
    %186 = vector.shape_cast %185 : vector<8xf32> to vector<8x1xf32>
    %187 = vector.broadcast %186 : vector<8x1xf32> to vector<8x8xf32>
    %188 = arith.subf %184, %187 : vector<8x8xf32>
    %189 = math.exp %188 : vector<8x8xf32>
    %cst_59 = arith.constant dense<0.000000e+00> : vector<8xf32>
    %190 = vector.multi_reduction <add>, %189, %cst_59 [1] : vector<8x8xf32> to vector<8xf32>
    %191 = vector.shape_cast %190 : vector<8xf32> to vector<8x1xf32>
    %192 = tpu.reciprocal %191 {approx = true} : vector<8x1xf32> -> vector<8x1xf32>
    %193 = vector.broadcast %192 : vector<8x1xf32> to vector<8x8xf32>
    %194 = arith.mulf %189, %193 : vector<8x8xf32>
    %195 = arith.truncf %194 : vector<8x8xf32> to vector<8x8xbf16>
    %cst_60 = arith.constant dense<0.000000e+00> : vector<8x8xf32>
    %196 = tpu.matmul %195, %183, %cst_60 {dimension_numbers = #tpu.dot_dimension_numbers<[1], [0], [0], [1], [0, 0, 1, 1], [], []>} : vector<8x8xbf16>, vector<8x8xbf16>, vector<8x8xf32> -> vector<8x8xf32>
    %197 = vector.extract_strided_slice %132 {offsets = [0, 24], sizes = [8, 8], strides = [1, 1]} : vector<8x32xf32> to vector<8x8xf32>
    %198 = arith.truncf %197 : vector<8x8xf32> to vector<8x8xbf16>
    %199 = vector.extract_strided_slice %138 {offsets = [0, 24], sizes = [8, 8], strides = [1, 1]} : vector<8x32xf32> to vector<8x8xf32>
    %200 = arith.truncf %199 : vector<8x8xf32> to vector<8x8xbf16>
    %201 = vector.extract_strided_slice %139 {offsets = [0, 24], sizes = [8, 8], strides = [1, 1]} : vector<8x32xf32> to vector<8x8xf32>
    %202 = arith.truncf %201 : vector<8x8xf32> to vector<8x8xbf16>
    %cst_61 = arith.constant dense<0.000000e+00> : vector<8x8xf32>
    %203 = tpu.matmul %198, %200, %cst_61 {dimension_numbers = #tpu.dot_dimension_numbers<[1], [1], [0], [0], [0, 0, 1, 0], [], []>} : vector<8x8xbf16>, vector<8x8xbf16>, vector<8x8xf32> -> vector<8x8xf32>
    %cst_62 = arith.constant dense<0xFF800000> : vector<8xf32>
    %204 = vector.multi_reduction <maximumf>, %203, %cst_62 [1] : vector<8x8xf32> to vector<8xf32>
    %205 = vector.shape_cast %204 : vector<8xf32> to vector<8x1xf32>
    %206 = vector.broadcast %205 : vector<8x1xf32> to vector<8x8xf32>
    %207 = arith.subf %203, %206 : vector<8x8xf32>
    %208 = math.exp %207 : vector<8x8xf32>
    %cst_63 = arith.constant dense<0.000000e+00> : vector<8xf32>
    %209 = vector.multi_reduction <add>, %208, %cst_63 [1] : vector<8x8xf32> to vector<8xf32>
    %210 = vector.shape_cast %209 : vector<8xf32> to vector<8x1xf32>
    %211 = tpu.reciprocal %210 {approx = true} : vector<8x1xf32> -> vector<8x1xf32>
    %212 = vector.broadcast %211 : vector<8x1xf32> to vector<8x8xf32>
    %213 = arith.mulf %208, %212 : vector<8x8xf32>
    %214 = arith.truncf %213 : vector<8x8xf32> to vector<8x8xbf16>
    %cst_64 = arith.constant dense<0.000000e+00> : vector<8x8xf32>
    %215 = tpu.matmul %214, %202, %cst_64 {dimension_numbers = #tpu.dot_dimension_numbers<[1], [0], [0], [1], [0, 0, 1, 1], [], []>} : vector<8x8xbf16>, vector<8x8xbf16>, vector<8x8xf32> -> vector<8x8xf32>
    %216 = tpu.concatenate %158, %177, %196, %215 in 1 : vector<8x8xf32>, vector<8x8xf32>, vector<8x8xf32>, vector<8x8xf32> -> vector<8x32xf32>
    %217 = arith.truncf %216 : vector<8x32xf32> to vector<8x32xbf16>
    %c0_65 = arith.constant 0 : index
    %c0_66 = arith.constant 0 : index
    %218 = vector.load %arg13[%c0_65, %c0_66] : memref<32x32xbf16, #tpu.memory_space<vmem>>, vector<32x32xbf16>
    %cst_67 = arith.constant dense<0.000000e+00> : vector<8x32xf32>
    %219 = tpu.matmul %217, %218, %cst_67 {dimension_numbers = #tpu.dot_dimension_numbers<[1], [0], [0], [1], [0, 0, 1, 1], [], []>} : vector<8x32xbf16>, vector<32x32xbf16>, vector<8x32xf32> -> vector<8x32xf32>
    %c0_68 = arith.constant 0 : index
    %c0_69 = arith.constant 0 : index
    %220 = vector.load %arg14[%c0_68, %c0_69] : memref<1x32xf32, #tpu.memory_space<vmem>>, vector<1x32xf32>
    %221 = vector.broadcast %220 : vector<1x32xf32> to vector<8x32xf32>
    %222 = arith.addf %219, %221 : vector<8x32xf32>
    %223 = arith.addf %126, %222 : vector<8x32xf32>
    %c0_70 = arith.constant 0 : index
    %c0_71 = arith.constant 0 : index
    %224 = vector.load %arg15[%c0_70, %c0_71] : memref<1x32xf32, #tpu.memory_space<vmem>>, vector<1x32xf32>
    %c0_72 = arith.constant 0 : index
    %c0_73 = arith.constant 0 : index
    %225 = vector.load %arg16[%c0_72, %c0_73] : memref<1x32xf32, #tpu.memory_space<vmem>>, vector<1x32xf32>
    %cst_74 = arith.constant dense<0.000000e+00> : vector<8xf32>
    %226 = vector.multi_reduction <add>, %223, %cst_74 [1] : vector<8x32xf32> to vector<8xf32>
    %227 = vector.shape_cast %226 : vector<8xf32> to vector<8x1xf32>
    %cst_75 = arith.constant 3.200000e+01 : f32
    %228 = vector.broadcast %cst_75 : f32 to vector<8x1xf32>
    %229 = arith.divf %227, %228 : vector<8x1xf32>
    %230 = vector.broadcast %229 : vector<8x1xf32> to vector<8x32xf32>
    %231 = arith.subf %223, %230 : vector<8x32xf32>
    %232 = arith.mulf %231, %231 : vector<8x32xf32>
    %cst_76 = arith.constant dense<0.000000e+00> : vector<8xf32>
    %233 = vector.multi_reduction <add>, %232, %cst_76 [1] : vector<8x32xf32> to vector<8xf32>
    %234 = vector.shape_cast %233 : vector<8xf32> to vector<8x1xf32>
    %cst_77 = arith.constant 3.200000e+01 : f32
    %235 = vector.broadcast %cst_77 : f32 to vector<8x1xf32>
    %236 = arith.divf %234, %235 : vector<8x1xf32>
    %cst_78 = arith.constant 9.99999974E-6 : f32
    %237 = vector.broadcast %cst_78 : f32 to vector<8x1xf32>
    %238 = arith.addf %236, %237 : vector<8x1xf32>
    %239 = math.rsqrt %238 : vector<8x1xf32>
    %240 = vector.broadcast %239 : vector<8x1xf32> to vector<8x32xf32>
    %241 = arith.mulf %231, %240 : vector<8x32xf32>
    %242 = vector.broadcast %224 : vector<1x32xf32> to vector<8x32xf32>
    %243 = arith.mulf %241, %242 : vector<8x32xf32>
    %244 = vector.broadcast %225 : vector<1x32xf32> to vector<8x32xf32>
    %245 = arith.addf %243, %244 : vector<8x32xf32>
    %246 = arith.truncf %245 : vector<8x32xf32> to vector<8x32xbf16>
    %c0_79 = arith.constant 0 : index
    %c0_80 = arith.constant 0 : index
    %247 = vector.load %arg17[%c0_79, %c0_80] : memref<32x64xbf16, #tpu.memory_space<vmem>>, vector<32x64xbf16>
    %cst_81 = arith.constant dense<0.000000e+00> : vector<8x64xf32>
    %248 = tpu.matmul %246, %247, %cst_81 {dimension_numbers = #tpu.dot_dimension_numbers<[1], [0], [0], [1], [0, 0, 1, 1], [], []>} : vector<8x32xbf16>, vector<32x64xbf16>, vector<8x64xf32> -> vector<8x64xf32>
    %c0_82 = arith.constant 0 : index
    %c0_83 = arith.constant 0 : index
    %249 = vector.load %arg18[%c0_82, %c0_83] : memref<1x64xf32, #tpu.memory_space<vmem>>, vector<1x64xf32>
    %250 = vector.broadcast %249 : vector<1x64xf32> to vector<8x64xf32>
    %251 = arith.addf %248, %250 : vector<8x64xf32>
    %cst_84 = arith.constant 0.000000e+00 : f32
    %252 = vector.broadcast %cst_84 : f32 to vector<8x64xf32>
    %253 = arith.maximumf %251, %252 : vector<8x64xf32>
    %254 = arith.truncf %253 : vector<8x64xf32> to vector<8x64xbf16>
    %c0_85 = arith.constant 0 : index
    %c0_86 = arith.constant 0 : index
    %255 = vector.load %arg19[%c0_85, %c0_86] : memref<64x32xbf16, #tpu.memory_space<vmem>>, vector<64x32xbf16>
    %cst_87 = arith.constant dense<0.000000e+00> : vector<8x32xf32>
    %256 = tpu.matmul %254, %255, %cst_87 {dimension_numbers = #tpu.dot_dimension_numbers<[1], [0], [0], [1], [0, 0, 1, 1], [], []>} : vector<8x64xbf16>, vector<64x32xbf16>, vector<8x32xf32> -> vector<8x32xf32>
    %c0_88 = arith.constant 0 : index
    %c0_89 = arith.constant 0 : index
    %257 = vector.load %arg20[%c0_88, %c0_89] : memref<1x32xf32, #tpu.memory_space<vmem>>, vector<1x32xf32>
    %258 = vector.broadcast %257 : vector<1x32xf32> to vector<8x32xf32>
    %259 = arith.addf %256, %258 : vector<8x32xf32>
    %260 = arith.addf %245, %259 : vector<8x32xf32>
    %c0_90 = arith.constant 0 : index
    %c0_91 = arith.constant 0 : index
    %261 = vector.load %arg21[%c0_90, %c0_91] : memref<1x32xf32, #tpu.memory_space<vmem>>, vector<1x32xf32>
    %c0_92 = arith.constant 0 : index
    %c0_93 = arith.constant 0 : index
    %262 = vector.load %arg22[%c0_92, %c0_93] : memref<1x32xf32, #tpu.memory_space<vmem>>, vector<1x32xf32>
    %cst_94 = arith.constant dense<0.000000e+00> : vector<8xf32>
    %263 = vector.multi_reduction <add>, %260, %cst_94 [1] : vector<8x32xf32> to vector<8xf32>
    %264 = vector.shape_cast %263 : vector<8xf32> to vector<8x1xf32>
    %cst_95 = arith.constant 3.200000e+01 : f32
    %265 = vector.broadcast %cst_95 : f32 to vector<8x1xf32>
    %266 = arith.divf %264, %265 : vector<8x1xf32>
    %267 = vector.broadcast %266 : vector<8x1xf32> to vector<8x32xf32>
    %268 = arith.subf %260, %267 : vector<8x32xf32>
    %269 = arith.mulf %268, %268 : vector<8x32xf32>
    %cst_96 = arith.constant dense<0.000000e+00> : vector<8xf32>
    %270 = vector.multi_reduction <add>, %269, %cst_96 [1] : vector<8x32xf32> to vector<8xf32>
    %271 = vector.shape_cast %270 : vector<8xf32> to vector<8x1xf32>
    %cst_97 = arith.constant 3.200000e+01 : f32
    %272 = vector.broadcast %cst_97 : f32 to vector<8x1xf32>
    %273 = arith.divf %271, %272 : vector<8x1xf32>
    %cst_98 = arith.constant 9.99999974E-6 : f32
    %274 = vector.broadcast %cst_98 : f32 to vector<8x1xf32>
    %275 = arith.addf %273, %274 : vector<8x1xf32>
    %276 = math.rsqrt %275 : vector<8x1xf32>
    %277 = vector.broadcast %276 : vector<8x1xf32> to vector<8x32xf32>
    %278 = arith.mulf %268, %277 : vector<8x32xf32>
    %279 = vector.broadcast %261 : vector<1x32xf32> to vector<8x32xf32>
    %280 = arith.mulf %278, %279 : vector<8x32xf32>
    %281 = vector.broadcast %262 : vector<1x32xf32> to vector<8x32xf32>
    %282 = arith.addf %280, %281 : vector<8x32xf32>
    %283 = arith.truncf %282 : vector<8x32xf32> to vector<8x32xbf16>
    %c0_99 = arith.constant 0 : index
    %c0_100 = arith.constant 0 : index
    %284 = vector.load %arg23[%c0_99, %c0_100] : memref<8x32xbf16, #tpu.memory_space<vmem>>, vector<8x32xbf16>
    tpu.vector_store %arg23[%c0_99, %c0_100], %283 {strides = array<i32>} : memref<8x32xbf16, #tpu.memory_space<vmem>>, vector<8x32xbf16>,
    return
  }
  func.func @transform_0(%arg0: i32) -> (i32, i32) {
    %c0_i32 = arith.constant 0 : i32
    %c0_i32_0 = arith.constant 0 : i32
    return %arg0, %c0_i32 : i32, i32
  }
  func.func @transform_1(%arg0: i32) -> (i32, i32) {
    %c0_i32 = arith.constant 0 : i32
    %c0_i32_0 = arith.constant 0 : i32
    return %arg0, %c0_i32 : i32, i32
  }
  func.func @transform_2(%arg0: i32) -> (i32, i32) {
    %c0_i32 = arith.constant 0 : i32
    %c0_i32_0 = arith.constant 0 : i32
    %c0_i32_1 = arith.constant 0 : i32
    return %c0_i32, %c0_i32_0 : i32, i32
  }
  func.func @transform_3(%arg0: i32) -> (i32, i32) {
    %c0_i32 = arith.constant 0 : i32
    %c0_i32_0 = arith.constant 0 : i32
    %c0_i32_1 = arith.constant 0 : i32
    return %c0_i32, %c0_i32_0 : i32, i32
  }
  func.func @transform_4(%arg0: i32) -> (i32, i32) {
    %c0_i32 = arith.constant 0 : i32
    %c0_i32_0 = arith.constant 0 : i32
    %c0_i32_1 = arith.constant 0 : i32
    return %c0_i32, %c0_i32_0 : i32, i32
  }
  func.func @transform_5(%arg0: i32) -> (i32, i32) {
    %c0_i32 = arith.constant 0 : i32
    %c0_i32_0 = arith.constant 0 : i32
    %c0_i32_1 = arith.constant 0 : i32
    return %c0_i32, %c0_i32_0 : i32, i32
  }
  func.func @transform_6(%arg0: i32) -> (i32, i32) {
    %c0_i32 = arith.constant 0 : i32
    %c0_i32_0 = arith.constant 0 : i32
    %c0_i32_1 = arith.constant 0 : i32
    return %c0_i32, %c0_i32_0 : i32, i32
  }
  func.func @transform_7(%arg0: i32) -> (i32, i32) {
    %c0_i32 = arith.constant 0 : i32
    %c0_i32_0 = arith.constant 0 : i32
    %c0_i32_1 = arith.constant 0 : i32
    return %c0_i32, %c0_i32_0 : i32, i32
  }
  func.func @transform_8(%arg0: i32) -> (i32, i32) {
    %c0_i32 = arith.constant 0 : i32
    %c0_i32_0 = arith.constant 0 : i32
    %c0_i32_1 = arith.constant 0 : i32
    return %c0_i32, %c0_i32_0 : i32, i32
  }
  func.func @transform_9(%arg0: i32) -> (i32, i32) {
    %c0_i32 = arith.constant 0 : i32
    %c0_i32_0 = arith.constant 0 : i32
    %c0_i32_1 = arith.constant 0 : i32
    return %c0_i32, %c0_i32_0 : i32, i32
  }
  func.func @transform_10(%arg0: i32) -> (i32, i32) {
    %c0_i32 = arith.constant 0 : i32
    %c0_i32_0 = arith.constant 0 : i32
    %c0_i32_1 = arith.constant 0 : i32
    return %c0_i32, %c0_i32_0 : i32, i32
  }
  func.func @transform_11(%arg0: i32) -> (i32, i32) {
    %c0_i32 = arith.constant 0 : i32
    %c0_i32_0 = arith.constant 0 : i32
    %c0_i32_1 = arith.constant 0 : i32
    return %c0_i32, %c0_i32_0 : i32, i32
  }
  func.func @transform_12(%arg0: i32) -> (i32, i32) {
    %c0_i32 = arith.constant 0 : i32
    %c0_i32_0 = arith.constant 0 : i32
    %c0_i32_1 = arith.constant 0 : i32
    return %c0_i32, %c0_i32_0 : i32, i32
  }
  func.func @transform_13(%arg0: i32) -> (i32, i32) {
    %c0_i32 = arith.constant 0 : i32
    %c0_i32_0 = arith.constant 0 : i32
    %c0_i32_1 = arith.constant 0 : i32
    return %c0_i32, %c0_i32_0 : i32, i32
  }
  func.func @transform_14(%arg0: i32) -> (i32, i32) {
    %c0_i32 = arith.constant 0 : i32
    %c0_i32_0 = arith.constant 0 : i32
    %c0_i32_1 = arith.constant 0 : i32
    return %c0_i32, %c0_i32_0 : i32, i32
  }
  func.func @transform_15(%arg0: i32) -> (i32, i32) {
    %c0_i32 = arith.constant 0 : i32
    %c0_i32_0 = arith.constant 0 : i32
    %c0_i32_1 = arith.constant 0 : i32
    return %c0_i32, %c0_i32_0 : i32, i32
  }
  func.func @transform_16(%arg0: i32) -> (i32, i32) {
    %c0_i32 = arith.constant 0 : i32
    %c0_i32_0 = arith.constant 0 : i32
    %c0_i32_1 = arith.constant 0 : i32
    return %c0_i32, %c0_i32_0 : i32, i32
  }
  func.func @transform_17(%arg0: i32) -> (i32, i32) {
    %c0_i32 = arith.constant 0 : i32
    %c0_i32_0 = arith.constant 0 : i32
    %c0_i32_1 = arith.constant 0 : i32
    return %c0_i32, %c0_i32_0 : i32, i32
  }
  func.func @transform_18(%arg0: i32) -> (i32, i32) {
    %c0_i32 = arith.constant 0 : i32
    %c0_i32_0 = arith.constant 0 : i32
    %c0_i32_1 = arith.constant 0 : i32
    return %c0_i32, %c0_i32_0 : i32, i32
  }
  func.func @transform_19(%arg0: i32) -> (i32, i32) {
    %c0_i32 = arith.constant 0 : i32
    %c0_i32_0 = arith.constant 0 : i32
    %c0_i32_1 = arith.constant 0 : i32
    return %c0_i32, %c0_i32_0 : i32, i32
  }
  func.func @transform_20(%arg0: i32) -> (i32, i32) {
    %c0_i32 = arith.constant 0 : i32
    %c0_i32_0 = arith.constant 0 : i32
    %c0_i32_1 = arith.constant 0 : i32
    return %c0_i32, %c0_i32_0 : i32, i32
  }
  func.func @transform_21(%arg0: i32) -> (i32, i32) {
    %c0_i32 = arith.constant 0 : i32
    %c0_i32_0 = arith.constant 0 : i32
    %c0_i32_1 = arith.constant 0 : i32
    return %c0_i32, %c0_i32_0 : i32, i32
  }
  func.func @transform_22(%arg0: i32) -> (i32, i32) {
    %c0_i32 = arith.constant 0 : i32
    %c0_i32_0 = arith.constant 0 : i32
    return %arg0, %c0_i32 : i32, i32
  }
}

module attributes {stable_mosaic.version = 11 : i64} {
  func.func @_norm_proj_logsoftmax_kernel(%arg0: i32, %arg1: memref<16x32xbf16, #tpu.memory_space<vmem>>, %arg2: memref<1x32xf32, #tpu.memory_space<vmem>>, %arg3: memref<1x32xf32, #tpu.memory_space<vmem>>, %arg4: memref<32x40xbf16, #tpu.memory_space<vmem>>, %arg5: memref<1x40xf32, #tpu.memory_space<vmem>>, %arg6: memref<16x40xf32, #tpu.memory_space<vmem>>) attributes {dimension_semantics = [#tpu.dimension_semantics<parallel>], iteration_bounds = array<i64: 1>, scalar_prefetch = 0 : i64, scratch_operands = 0 : i64, tpu.core_type = #tpu.core_type<tc>, window_params = [{transform_indices = @transform_0, window_bounds = array<i64: 16, 32>}, {pipeline_mode = #tpu.pipeline_mode<synchronous>, transform_indices = @transform_1, window_bounds = array<i64: 1, 32>}, {pipeline_mode = #tpu.pipeline_mode<synchronous>, transform_indices = @transform_2, window_bounds = array<i64: 1, 32>}, {pipeline_mode = #tpu.pipeline_mode<synchronous>, transform_indices = @transform_3, window_bounds = array<i64: 32, 40>}, {pipeline_mode = #tpu.pipeline_mode<synchronous>, transform_indices = @transform_4, window_bounds = array<i64: 1, 40>}, {transform_indices = @transform_5, window_bounds = array<i64: 16, 40>}]} {
    %c0 = arith.constant 0 : index
    %c0_0 = arith.constant 0 : index
    %0 = vector.load %arg1[%c0, %c0_0] : memref<16x32xbf16, #tpu.memory_space<vmem>>, vector<16x32xbf16>
    %1 = arith.extf %0 : vector<16x32xbf16> to vector<16x32xf32>
    %c0_1 = arith.constant 0 : index
    %c0_2 = arith.constant 0 : index
    %2 = vector.load %arg2[%c0_1, %c0_2] : memref<1x32xf32, #tpu.memory_space<vmem>>, vector<1x32xf32>
    %c0_3 = arith.constant 0 : index
    %c0_4 = arith.constant 0 : index
    %3 = vector.load %arg3[%c0_3, %c0_4] : memref<1x32xf32, #tpu.memory_space<vmem>>, vector<1x32xf32>
    %cst = arith.constant dense<0.000000e+00> : vector<16xf32>
    %4 = vector.multi_reduction <add>, %1, %cst [1] : vector<16x32xf32> to vector<16xf32>
    %5 = vector.shape_cast %4 : vector<16xf32> to vector<16x1xf32>
    %cst_5 = arith.constant 3.200000e+01 : f32
    %6 = vector.broadcast %cst_5 : f32 to vector<16x1xf32>
    %7 = arith.divf %5, %6 : vector<16x1xf32>
    %8 = vector.broadcast %7 : vector<16x1xf32> to vector<16x32xf32>
    %9 = arith.subf %1, %8 : vector<16x32xf32>
    %10 = arith.mulf %9, %9 : vector<16x32xf32>
    %cst_6 = arith.constant dense<0.000000e+00> : vector<16xf32>
    %11 = vector.multi_reduction <add>, %10, %cst_6 [1] : vector<16x32xf32> to vector<16xf32>
    %12 = vector.shape_cast %11 : vector<16xf32> to vector<16x1xf32>
    %cst_7 = arith.constant 3.200000e+01 : f32
    %13 = vector.broadcast %cst_7 : f32 to vector<16x1xf32>
    %14 = arith.divf %12, %13 : vector<16x1xf32>
    %cst_8 = arith.constant 9.99999974E-6 : f32
    %15 = vector.broadcast %cst_8 : f32 to vector<16x1xf32>
    %16 = arith.addf %14, %15 : vector<16x1xf32>
    %17 = math.rsqrt %16 : vector<16x1xf32>
    %18 = vector.broadcast %17 : vector<16x1xf32> to vector<16x32xf32>
    %19 = arith.mulf %9, %18 : vector<16x32xf32>
    %20 = vector.broadcast %2 : vector<1x32xf32> to vector<16x32xf32>
    %21 = arith.mulf %19, %20 : vector<16x32xf32>
    %22 = vector.broadcast %3 : vector<1x32xf32> to vector<16x32xf32>
    %23 = arith.addf %21, %22 : vector<16x32xf32>
    %24 = arith.truncf %23 : vector<16x32xf32> to vector<16x32xbf16>
    %c0_9 = arith.constant 0 : index
    %c0_10 = arith.constant 0 : index
    %25 = vector.load %arg4[%c0_9, %c0_10] : memref<32x40xbf16, #tpu.memory_space<vmem>>, vector<32x40xbf16>
    %cst_11 = arith.constant dense<0.000000e+00> : vector<16x40xf32>
    %26 = tpu.matmul %24, %25, %cst_11 {dimension_numbers = #tpu.dot_dimension_numbers<[1], [0], [0], [1], [0, 0, 1, 1], [], []>} : vector<16x32xbf16>, vector<32x40xbf16>, vector<16x40xf32> -> vector<16x40xf32>
    %c0_12 = arith.constant 0 : index
    %c0_13 = arith.constant 0 : index
    %27 = vector.load %arg5[%c0_12, %c0_13] : memref<1x40xf32, #tpu.memory_space<vmem>>, vector<1x40xf32>
    %28 = vector.broadcast %27 : vector<1x40xf32> to vector<16x40xf32>
    %29 = arith.addf %26, %28 : vector<16x40xf32>
    %cst_14 = arith.constant dense<0xFF800000> : vector<16xf32>
    %30 = vector.multi_reduction <maximumf>, %29, %cst_14 [1] : vector<16x40xf32> to vector<16xf32>
    %31 = vector.shape_cast %30 : vector<16xf32> to vector<16x1xf32>
    %32 = vector.broadcast %31 : vector<16x1xf32> to vector<16x40xf32>
    %33 = arith.subf %29, %32 : vector<16x40xf32>
    %34 = math.exp %33 : vector<16x40xf32>
    %cst_15 = arith.constant dense<0.000000e+00> : vector<16xf32>
    %35 = vector.multi_reduction <add>, %34, %cst_15 [1] : vector<16x40xf32> to vector<16xf32>
    %36 = vector.shape_cast %35 : vector<16xf32> to vector<16x1xf32>
    %37 = math.log %36 : vector<16x1xf32>
    %38 = arith.addf %31, %37 : vector<16x1xf32>
    %39 = vector.broadcast %38 : vector<16x1xf32> to vector<16x40xf32>
    %40 = arith.subf %29, %39 : vector<16x40xf32>
    %c0_16 = arith.constant 0 : index
    %c0_17 = arith.constant 0 : index
    %41 = vector.load %arg6[%c0_16, %c0_17] : memref<16x40xf32, #tpu.memory_space<vmem>>, vector<16x40xf32>
    tpu.vector_store %arg6[%c0_16, %c0_17], %40 {strides = array<i32>} : memref<16x40xf32, #tpu.memory_space<vmem>>, vector<16x40xf32>,
    return
  }
  func.func @transform_0(%arg0: i32) -> (i32, i32) {
    %c0_i32 = arith.constant 0 : i32
    %c0_i32_0 = arith.constant 0 : i32
    return %arg0, %c0_i32 : i32, i32
  }
  func.func @transform_1(%arg0: i32) -> (i32, i32) {
    %c0_i32 = arith.constant 0 : i32
    %c0_i32_0 = arith.constant 0 : i32
    %c0_i32_1 = arith.constant 0 : i32
    return %c0_i32, %c0_i32_0 : i32, i32
  }
  func.func @transform_2(%arg0: i32) -> (i32, i32) {
    %c0_i32 = arith.constant 0 : i32
    %c0_i32_0 = arith.constant 0 : i32
    %c0_i32_1 = arith.constant 0 : i32
    return %c0_i32, %c0_i32_0 : i32, i32
  }
  func.func @transform_3(%arg0: i32) -> (i32, i32) {
    %c0_i32 = arith.constant 0 : i32
    %c0_i32_0 = arith.constant 0 : i32
    %c0_i32_1 = arith.constant 0 : i32
    return %c0_i32, %c0_i32_0 : i32, i32
  }
  func.func @transform_4(%arg0: i32) -> (i32, i32) {
    %c0_i32 = arith.constant 0 : i32
    %c0_i32_0 = arith.constant 0 : i32
    %c0_i32_1 = arith.constant 0 : i32
    return %c0_i32, %c0_i32_0 : i32, i32
  }
  func.func @transform_5(%arg0: i32) -> (i32, i32) {
    %c0_i32 = arith.constant 0 : i32
    %c0_i32_0 = arith.constant 0 : i32
    return %arg0, %c0_i32 : i32, i32
  }
}

</mosaic_0001>

<bundles_post_ra>
// kernel: transformer_forward.8
= control target key start
LH: loop header
LB: loop body
LE: loop exit
PB: predicated region body
PF: predicated region fallthrough
CT: control target
= control target key end

     0   :  { %s317_s12 = smov 0   ;;  %s349_s0 = inlined_call_operand.vmem [shape: bf16[16,32], index: 0, kind: input, shape index: {}]   ;;  %s350_s1 = inlined_call_operand.vmem [shape: f32[1,32], index: 1, kind: input, shape index: {}]   ;;  %s351_s2 = inlined_call_operand.vmem [shape: f32[1,32], index: 2, kind: input, shape index: {}]   ;;  %s352_s3 = inlined_call_operand.vmem [shape: bf16[16,32], index: 3, kind: output, shape index: {}]  }
   0x1 LB: > { %s264_s13 = sadd.s32 4294967295, %s294_s12   ;;  %p268_p0 = scmp.ge.s32.totalorder %s294_s12, 1  ;;  %s294_s12 = sphi %s317_s12, %s13_s12  }
   0x2   : > { %p136_p1 = scmp.lt.s32.totalorder %s294_s12, 3 }
   0x4   : > { %p137_p2 = pnand %p268_p0, %p136_p1 }
   0x5   : > { %p158_p3 = scmp.lt.s32.totalorder (!%p137_p2), %s264_s13, 1 }
   0x6   : > { %140 = sbr.rel (%p137_p2) target bundleno = 288 (0x120), region = 32 }
   0xb   : > { %s354_s13 = smov (!%p158_p3, %s264_s13), 1  ;;  %vm170_vm0 = vcmask 261120   ;;  %v296_v3 = vmov 32.0   ;;  %v282_v24 = vld [vmem:[%s350_s1] ss:$0 sm:$0xff]  ;;  %vm209_vm5 = vcmask 257024  }
   0xc   : > { %s269_s14 = sshll.u32 %s354_s13, 2  ;;  %284 = vrcp.f32 %v296_v3  ;;  %v283_v26 = vld [vmem:[%s351_s2] ss:$0 sm:$0xff] }
   0xd   : > { %s161_s17 = scalar_lea.vmem %s349_s0, %s269_s14  ;;  %s165_s24 = scalar_lea.vmem %s352_s3, %s269_s14 }
   0xe   : > { %v166_v0 = vld [vmem:[%s161_s17] sm:$0xf] }
   0xf   : > { %v167_v1 = vunpack.c.l.bf16 %v166_v0 }
  0x11   : > { %v171_v2 = vsel %vm170_vm0, %v167_v1, 0.0 }
  0x12   : > { %172 = vadd.xlane.f32.xlu0 %v171_v2  ;;  %v285_v4 = vpop.eup %284 }
  0x13   : > { %v175_v5 = vmul.f32 32.0, %v285_v4  ;;  %vm179_vm1 = vweird.f32 %v285_v4 }
  0x15   : > { %v176_v6 = vsub.f32 1.0, %v175_v5 }
  0x17   : > { %v177_v7 = vmul.f32 %v285_v4, %v176_v6 }
  0x19   : > { %v178_v8 = vadd.f32 %v285_v4, %v177_v7 }
  0x1b   : > { %v180_v9 = vsel %vm179_vm1, %v285_v4, %v178_v8 }
  0x85   : > { %v173_v10 = vpop.xlane.xlu0 %172 }
  0x86   : > { %v181_v11 = vmul.f32 %v180_v9, %v173_v10 }
  0x88   : > { %v182_v12 = vsub.f32 %v167_v1, %v181_v11 }
  0x8a   : > { %v183_v13 = vmul.f32 %v182_v12, %v182_v12 }
  0x8c   : > { %v184_v14 = vsel %vm170_vm0, %v183_v13, 0.0 }
  0x8d   : > { %185 = vadd.xlane.f32.xlu0 %v184_v14 }
 0x100   : > { %v186_v15 = vpop.xlane.xlu0 %185 }
 0x101   : > { %v187_v16 = vmul.f32 %v186_v15, %v180_v9 }
 0x103   : > { %v188_v17 = vadd.f32 1e-05, %v187_v16 }
 0x105   : > { %286 = vrsqrt.f32 %v188_v17  ;;  %vm195_vm3 = vweird.f32 %v188_v17 }
 0x10b   : > { %v287_v18 = vpop.eup %286 }
 0x10c   : > { %v190_v19 = vmul.f32 %v287_v18, %v188_v17  ;;  %vm196_vm2 = vweird.f32 %v287_v18 }
 0x10d   : > { %vm197_vm4 = vmor %vm195_vm3, %vm196_vm2 }
 0x10e   : > { %v191_v20 = vmul.f32 %v287_v18, %v190_v19 }
 0x110   : > { %v192_v21 = vmul.f32 0.5, %v191_v20 }
 0x112   : > { %v193_v22 = vsub.f32 1.5, %v192_v21 }
 0x114   : > { %v194_v23 = vmul.f32 %v287_v18, %v193_v22 }
 0x116   : > { %v198_v25 = vsel %vm197_vm4, %v287_v18, %v194_v23 }
 0x117   : > { %v199_v27 = vmul.f32 %v198_v25, %v182_v12 }
 0x119   : > { %v203_v28 = vmul.f32 %v282_v24, %v199_v27 }
 0x11b   : > { %v207_v29 = vadd.f32 %v283_v26, %v203_v28 }
 0x11d   : > { %v208_v30 = vpack.c.bf16 %v207_v29, %v207_v29 }
 0x11f   : > { %210 = vst.msk [vmem:[%s165_s24] sm:$0xf] %vm209_vm5, %v208_v30 }
 0x120 PF: > { %s13_s12 = sadd.s32 1, %s294_s12  }
 0x121   : > { %p10_p4 = scmp.ge.s32.totalorder %s13_s12, 4  }
 0x123   :  { %12 = sbr.rel (!%p10_p4) target bundleno = 1 (0x1), region = 62 }

// kernel: transformer_forward.6
= control target key start
LH: loop header
LB: loop body
LE: loop exit
PB: predicated region body
PF: predicated region fallthrough
CT: control target
= control target key end

     0   :  { %s1194_s25 = smov 0   ;;  %s1322_s0 = inlined_call_operand.vmem [shape: bf16[16,32], index: 0, kind: input, shape index: {}]   ;;  %s1323_s1 = inlined_call_operand.vmem [shape: bf16[32,96], index: 1, kind: input, shape index: {}]   ;;  %s1324_s2 = inlined_call_operand.vmem [shape: f32[1,96], index: 2, kind: input, shape index: {}]   ;;  %s1325_s3 = inlined_call_operand.vmem [shape: bf16[32,32], index: 3, kind: input, shape index: {}]   ;;  %s1326_s4 = inlined_call_operand.vmem [shape: f32[1,32], index: 4, kind: input, shape index: {}]   ;;  %s1327_s5 = inlined_call_operand.vmem [shape: f32[1,32], index: 5, kind: input, shape index: {}]   ;;  %s1328_s6 = inlined_call_operand.vmem [shape: f32[1,32], index: 6, kind: input, shape index: {}]   ;;  %s1329_s7 = inlined_call_operand.vmem [shape: bf16[32,64], index: 7, kind: input, shape index: {}]   ;;  %s1330_s8 = inlined_call_operand.vmem [shape: f32[1,64], index: 8, kind: input, shape index: {}]   ;;  %s1331_s9 = inlined_call_operand.vmem [shape: bf16[64,32], index: 9, kind: input, shape index: {}]   ;;  %s1332_s10 = inlined_call_operand.vmem [shape: f32[1,32], index: 10, kind: input, shape index: {}]   ;;  %s1333_s11 = inlined_call_operand.vmem [shape: f32[1,32], index: 11, kind: input, shape index: {}]   ;;  %s1334_s12 = inlined_call_operand.vmem [shape: f32[1,32], index: 12, kind: input, shape index: {}]   ;;  %s1335_s13 = inlined_call_operand.vmem [shape: bf16[16,32], index: 13, kind: output, shape index: {}]  }
   0x1 LB: > { %s977_s26 = sadd.s32 4294967295, %s1107_s25   ;;  %p981_p0 = scmp.ge.s32.totalorder %s1107_s25, 1  ;;  %s1107_s25 = sphi %s1194_s25, %s23_s25  }
   0x2   : > { %p386_p1 = scmp.lt.s32.totalorder %s1107_s25, 3 }
   0x4   : > { %p387_p2 = pnand %p981_p0, %p386_p1 }
   0x5   : > { %p428_p3 = scmp.lt.s32.totalorder (!%p387_p2), %s977_s26, 1  ;;  %s1109_s20 = smov (!%p387_p2), 104  }
   0x6   : > { %390 = sbr.rel (%p387_p2) target bundleno = 1890 (0x762), region = 72  ;;  %s1110_s21 = smov (!%p387_p2), 120  }
   0x7   : > { %s1111_s22 = smov (!%p387_p2), 96   ;;  %s1112_s23 = smov (!%p387_p2), 80  }
   0x8   : > { %s1113_s24 = smov (!%p387_p2), 72   ;;  %s1114_s27 = smov (!%p387_p2), 88  }
   0x9   : > { %s1115_s28 = smov (!%p387_p2), 112   ;;  %s1116_s29 = smov (!%p387_p2), 64  }
   0xa   : > { %s1117_s30 = smov (!%p387_p2), 40   ;;  %s1118_s15 = smov (!%p387_p2), 56  }
   0xb   : > { %v1039_v0 = vld [vmem:[%s1323_s1 + $0x8] sm:$0xff]  ;;  %v1038_v1 = vld [vmem:[%s1323_s1] sm:$0xff]  ;;  %s1337_s26 = smov (!%p428_p3, %s977_s26), 1  ;;  %vm459_vm0 = vcmask 261120   ;;  %vm480_vm1 = vcmask 64512   ;;  %vm517_vm2 = vcmask 1043456  }
   0xc   : > { %469 = vmatpush.bf16.msra.mxu0 %v1039_v0  ;;  %s982_s14 = sshll.u32 %s1337_s26, 2  ;;  %v1071_v3 = vld [vmem:[%s1324_s2] ss:$0 sm:$0xff]  ;;  %s1119_s16 = smov 48   ;;  %vm715_vm3 = vcmask 130048   ;;  %vm717_vm4 = vcmask 195584  }
   0xd   : > { %s431_s17 = scalar_lea.vmem %s1322_s0, %s982_s14  ;;  %s1121_s18 = smov 16   ;;  %vm871_vm9 = vcmask 523264   ;;  %vm922_vm13 = vcmask 257024  }
   0xe   : > { %v1216_v2 = vld [vmem:[%s431_s17] sm:$0xf]  ;;  %s1120_s17 = smov 8   ;;  %s1122_s19 = smov 24  }
  0x10   : > { %470 = vmatpush.bf16.msra.mxu0 %v1038_v1 }
  0x13   : > { %992 = vmatmul.msk.bf16.vlgmr.msra.gmra.mxu0 %vm459_vm0, %v1216_v2 }
  0x90   : > { %v472_v4 = vpop.f32.mrf.mxu0 }
  0x91   : > { %v473_v5 = vadd.f32 %v1071_v3, %v472_v4 }
  0x93   : > { %v1223_v6 = vpack.c.bf16 %v473_v5, %v473_v5 }
  0x95   : > { %646 = vrot.lane.b32.xlu2 %v1223_v6, %s1109_s20  ;;  %534 = vrot.lane.b32.xlu1 %v1223_v6, %s1110_s21 }
  0x96   : > { %478 = vrot.lane.b32.xlu0 %v1223_v6, %s1111_s22 }
  0x98   : > { %v474_v7 = vpop.f32.mrf.mxu0 }
  0x9d   : > { %592 = vrot.lane.b32.xlu2 %v1223_v6, %s1112_s23  ;;  %648 = vrot.lane.b32.xlu1 %v1223_v6, %s1113_s24  ;;  %s435_s24 = scalar_lea.vmem %s1335_s13, %s982_s14 }
  0x9e   : > { %536 = vrot.lane.b32.xlu0 %v1223_v6, %s1114_s27 }
  0xa6   : > { %590 = vrot.lane.b32.xlu0 %v1223_v6, %s1115_s28 }
  0xef   : > { %v647_v8 = vpop.permute.xlu2 %646 }
  0xf7   : > { %v593_v9 = vpop.permute.xlu2 %592 }
  0xf8   : > { %v598_v10 = vsel %vm480_vm1, %v593_v9, 0 }
  0xf9   : > { %607 = vmatpush.bf16.xpose.msrb.mxu0 %v598_v10 }
 0x107   : > { %v535_v11 = vpop.permute.xlu1 %534 }
 0x108   : > { %v479_v12 = vpop.permute.xlu0 %478 }
 0x109   : > { %v485_v13 = vsel %vm480_vm1, %v479_v12, 0 }
 0x10a   : > { %494 = vmatpush.bf16.xpose.msra.mxu1 %v485_v13 }
 0x10f   : > { %v649_v14 = vpop.permute.xlu1 %648 }
 0x110   : > { %v537_v15 = vpop.permute.xlu0 %536  ;;  %v654_v16 = vsel %vm480_vm1, %v649_v14, 0 }
 0x111   : > { %993 = vmatmul.msk.bf16.vlgmr.msra.gmra.mxu1 %vm480_vm1, %v1223_v6  ;;  %v542_v17 = vsel %vm480_vm1, %v537_v15, 0 }
 0x112   : > { %551 = vmatpush.bf16.xpose.msra.mxu3 %v542_v17 }
 0x118   : > { %v591_v18 = vpop.permute.xlu0 %590 }
 0x119   : > { %995 = vmatmul.msk.bf16.vlgmr.msra.gmra.mxu3 %vm480_vm1, %v535_v11  ;;  %997 = vmatmul.msk.bf16.vlgmr.msrb.gmra.mxu0 %vm480_vm1, %v591_v18 }
 0x11a   : > { %663 = vmatpush.bf16.xpose.msrb.mxu3 %v654_v16 }
 0x129   : > { %999 = vmatmul.msk.bf16.vlgmr.msrb.gmra.mxu3 %vm480_vm1, %v647_v8 }
 0x18e   : > { %v496_v19 = vpop.f32.mrf.mxu1 }
 0x18f   : > { %v500_v20 = vsel %vm480_vm1, %v496_v19, -inf }
 0x190   : > { %501 = vmax.xlane.f32.xlu1 %v500_v20  ;;  %v1041_v20 = vld [vmem:[%s1325_s3 + $0x8] sm:$0xff] }
 0x191   : > { %749 = vmatpush.bf16.msra.mxu0 %v1041_v20 }
 0x196   : > { %v498_v21 = vpop.f32.mrf.mxu1  ;;  %v609_v22 = vpop.f32.mrf.mxu0 }
 0x197   : > { %v613_v27 = vsel %vm480_vm1, %v609_v22, -inf  ;;  %v1040_v21 = vld [vmem:[%s1325_s3] sm:$0xff] }
 0x198   : > { %750 = vmatpush.bf16.msra.mxu0 %v1040_v21 }
 0x19c   : > { %v553_v23 = vpop.f32.mrf.mxu3 }
 0x19d   : > { %v557_v24 = vsel %vm480_vm1, %v553_v23, -inf }
 0x19e   : > { %558 = vmax.xlane.f32.xlu2 %v557_v24  ;;  %v611_v25 = vpop.f32.mrf.mxu0 }
 0x1a4   : > { %v555_v26 = vpop.f32.mrf.mxu3 }
 0x1a6   : > { %614 = vmax.xlane.f32.xlu2 %v613_v27 }
 0x1ac   : > { %v665_v28 = vpop.f32.mrf.mxu3 }
 0x1ad   : > { %v669_v29 = vsel %vm480_vm1, %v665_v28, -inf }
 0x1ae   : > { %670 = vmax.xlane.f32.xlu0 %v669_v29  ;;  %v1072_v29 = vld [vmem:[%s1326_s4] ss:$0 sm:$0xff] }
 0x1b4   : > { %v667_v30 = vpop.f32.mrf.mxu3 }
 0x1b5   : > { %v438_v30 = vunpack.c.l.bf16 %v1216_v2 }
 0x1be   : > { %512 = vrot.lane.b32.xlu2 %v1223_v6, %s1116_s29 }
 0x1c6   : > { %681 = vrot.lane.b32.xlu2 %v1223_v6, %s1117_s30 }
 0x203   : > { %v502_v31 = vpop.xlane.xlu1 %501 }
 0x204   : > { %v503_v32 = vsub.f32 %v496_v19, %v502_v31 }
 0x206   : > { %v504_v33 = vmul.f32 1.442695, %v503_v32 }
 0x208   : > { %1079 = vpow2.f32 %v504_v33 }
 0x20e   : > { %v1080_v34 = vpop.eup %1079 }
 0x20f   : > { %v506_v35 = vsel %vm480_vm1, %v1080_v34, 0.0 }
 0x210   : > { %507 = vadd.xlane.f32.xlu1 %v506_v35 }
 0x211   : > { %v559_v36 = vpop.xlane.xlu2 %558 }
 0x212   : > { %v560_v39 = vsub.f32 %v553_v23, %v559_v36  ;;  %v1123_v36 = vmov 32.0  }
 0x214   : > { %v561_v41 = vmul.f32 1.442695, %v560_v39 }
 0x219   : > { %v615_v37 = vpop.xlane.xlu2 %614 }
 0x21a   : > { %v616_v38 = vsub.f32 %v609_v22, %v615_v37 }
 0x21c   : > { %v617_v40 = vmul.f32 1.442695, %v616_v38 }
 0x21e   : > { %1081 = vpow2.f32 %v617_v40 }
 0x21f   : > { %1083 = vpow2.f32 %v561_v41 }
 0x221   : > { %v513_v42 = vpop.permute.xlu2 %512  ;;  %v671_v43 = vpop.xlane.xlu0 %670 }
 0x222   : > { %v519_v44 = vsel %vm517_vm2, %v513_v42, 0  ;;  %v672_v46 = vsub.f32 %v665_v28, %v671_v43 }
 0x223   : > { %528 = vmatpush.bf16.msra.mxu2 %v519_v44 }
 0x224   : > { %v1082_v45 = vpop.eup %1081  ;;  %v673_v48 = vmul.f32 1.442695, %v672_v46 }
 0x225   : > { %v619_v47 = vsel %vm480_vm1, %v1082_v45, 0.0  ;;  %v1084_v49 = vpop.eup %1083 }
 0x226   : > { %620 = vadd.xlane.f32.xlu0 %v619_v47  ;;  %1085 = vpow2.f32 %v673_v48  ;;  %v563_v50 = vsel %vm480_vm1, %v1084_v49, 0.0  ;;  %v1043_v47 = vld [vmem:[%s1329_s7 + $0x8] sm:$0xff]  ;;  %v1042_v48 = vld [vmem:[%s1329_s7] sm:$0xff] }
 0x229   : > { %569 = vrot.lane.b32.xlu1 %v1223_v6, %s1118_s15  ;;  %v682_v58 = vpop.permute.xlu2 %681 }
 0x22a   : > { %v687_v61 = vsel %vm517_vm2, %v682_v58, 0 }
 0x22c   : > { %v1086_v51 = vpop.eup %1085 }
 0x22d   : > { %v675_v52 = vsel %vm480_vm1, %v1086_v51, 0.0 }
 0x22e   : > { %564 = vadd.xlane.f32.xlu0 %v563_v50 }
 0x236   : > { %676 = vadd.xlane.f32.xlu0 %v675_v52  ;;  %v1046_v52 = vld [vmem:[%s1331_s9 + $0x10] sm:$0xff] }
 0x24a   : > { %625 = vrot.lane.b32.xlu0 %v1223_v6, %s1119_s16 }
 0x283   : > { %v508_v53 = vpop.xlane.xlu1 %507 }
 0x284   : > { %1087 = vrcp.f32 %v508_v53 }
 0x28a   : > { %v1088_v54 = vpop.eup %1087 }
 0x28b   : > { %v510_v55 = vmul.f32 %v1088_v54, %v1080_v34  ;;  %v1045_v54 = vld [vmem:[%s1331_s9 + $0x8] sm:$0xff] }
 0x28d   : > { %v511_v56 = vpack.c.bf16 %v510_v55, %v510_v55 }
 0x28f   : > { %994 = vmatmul.msk.bf16.vlgmr.msra.gmra.mxu2 %vm480_vm1, %v511_v56 }
 0x299   : > { %v621_v57 = vpop.xlane.xlu0 %620 }
 0x29b   : > { %v570_v59 = vpop.permute.xlu1 %569 }
 0x29c   : > { %v575_v60 = vsel %vm517_vm2, %v570_v59, 0 }
 0x29d   : > { %584 = vmatpush.bf16.msrb.mxu2 %v575_v60 }
 0x2a1   : > { %696 = vmatpush.bf16.msra.mxu2 %v687_v61  ;;  %v565_v62 = vpop.xlane.xlu0 %564  ;;  %v1073_v61 = vld [vmem:[%s1327_s5] ss:$0 sm:$0xff] }
 0x2a2   : > { %1089 = vrcp.f32 %v565_v62 }
 0x2a8   : > { %v1090_v63 = vpop.eup %1089 }
 0x2a9   : > { %v567_v0 = vmul.f32 %v1090_v63, %v1084_v49  ;;  %v677_v1 = vpop.xlane.xlu0 %676  ;;  %v1047_v49 = vld [vmem:[%s1331_s9 + $0x18] sm:$0xff]  ;;  %v1074_v63 = vld [vmem:[%s1328_s6] ss:$0 sm:$0xff] }
 0x2aa   : > { %1091 = vrcp.f32 %v677_v1  ;;  %879 = vmatpush.bf16.msra.mxu3 %v1047_v49 }
 0x2ab   : > { %v568_v3 = vpack.c.bf16 %v567_v0, %v567_v0  ;;  %1093 = vrcp.f32 %v621_v57 }
 0x2ac   : > { %1095 = vrcp.f32 %v1123_v36 }
 0x2ad   : > { %996 = vmatmul.msk.bf16.vlgmr.msrb.gmra.mxu2 %vm480_vm1, %v568_v3 }
 0x2ae   : > { %880 = vmatpush.bf16.msra.mxu3 %v1046_v52 }
 0x2b0   : > { %v1092_v4 = vpop.eup %1091 }
 0x2b1   : > { %v679_v5 = vmul.f32 %v1092_v4, %v1086_v51  ;;  %v1094_v6 = vpop.eup %1093 }
 0x2b2   : > { %v623_v7 = vmul.f32 %v1094_v6, %v1082_v45  ;;  %v1096_v37 = vpop.eup %1095  ;;  %881 = vmatpush.bf16.msra.mxu3 %v1045_v54  ;;  %v1075_v6 = vld [vmem:[%s1330_s8] ss:$0 sm:$0xff] }
 0x2b3   : > { %v680_v8 = vpack.c.bf16 %v679_v5, %v679_v5  ;;  %v763_v38 = vmul.f32 32.0, %v1096_v37  ;;  %vm767_vm5 = vweird.f32 %v1096_v37  ;;  %v1044_v5 = vld [vmem:[%s1331_s9] sm:$0xff] }
 0x2b4   : > { %v624_v11 = vpack.c.bf16 %v623_v7, %v623_v7 }
 0x2b5   : > { %v764_v39 = vsub.f32 1.0, %v763_v38 }
 0x2b6   : > { %882 = vmatpush.bf16.msra.mxu3 %v1044_v5 }
 0x2b7   : > { %v765_v40 = vmul.f32 %v1096_v37, %v764_v39 }
 0x2b9   : > { %v766_v41 = vadd.f32 %v1096_v37, %v765_v40 }
 0x2bb   : > { %v768_v42 = vsel %vm767_vm5, %v1096_v37, %v766_v41 }
 0x2bc   : > { %v626_v9 = vpop.permute.xlu0 %625 }
 0x2bd   : > { %1000 = vmatmul.msk.bf16.vlgmr.msra.gmra.mxu2 %vm480_vm1, %v680_v8  ;;  %v631_v10 = vsel %vm517_vm2, %v626_v9, 0 }
 0x2be   : > { %640 = vmatpush.bf16.msrb.mxu1 %v631_v10 }
 0x2c1   : > { %998 = vmatmul.msk.bf16.vlgmr.msrb.gmra.mxu1 %vm480_vm1, %v624_v11 }
 0x2c2   : > { %826 = vmatpush.bf16.msra.mxu1 %v1043_v47 }
 0x2c6   : > { %827 = vmatpush.bf16.msra.mxu1 %v1042_v48 }
 0x312   : > { %v530_v12 = vpop.f32.mrf.mxu2 }
 0x31a   : > { %v532_v13 = vpop.f32.mrf.mxu2 }
 0x330   : > { %v586_v14 = vpop.f32.mrf.mxu2 }
 0x331   : > { %703 = vrot.lane.b32.xlu1 %v586_v14, %s1120_s17 }
 0x338   : > { %v588_v15 = vpop.f32.mrf.mxu2 }
 0x33e   : > { %v642_v16 = vpop.f32.mrf.mxu1 }
 0x33f   : > { %707 = vrot.lane.b32.xlu2 %v642_v16, %s1121_s18 }
 0x340   : > { %v698_v17 = vpop.f32.mrf.mxu2 }
 0x341   : > { %711 = vrot.lane.b32.xlu1 %v698_v17, %s1122_s19 }
 0x346   : > { %v644_v18 = vpop.f32.mrf.mxu1 }
 0x348   : > { %v700_v19 = vpop.f32.mrf.mxu2 }
 0x399   : > { %v708_v24 = vpop.permute.xlu2 %707 }
 0x3a3   : > { %v704_v22 = vpop.permute.xlu1 %703 }
 0x3a4   : > { %v714_v23 = vsel %vm480_vm1, %v530_v12, %v704_v22  ;;  %v1076_v12 = vld [vmem:[%s1332_s10] ss:$0 sm:$0xff] }
 0x3a5   : > { %v716_v26 = vsel %vm715_vm3, %v714_v23, %v708_v24 }
 0x3b3   : > { %v712_v25 = vpop.permute.xlu1 %711 }
 0x3b4   : > { %v718_v27 = vsel %vm717_vm4, %v716_v26, %v712_v25 }
 0x3b5   : > { %v719_v28 = vpack.c.bf16 %v718_v27, %v718_v27 }
 0x3b7   : > { %1009 = vmatmul.msk.bf16.vlgmr.msra.gmra.mxu0 %vm459_vm0, %v719_v28 }
 0x434   : > { %v752_v31 = vpop.f32.mrf.mxu0 }
 0x435   : > { %v753_v32 = vadd.f32 %v1072_v29, %v752_v31 }
 0x437   : > { %v756_v33 = vadd.f32 %v753_v32, %v438_v30  ;;  %v1077_v32 = vld [vmem:[%s1333_s11] ss:$0 sm:$0xff] }
 0x439   : > { %v759_v34 = vsel %vm459_vm0, %v756_v33, 0.0 }
 0x43a   : > { %760 = vadd.xlane.f32.xlu2 %v759_v34  ;;  %v1078_v34 = vld [vmem:[%s1334_s12] ss:$0 sm:$0xff] }
 0x43c   : > { %v754_v35 = vpop.f32.mrf.mxu0 }
 0x4ad   : > { %v761_v43 = vpop.xlane.xlu2 %760 }
 0x4ae   : > { %v769_v44 = vmul.f32 %v768_v42, %v761_v43 }
 0x4b0   : > { %v770_v45 = vsub.f32 %v756_v33, %v769_v44 }
 0x4b2   : > { %v771_v2 = vmul.f32 %v770_v45, %v770_v45 }
 0x4b4   : > { %v772_v46 = vsel %vm459_vm0, %v771_v2, 0.0 }
 0x4b5   : > { %773 = vadd.xlane.f32.xlu1 %v772_v46 }
 0x528   : > { %v774_v50 = vpop.xlane.xlu1 %773 }
 0x529   : > { %v775_v51 = vmul.f32 %v774_v50, %v768_v42 }
 0x52b   : > { %v776_v53 = vadd.f32 1e-05, %v775_v51 }
 0x52d   : > { %1097 = vrsqrt.f32 %v776_v53  ;;  %vm783_vm7 = vweird.f32 %v776_v53 }
 0x533   : > { %v1098_v55 = vpop.eup %1097 }
 0x534   : > { %v778_v56 = vmul.f32 %v1098_v55, %v776_v53  ;;  %vm784_vm6 = vweird.f32 %v1098_v55 }
 0x535   : > { %vm785_vm8 = vmor %vm783_vm7, %vm784_vm6 }
 0x536   : > { %v779_v57 = vmul.f32 %v1098_v55, %v778_v56 }
 0x538   : > { %v780_v58 = vmul.f32 0.5, %v779_v57 }
 0x53a   : > { %v781_v59 = vsub.f32 1.5, %v780_v58 }
 0x53c   : > { %v782_v60 = vmul.f32 %v1098_v55, %v781_v59 }
 0x53e   : > { %v786_v62 = vsel %vm785_vm8, %v1098_v55, %v782_v60 }
 0x53f   : > { %v787_v0 = vmul.f32 %v786_v62, %v770_v45 }
 0x541   : > { %v791_v1 = vmul.f32 %v1073_v61, %v787_v0 }
 0x543   : > { %v795_v3 = vadd.f32 %v1074_v63, %v791_v1 }
 0x545   : > { %v796_v4 = vpack.c.bf16 %v795_v3, %v795_v3 }
 0x547   : > { %1018 = vmatmul.msk.bf16.vlgmr.msra.gmra.mxu1 %vm459_vm0, %v796_v4 }
 0x5c4   : > { %v829_v7 = vpop.f32.mrf.mxu1 }
 0x5c5   : > { %v830_v8 = vadd.f32 %v1075_v6, %v829_v7 }
 0x5c7   : > { %v833_v9 = vmax.f32 %v830_v8, 0.0 }
 0x5c9   : > { %v834_v10 = vpack.c.bf16 %v833_v9, %v833_v9 }
 0x5cb   : > { %1035 = vmatmul.msk.bf16.vlgmr.msra.gmra.mxu3 %vm871_vm9, %v834_v10 }
 0x5cc   : > { %v831_v11 = vpop.f32.mrf.mxu1 }
 0x64e   : > { %v884_v13 = vpop.f32.mrf.mxu3 }
 0x64f   : > { %v885_v14 = vadd.f32 %v1076_v12, %v884_v13 }
 0x651   : > { %v888_v15 = vadd.f32 %v885_v14, %v795_v3 }
 0x653   : > { %v891_v16 = vsel %vm459_vm0, %v888_v15, 0.0 }
 0x654   : > { %892 = vadd.xlane.f32.xlu0 %v891_v16 }
 0x656   : > { %v886_v17 = vpop.f32.mrf.mxu3 }
 0x6c7   : > { %v893_v18 = vpop.xlane.xlu0 %892 }
 0x6c8   : > { %v894_v19 = vmul.f32 %v893_v18, %v768_v42 }
 0x6ca   : > { %v895_v20 = vsub.f32 %v888_v15, %v894_v19 }
 0x6cc   : > { %v896_v21 = vmul.f32 %v895_v20, %v895_v20 }
 0x6ce   : > { %v897_v22 = vsel %vm459_vm0, %v896_v21, 0.0 }
 0x6cf   : > { %898 = vadd.xlane.f32.xlu2 %v897_v22 }
 0x742   : > { %v899_v23 = vpop.xlane.xlu2 %898 }
 0x743   : > { %v900_v24 = vmul.f32 %v899_v23, %v768_v42 }
 0x745   : > { %v901_v25 = vadd.f32 1e-05, %v900_v24 }
 0x747   : > { %1099 = vrsqrt.f32 %v901_v25  ;;  %vm908_vm11 = vweird.f32 %v901_v25 }
 0x74d   : > { %v1100_v26 = vpop.eup %1099 }
 0x74e   : > { %v903_v27 = vmul.f32 %v1100_v26, %v901_v25  ;;  %vm909_vm10 = vweird.f32 %v1100_v26 }
 0x74f   : > { %vm910_vm12 = vmor %vm908_vm11, %vm909_vm10 }
 0x750   : > { %v904_v28 = vmul.f32 %v1100_v26, %v903_v27 }
 0x752   : > { %v905_v29 = vmul.f32 0.5, %v904_v28 }
 0x754   : > { %v906_v30 = vsub.f32 1.5, %v905_v29 }
 0x756   : > { %v907_v31 = vmul.f32 %v1100_v26, %v906_v30 }
 0x758   : > { %v911_v33 = vsel %vm910_vm12, %v1100_v26, %v907_v31 }
 0x759   : > { %v912_v35 = vmul.f32 %v911_v33, %v895_v20 }
 0x75b   : > { %v916_v36 = vmul.f32 %v1077_v32, %v912_v35 }
 0x75d   : > { %v920_v37 = vadd.f32 %v1078_v34, %v916_v36 }
 0x75f   : > { %v921_v38 = vpack.c.bf16 %v920_v37, %v920_v37 }
 0x761   : > { %923 = vst.msk [vmem:[%s435_s24] sm:$0xf] %vm922_vm13, %v921_v38 }
 0x762 PF: > { %s23_s25 = sadd.s32 1, %s1107_s25  }
 0x763   : > { %p20_p4 = scmp.ge.s32.totalorder %s23_s25, 4  }
 0x765   :  { %22 = sbr.rel (!%p20_p4) target bundleno = 1 (0x1), region = 102 }

// kernel: transformer_forward.9
= control target key start
LH: loop header
LB: loop body
LE: loop exit
PB: predicated region body
PF: predicated region fallthrough
CT: control target
= control target key end

     0   :  { %s3039_s0 = inlined_call_operand.vmem [shape: bf16[16,32], index: 0, kind: input, shape index: {}]   ;;  %s3040_s1 = inlined_call_operand.vmem [shape: bf16[16,32], index: 1, kind: input, shape index: {}]   ;;  %s3041_s2 = inlined_call_operand.vmem [shape: bf16[32,96], index: 2, kind: input, shape index: {}]   ;;  %s3042_s3 = inlined_call_operand.vmem [shape: f32[1,96], index: 3, kind: input, shape index: {}]   ;;  %s3043_s4 = inlined_call_operand.vmem [shape: bf16[32,32], index: 4, kind: input, shape index: {}]   ;;  %s3044_s5 = inlined_call_operand.vmem [shape: f32[1,32], index: 5, kind: input, shape index: {}]   ;;  %s3045_s6 = inlined_call_operand.hbm [shape: f32[1,32], index: 6, kind: input, shape index: {}]   ;;  %s3046_s7 = inlined_call_operand.hbm [shape: f32[1,32], index: 7, kind: input, shape index: {}]   ;;  %s3047_s8 = inlined_call_operand.vmem [shape: bf16[32,32], index: 8, kind: input, shape index: {}]   ;;  %s3048_s9 = inlined_call_operand.hbm [shape: f32[1,32], index: 9, kind: input, shape index: {}]   ;;  %s3049_s10 = inlined_call_operand.vmem [shape: bf16[32,64], index: 10, kind: input, shape index: {}]   ;;  %s3050_s11 = inlined_call_operand.hbm [shape: f32[1,64], index: 11, kind: input, shape index: {}]   ;;  %s3051_s12 = inlined_call_operand.vmem [shape: bf16[32,32], index: 12, kind: input, shape index: {}]   ;;  %s3052_s13 = inlined_call_operand.hbm [shape: f32[1,32], index: 13, kind: input, shape index: {}]   ;;  %s3053_s14 = inlined_call_operand.hbm [shape: f32[1,32], index: 14, kind: input, shape index: {}]   ;;  %s3054_s15 = inlined_call_operand.hbm [shape: f32[1,32], index: 15, kind: input, shape index: {}]   ;;  %s3055_s16 = inlined_call_operand.vmem [shape: bf16[32,64], index: 16, kind: input, shape index: {}]   ;;  %s3056_s17 = inlined_call_operand.hbm [shape: f32[1,64], index: 17, kind: input, shape index: {}]   ;;  %s3057_s18 = inlined_call_operand.vmem [shape: bf16[64,32], index: 18, kind: input, shape index: {}]   ;;  %s3058_s19 = inlined_call_operand.hbm [shape: f32[1,32], index: 19, kind: input, shape index: {}]   ;;  %s3059_s20 = inlined_call_operand.hbm [shape: f32[1,32], index: 20, kind: input, shape index: {}]   ;;  %s3060_s21 = inlined_call_operand.hbm [shape: f32[1,32], index: 21, kind: input, shape index: {}]   ;;  %s3061_s22 = inlined_call_operand.vmem [shape: bf16[16,32], index: 22, kind: output, shape index: {}]  }
   0x1   :  { %3068 = sst [smem:[#allocation25_spill]] %s3039_s0 }
   0x2   :  { %3069 = sst [smem:[#allocation26_spill]] %s3040_s1 }
   0x3   :  { %3070 = sst [smem:[#allocation27_spill]] %s3041_s2 }
   0x4   :  { %3071 = sst [smem:[#allocation28_spill]] %s3042_s3 }
   0x5   :  { %3072 = sst [smem:[#allocation29_spill]] %s3043_s4 }
   0x6   :  { %3073 = sst [smem:[#allocation30_spill]] %s3044_s5 }
   0x7   :  { %3074 = sst [smem:[#allocation31_spill]] %s3045_s6 }
   0x8   :  { %3075 = sst [smem:[#allocation32_spill]] %s3046_s7 }
   0x9   :  { %3076 = sst [smem:[#allocation33_spill]] %s3050_s11 }
   0xa   :  { %3077 = sst [smem:[#allocation34_spill]] %s3053_s14 }
   0xb   :  { %27 = vsyncpa [#allocation3], 0 }
   0xc   :  { %28 = vsyncpa [#allocation5], 0 }
   0xd   :  { %29 = vsyncpa [#allocation8], 0 }
   0xe   :  { %30 = vsyncpa [#allocation11], 0 }
   0xf   :  { %31 = vsyncpa [#allocation14], 0 }
  0x10   :  { %32 = vsyncpa [#allocation17], 0  ;;  %s2732_s3 = smov 0  }
  0x11 LB: > { %s3078_s7 = sld [smem:[#allocation32_spill]]  ;;  %s2741_s4 = sadd.s32 4294967295, %s2588_s3   ;;  %s2588_s3 = sphi %s2732_s3, %s38_s3  }
  0x12   : > { %p1907_p0 = scmp.ge.s32.totalorder %s2588_s3, 1  ;;  %p541_p1 = scmp.lt.s32.totalorder %s2588_s3, 3 }
  0x13   : > { %p2118_p2 = scmp.eq.s32.totalorder %s2741_s4, 0  ;;  %s2590_s23 = smov [#allocation4]  }
  0x14   : > { %p2746_p3 = pnand %p1907_p0, %p541_p1  ;;  %s579_s1 = sshll.u32 %s2590_s23, 4  ;;  %s580_s1 = int_to_ptr.vmem [resolvable:$true] %s579_s1 }
  0x15   : > { %s3080_s11 = sld [smem:[#allocation33_spill]]  ;;  %s2591_s28 = smov [#allocation7]  }
  0x16   : > { %p2084_p4 = pneg %p2746_p3  ;;  %s3081_s14 = sld [smem:[#allocation34_spill]] }
  0x17   : > { %s577_s30 = sshll.u32 %s3078_s7, 4  ;;  %s609_s29 = sshll.u32 %s2591_s28, 4  ;;  %s578_s30 = int_to_ptr.hbm [resolvable:$true] %s577_s30  ;;  %s610_s29 = int_to_ptr.vmem [resolvable:$true] %s609_s29 }
  0x18   : > { %p2760_p5 = pnand %p2118_p2, %p2084_p4  ;;  %s2592_s23 = smov [#allocation10]  }
  0x19   : > { %s636_s5 = sshll.u32 %s2592_s23, 4  ;;  %s661_s26 = sshll.u32 %s3056_s17, 4  ;;  %s637_s5 = int_to_ptr.vmem [resolvable:$true] %s636_s5  ;;  %s662_s26 = int_to_ptr.hbm [resolvable:$true] %s661_s26 }
  0x1a   : > { %2090 = dma.hbm_to_vmem [thread:$0]  (!%p2760_p5), %s578_s30, 16, %s580_s1, [#allocation5]  }
  0x1b   : > { %s607_s6 = sshll.u32 %s3080_s11, 4  ;;  %s688_s11 = sshll.u32 %s3059_s20, 4  ;;  %s608_s6 = int_to_ptr.hbm [resolvable:$true] %s607_s6  ;;  %s689_s11 = int_to_ptr.hbm [resolvable:$true] %s688_s11 }
  0x1c   : > { %s634_s2 = sshll.u32 %s3081_s14, 4  ;;  %s2593_s14 = smov [#allocation13]   ;;  %s635_s2 = int_to_ptr.hbm [resolvable:$true] %s634_s2 }
  0x1d   : > { %2096 = dma.hbm_to_vmem [thread:$0]  (!%p2760_p5), %s608_s6, 16, %s610_s29, [#allocation8]  }
  0x1e   : > { %2102 = dma.hbm_to_vmem [thread:$0]  (!%p2760_p5), %s635_s2, 16, %s637_s5, [#allocation11]  }
  0x1f   : > { %s663_s30 = sshll.u32 %s2593_s14, 4  ;;  %s2594_s1 = smov [#allocation16]   ;;  %s664_s30 = int_to_ptr.vmem [resolvable:$true] %s663_s30 }
  0x20   : > { %2108 = dma.hbm_to_vmem [thread:$0]  (!%p2760_p5), %s662_s26, 16, %s664_s30, [#allocation14]  }
  0x21   : > { %s690_s6 = sshll.u32 %s2594_s1, 4  ;;  %s3083_s24 = sld [smem:[#allocation31_spill]]  ;;  %s691_s6 = int_to_ptr.vmem [resolvable:$true] %s690_s6 }
  0x22   : > { %2114 = dma.hbm_to_vmem [thread:$0]  (!%p2760_p5), %s689_s11, 16, %s691_s6, [#allocation17]  }
  0x23   : > { %s592_s5 = sshll.u32 %s3048_s9, 4  ;;  %s2595_s14 = smov [#allocation2]   ;;  %s593_s5 = int_to_ptr.hbm [resolvable:$true] %s592_s5 }
  0x24   : > { %s567_s28 = sshll.u32 %s2595_s14, 4  ;;  %s2596_s26 = smov [#allocation6]   ;;  %s568_s28 = int_to_ptr.vmem [resolvable:$true] %s567_s28 }
  0x25   : > { %s594_s30 = sshll.u32 %s2596_s26, 4  ;;  %s622_s23 = sshll.u32 %s3052_s13, 4  ;;  %s595_s30 = int_to_ptr.vmem [resolvable:$true] %s594_s30  ;;  %s623_s23 = int_to_ptr.hbm [resolvable:$true] %s622_s23 }
  0x26   : > { %2093 = dma.hbm_to_vmem [thread:$0]  (!%p2760_p5), %s593_s5, 16, %s595_s30, [#allocation5]  }
  0x27   : > { %s565_s25 = sshll.u32 %s3083_s24, 4  ;;  %s646_s24 = sshll.u32 %s3054_s15, 4  ;;  %s566_s25 = int_to_ptr.hbm [resolvable:$true] %s565_s25  ;;  %s647_s24 = int_to_ptr.hbm [resolvable:$true] %s646_s24 }
  0x28   : > { %2087 = dma.hbm_to_vmem [thread:$0]  (!%p2760_p5), %s566_s25, 16, %s568_s28, [#allocation3]  }
  0x29   : > { %s2597_s7 = smov [#allocation9]   ;;  %s2598_s25 = smov [#allocation12]  }
  0x2a   : > { %s624_s2 = sshll.u32 %s2597_s7, 4  ;;  %s648_s14 = sshll.u32 %s2598_s25, 4  ;;  %s625_s2 = int_to_ptr.vmem [resolvable:$true] %s624_s2  ;;  %s649_s14 = int_to_ptr.vmem [resolvable:$true] %s648_s14 }
  0x2b   : > { %2099 = dma.hbm_to_vmem [thread:$0]  (!%p2760_p5), %s623_s23, 16, %s625_s2, [#allocation8]  }
  0x2c   : > { %s676_s1 = sshll.u32 %s3058_s19, 4  ;;  %s700_s29 = sshll.u32 %s3060_s21, 4  ;;  %s677_s1 = int_to_ptr.hbm [resolvable:$true] %s676_s1  ;;  %s701_s29 = int_to_ptr.hbm [resolvable:$true] %s700_s29 }
  0x2d   : > { %2105 = dma.hbm_to_vmem [thread:$0]  (!%p2760_p5), %s647_s24, 16, %s649_s14, [#allocation11]  }
  0x2e   : > { %s2599_s11 = smov [#allocation15]   ;;  %s2600_s23 = smov [#allocation18]  }
  0x2f   : > { %s678_s6 = sshll.u32 %s2599_s11, 4  ;;  %s702_s7 = sshll.u32 %s2600_s23, 4  ;;  %s679_s6 = int_to_ptr.vmem [resolvable:$true] %s678_s6  ;;  %s703_s7 = int_to_ptr.vmem [resolvable:$true] %s702_s7 }
  0x30   : > { %2111 = dma.hbm_to_vmem [thread:$0]  (!%p2760_p5), %s677_s1, 16, %s679_s6, [#allocation14]  }
  0x31   : > { %2117 = dma.hbm_to_vmem [thread:$0]  (!%p2760_p5), %s701_s29, 16, %s703_s7, [#allocation17]  }
  0x32   : > { %729 = sbr.rel (%p2746_p3) target bundleno = 3260 (0xcbc), region = 108 }
  0x37   : > { %2563 = dma.done.wait (%p2118_p2), [#allocation3], 16  }
  0x38   : > { %2565 = vsyncadd (%p2118_p2), [#allocation3], 4294967280 }
  0x39   : > { %2567 = dma.done.wait (%p2118_p2), [#allocation5], 32  }
  0x3a   : > { %2569 = vsyncadd (%p2118_p2), [#allocation5], 4294967264 }
  0x3b   : > { %2571 = dma.done.wait (%p2118_p2), [#allocation8], 32  }
  0x3c   : > { %2573 = vsyncadd (%p2118_p2), [#allocation8], 4294967264 }
  0x3d   : > { %2575 = dma.done.wait (%p2118_p2), [#allocation11], 32  }
  0x3e   : > { %2577 = vsyncadd (%p2118_p2), [#allocation11], 4294967264 }
  0x3f   : > { %2579 = dma.done.wait (%p2118_p2), [#allocation14], 32  }
  0x40   : > { %2581 = vsyncadd (%p2118_p2), [#allocation14], 4294967264 }
  0x41   : > { %2583 = dma.done.wait (%p2118_p2), [#allocation17], 32  }
  0x42   : > { %2585 = vsyncadd (%p2118_p2), [#allocation17], 4294967264  ;;  %p844_p6 = scmp.lt.s32.totalorder %s2741_s4, 1  ;;  %s3084_s24 = sld [smem:[#allocation27_spill]]  ;;  %vm880_vm0 = vcmask 261120   ;;  %vm907_vm1 = vcmask 64512   ;;  %v897_v19 = vlaneseq }
  0x43   : > { %s3085_s1 = sld [smem:[#allocation25_spill]]  ;;  %s2601_s11 = smov 104   ;;  %v2608_v22 = vmov -inf   ;;  %vm944_vm3 = vcmask 1043456   ;;  %vm1142_vm4 = vcmask 130048   ;;  %vm1144_vm5 = vcmask 195584  }
  0x44   : > { %s3095_s4 = smov (!%p844_p6, %s2741_s4), 1  ;;  %s3086_s29 = sld [smem:[#allocation28_spill]]  ;;  %v898_v20 = vshrl.u32 %v897_v19, 7  ;;  %v900_v21 = vand.u32 127, %v897_v19  ;;  %vm1680_vm13 = vcmask 523264  }
  0x45   : > { %s2841_s2 = sshll.u32 %s3095_s4, 2  ;;  %s2602_s6 = smov 120  }
  0x46   : > { %s2603_s23 = smov 96   ;;  %s3067_s7 = smov 80   ;;  %vm901_vm2 = vcmp.le.s32.totalorder %v900_v21, %v898_v20 }
  0x47   : > { %s2605_s0 = smov 72   ;;  %s2606_s27 = smov 88   ;;  %v902_v23 = vsel %vm901_vm2, 0.0, %v2608_v22 }
  0x48   : > { %v2025_v0 = vld [vmem:[%s3084_s24 + $0x8] sm:$0xff]  ;;  %v2024_v1 = vld [vmem:[%s3084_s24] sm:$0xff]  ;;  %s2607_s25 = smov 112   ;;  %s2609_s14 = smov 64  }
  0x49   : > { %890 = vmatpush.bf16.msra.mxu0 %v2025_v0  ;;  %s847_s5 = scalar_lea.vmem %s3085_s1, %s2841_s2  ;;  %s2610_s28 = smov 40  }
  0x4a   : > { %v2850_v2 = vld [vmem:[%s847_s5] sm:$0xf]  ;;  %s2611_s26 = smov 56   ;;  %s2612_s1 = smov 48  }
  0x4b   : > { %v2175_v3 = vld [vmem:[%s3086_s29] ss:$0 sm:$0xff]  ;;  %s3066_s5 = smov 8   ;;  %s3065_s30 = smov 16  }
  0x4c   : > { %s3064_s4 = smov 24  }
  0x4d   : > { %891 = vmatpush.bf16.msra.mxu0 %v2024_v1 }
  0x50   : > { %1943 = vmatmul.msk.bf16.vlgmr.msra.gmra.mxu0 %vm880_vm0, %v2850_v2 }
  0xcd   : > { %v893_v4 = vpop.f32.mrf.mxu0 }
  0xce   : > { %v894_v5 = vadd.f32 %v2175_v3, %v893_v4 }
  0xd0   : > { %v2857_v6 = vpack.c.bf16 %v894_v5, %v894_v5 }
  0xd2   : > { %1073 = vrot.lane.b32.xlu2 %v2857_v6, %s2601_s11  ;;  %961 = vrot.lane.b32.xlu1 %v2857_v6, %s2602_s6 }
  0xd3   : > { %905 = vrot.lane.b32.xlu0 %v2857_v6, %s2603_s23 }
  0xd5   : > { %v895_v7 = vpop.f32.mrf.mxu0 }
  0xda   : > { %1019 = vrot.lane.b32.xlu2 %v2857_v6, %s3067_s7  ;;  %1075 = vrot.lane.b32.xlu1 %v2857_v6, %s2605_s0  ;;  %s3093_s7 = smov 24  }
  0xdb   : > { %963 = vrot.lane.b32.xlu0 %v2857_v6, %s2606_s27 }
  0xe3   : > { %1017 = vrot.lane.b32.xlu0 %v2857_v6, %s2607_s25 }
 0x12c   : > { %v1074_v8 = vpop.permute.xlu2 %1073 }
 0x134   : > { %v1020_v9 = vpop.permute.xlu2 %1019 }
 0x135   : > { %v1025_v10 = vsel %vm907_vm1, %v1020_v9, 0 }
 0x136   : > { %1034 = vmatpush.bf16.xpose.msrb.mxu0 %v1025_v10 }
 0x144   : > { %v962_v11 = vpop.permute.xlu1 %961 }
 0x145   : > { %v906_v12 = vpop.permute.xlu0 %905 }
 0x146   : > { %v912_v13 = vsel %vm907_vm1, %v906_v12, 0 }
 0x147   : > { %921 = vmatpush.bf16.xpose.msra.mxu1 %v912_v13 }
 0x14c   : > { %v1076_v14 = vpop.permute.xlu1 %1075 }
 0x14d   : > { %v964_v15 = vpop.permute.xlu0 %963  ;;  %v1081_v16 = vsel %vm907_vm1, %v1076_v14, 0 }
 0x14e   : > { %1944 = vmatmul.msk.bf16.vlgmr.msra.gmra.mxu1 %vm907_vm1, %v2857_v6  ;;  %v969_v17 = vsel %vm907_vm1, %v964_v15, 0 }
 0x14f   : > { %978 = vmatpush.bf16.xpose.msra.mxu3 %v969_v17 }
 0x155   : > { %v1018_v18 = vpop.permute.xlu0 %1017 }
 0x156   : > { %1946 = vmatmul.msk.bf16.vlgmr.msra.gmra.mxu3 %vm907_vm1, %v962_v11  ;;  %1948 = vmatmul.msk.bf16.vlgmr.msrb.gmra.mxu0 %vm907_vm1, %v1018_v18 }
 0x157   : > { %1090 = vmatpush.bf16.xpose.msrb.mxu3 %v1081_v16 }
 0x166   : > { %1950 = vmatmul.msk.bf16.vlgmr.msrb.gmra.mxu3 %vm907_vm1, %v1074_v8 }
 0x1cb   : > { %v923_v24 = vpop.f32.mrf.mxu1 }
 0x1cc   : > { %v924_v25 = vadd.f32 %v923_v24, %v902_v23 }
 0x1ce   : > { %v927_v26 = vsel %vm907_vm1, %v924_v25, -inf }
 0x1cf   : > { %928 = vmax.xlane.f32.xlu1 %v927_v26 }
 0x1d3   : > { %v925_v27 = vpop.f32.mrf.mxu1  ;;  %v1036_v28 = vpop.f32.mrf.mxu0 }
 0x1d4   : > { %v1037_v33 = vadd.f32 %v1036_v28, %v902_v23 }
 0x1d6   : > { %v1040_v35 = vsel %vm907_vm1, %v1037_v33, -inf }
 0x1d9   : > { %v980_v29 = vpop.f32.mrf.mxu3 }
 0x1da   : > { %v981_v30 = vadd.f32 %v980_v29, %v902_v23 }
 0x1db   : > { %v1038_v31 = vpop.f32.mrf.mxu0 }
 0x1dc   : > { %v984_v32 = vsel %vm907_vm1, %v981_v30, -inf }
 0x1dd   : > { %985 = vmax.xlane.f32.xlu2 %v984_v32 }
 0x1e1   : > { %v982_v34 = vpop.f32.mrf.mxu3 }
 0x1e5   : > { %1041 = vmax.xlane.f32.xlu2 %v1040_v35 }
 0x1e9   : > { %v1092_v36 = vpop.f32.mrf.mxu3 }
 0x1ea   : > { %v1093_v37 = vadd.f32 %v1092_v36, %v902_v23 }
 0x1ec   : > { %v1096_v38 = vsel %vm907_vm1, %v1093_v37, -inf }
 0x1ed   : > { %1097 = vmax.xlane.f32.xlu0 %v1096_v38 }
 0x1f1   : > { %v1094_v39 = vpop.f32.mrf.mxu3 }
 0x1f2   : > { %v858_v39 = vunpack.c.l.bf16 %v2850_v2 }
 0x1fd   : > { %939 = vrot.lane.b32.xlu2 %v2857_v6, %s2609_s14 }
 0x205   : > { %1108 = vrot.lane.b32.xlu2 %v2857_v6, %s2610_s28  ;;  %s3087_s28 = sld [smem:[#allocation29_spill]] }
 0x20b   : > { %v2027_v29 = vld [vmem:[%s3087_s28 + $0x8] sm:$0xff] }
 0x20c   : > { %1176 = vmatpush.bf16.msra.mxu0 %v2027_v29 }
 0x242   : > { %v929_v40 = vpop.xlane.xlu1 %928 }
 0x243   : > { %v930_v41 = vsub.f32 %v924_v25, %v929_v40 }
 0x245   : > { %v931_v42 = vmul.f32 1.442695, %v930_v41 }
 0x247   : > { %2188 = vpow2.f32 %v931_v42 }
 0x24d   : > { %v2189_v43 = vpop.eup %2188 }
 0x24e   : > { %v933_v44 = vsel %vm907_vm1, %v2189_v43, 0.0 }
 0x24f   : > { %934 = vadd.xlane.f32.xlu1 %v933_v44 }
 0x250   : > { %v986_v45 = vpop.xlane.xlu2 %985 }
 0x251   : > { %v987_v48 = vsub.f32 %v981_v30, %v986_v45  ;;  %v2026_v30 = vld [vmem:[%s3087_s28] sm:$0xff]  ;;  %v2616_v45 = vmov 32.0  }
 0x252   : > { %1177 = vmatpush.bf16.msra.mxu0 %v2026_v30 }
 0x253   : > { %v988_v50 = vmul.f32 1.442695, %v987_v48 }
 0x258   : > { %v1042_v46 = vpop.xlane.xlu2 %1041 }
 0x259   : > { %v1043_v47 = vsub.f32 %v1037_v33, %v1042_v46  ;;  %v2031_v46 = vld [vmem:[%s3049_s10 + $0x8] sm:$0xff] }
 0x25a   : > { %1289 = vmatpush.bf16.msra.mxu3 %v2031_v46 }
 0x25b   : > { %v1044_v49 = vmul.f32 1.442695, %v1043_v47  ;;  %v2030_v47 = vld [vmem:[%s3049_s10] sm:$0xff] }
 0x25d   : > { %2190 = vpow2.f32 %v1044_v49 }
 0x25e   : > { %2192 = vpow2.f32 %v988_v50  ;;  %1290 = vmatpush.bf16.msra.mxu3 %v2030_v47 }
 0x260   : > { %v940_v51 = vpop.permute.xlu2 %939  ;;  %v1098_v52 = vpop.xlane.xlu0 %1097 }
 0x261   : > { %v946_v53 = vsel %vm944_vm3, %v940_v51, 0  ;;  %v1099_v55 = vsub.f32 %v1093_v37, %v1098_v52 }
 0x262   : > { %955 = vmatpush.bf16.msra.mxu2 %v946_v53 }
 0x263   : > { %v2191_v54 = vpop.eup %2190  ;;  %v1100_v57 = vmul.f32 1.442695, %v1099_v55 }
 0x264   : > { %v1046_v56 = vsel %vm907_vm1, %v2191_v54, 0.0  ;;  %v2193_v58 = vpop.eup %2192 }
 0x265   : > { %1047 = vadd.xlane.f32.xlu0 %v1046_v56  ;;  %2194 = vpow2.f32 %v1100_v57  ;;  %v990_v59 = vsel %vm907_vm1, %v2193_v58, 0.0 }
 0x268   : > { %996 = vrot.lane.b32.xlu1 %v2857_v6, %s2611_s26  ;;  %v1109_v4 = vpop.permute.xlu2 %1108 }
 0x269   : > { %v1114_v8 = vsel %vm944_vm3, %v1109_v4, 0 }
 0x26b   : > { %v2195_v60 = vpop.eup %2194 }
 0x26c   : > { %v1102_v61 = vsel %vm907_vm1, %v2195_v60, 0.0 }
 0x26d   : > { %991 = vadd.xlane.f32.xlu0 %v990_v59  ;;  %v2029_v59 = vld [vmem:[%s3047_s8 + $0x8] sm:$0xff] }
 0x275   : > { %1103 = vadd.xlane.f32.xlu0 %v1102_v61 }
 0x289   : > { %1052 = vrot.lane.b32.xlu0 %v2857_v6, %s2612_s1 }
 0x2c2   : > { %v935_v62 = vpop.xlane.xlu1 %934 }
 0x2c3   : > { %2196 = vrcp.f32 %v935_v62 }
 0x2c9   : > { %v2197_v63 = vpop.eup %2196 }
 0x2ca   : > { %v937_v0 = vmul.f32 %v2197_v63, %v2189_v43 }
 0x2cc   : > { %v938_v1 = vpack.c.bf16 %v937_v0, %v937_v0 }
 0x2ce   : > { %1945 = vmatmul.msk.bf16.vlgmr.msra.gmra.mxu2 %vm907_vm1, %v938_v1 }
 0x2d8   : > { %v1048_v3 = vpop.xlane.xlu0 %1047 }
 0x2da   : > { %v997_v5 = vpop.permute.xlu1 %996 }
 0x2db   : > { %v1002_v7 = vsel %vm944_vm3, %v997_v5, 0 }
 0x2dc   : > { %1011 = vmatpush.bf16.msrb.mxu2 %v1002_v7 }
 0x2e0   : > { %1123 = vmatpush.bf16.msra.mxu2 %v1114_v8  ;;  %v992_v9 = vpop.xlane.xlu0 %991  ;;  %v2177_v8 = vld [vmem:[#allocation2] ss:$0 sm:$0xff] }
 0x2e1   : > { %2198 = vrcp.f32 %v992_v9 }
 0x2e7   : > { %v2199_v10 = vpop.eup %2198 }
 0x2e8   : > { %v994_v6 = vmul.f32 %v2199_v10, %v2193_v58  ;;  %v1104_v11 = vpop.xlane.xlu0 %1103  ;;  %v2178_v10 = vld [vmem:[#allocation4] ss:$0 sm:$0xff] }
 0x2e9   : > { %2200 = vrcp.f32 %v1104_v11 }
 0x2ea   : > { %v995_v12 = vpack.c.bf16 %v994_v6, %v994_v6  ;;  %2202 = vrcp.f32 %v1048_v3 }
 0x2eb   : > { %2204 = vrcp.f32 %v2616_v45 }
 0x2ec   : > { %1947 = vmatmul.msk.bf16.vlgmr.msrb.gmra.mxu2 %vm907_vm1, %v995_v12 }
 0x2ef   : > { %v2201_v13 = vpop.eup %2200 }
 0x2f0   : > { %v1106_v14 = vmul.f32 %v2201_v13, %v2195_v60  ;;  %v2203_v15 = vpop.eup %2202  ;;  %v2028_v60 = vld [vmem:[%s3047_s8] sm:$0xff] }
 0x2f1   : > { %v1050_v16 = vmul.f32 %v2203_v15, %v2191_v54  ;;  %v2205_v2 = vpop.eup %2204 }
 0x2f2   : > { %v1107_v17 = vpack.c.bf16 %v1106_v14, %v1106_v14  ;;  %v1190_v48 = vmul.f32 32.0, %v2205_v2  ;;  %vm1194_vm6 = vweird.f32 %v2205_v2  ;;  %v2179_v14 = vld [vmem:[#allocation7] ss:$0 sm:$0xff] }
 0x2f3   : > { %v1051_v20 = vpack.c.bf16 %v1050_v16, %v1050_v16 }
 0x2f4   : > { %v1191_v49 = vsub.f32 1.0, %v1190_v48 }
 0x2f6   : > { %v1192_v50 = vmul.f32 %v2205_v2, %v1191_v49 }
 0x2f8   : > { %v1193_v51 = vadd.f32 %v2205_v2, %v1192_v50 }
 0x2fa   : > { %v2926_v52 = vsel %vm1194_vm6, %v2205_v2, %v1193_v51 }
 0x2fb   : > { %v1053_v18 = vpop.permute.xlu0 %1052 }
 0x2fc   : > { %1951 = vmatmul.msk.bf16.vlgmr.msra.gmra.mxu2 %vm907_vm1, %v1107_v17  ;;  %v1058_v19 = vsel %vm944_vm3, %v1053_v18, 0 }
 0x2fd   : > { %1067 = vmatpush.bf16.msrb.mxu1 %v1058_v19 }
 0x300   : > { %1949 = vmatmul.msk.bf16.vlgmr.msrb.gmra.mxu1 %vm907_vm1, %v1051_v20  ;;  %v2180_v20 = vld [vmem:[#allocation6] ss:$0 sm:$0xff] }
 0x301   : > { %1253 = vmatpush.bf16.msra.mxu1 %v2029_v59 }
 0x305   : > { %1254 = vmatpush.bf16.msra.mxu1 %v2028_v60 }
 0x351   : > { %v957_v21 = vpop.f32.mrf.mxu2 }
 0x359   : > { %v959_v22 = vpop.f32.mrf.mxu2 }
 0x36f   : > { %v1013_v23 = vpop.f32.mrf.mxu2 }
 0x370   : > { %1130 = vrot.lane.b32.xlu1 %v1013_v23, %s3066_s5 }
 0x377   : > { %v1015_v24 = vpop.f32.mrf.mxu2 }
 0x37d   : > { %v1069_v25 = vpop.f32.mrf.mxu1 }
 0x37e   : > { %1134 = vrot.lane.b32.xlu2 %v1069_v25, %s3065_s30  ;;  %s855_s30 = scalar_lea.vmem %s3061_s22, %s2841_s2 }
 0x37f   : > { %v1125_v26 = vpop.f32.mrf.mxu2 }
 0x380   : > { %1138 = vrot.lane.b32.xlu1 %v1125_v26, %s3064_s4  ;;  %s3088_s4 = sld [smem:[#allocation30_spill]] }
 0x385   : > { %v1071_v27 = vpop.f32.mrf.mxu1 }
 0x386   : > { %v2176_v38 = vld [vmem:[%s3088_s4] ss:$0 sm:$0xff]  ;;  %s3089_s4 = sld [smem:[#allocation26_spill]] }
 0x387   : > { %v1127_v28 = vpop.f32.mrf.mxu2 }
 0x38c   : > { %s851_s29 = scalar_lea.vmem %s3089_s4, %s2841_s2 }
 0x38d   : > { %v859_v58 = vld [vmem:[%s851_s29] sm:$0xf] }
 0x38e   : > { %1978 = vmatmul.msk.bf16.vlgmr.msra.gmra.mxu3 %vm880_vm0, %v859_v58 }
 0x3d8   : > { %v1135_v33 = vpop.permute.xlu2 %1134 }
 0x3e2   : > { %v1131_v31 = vpop.permute.xlu1 %1130 }
 0x3e3   : > { %v1141_v32 = vsel %vm907_vm1, %v957_v21, %v1131_v31 }
 0x3e4   : > { %v1143_v35 = vsel %vm1142_vm4, %v1141_v32, %v1135_v33 }
 0x3f2   : > { %v1139_v34 = vpop.permute.xlu1 %1138 }
 0x3f3   : > { %v1145_v36 = vsel %vm1144_vm5, %v1143_v35, %v1139_v34 }
 0x3f4   : > { %v1146_v37 = vpack.c.bf16 %v1145_v36, %v1145_v36 }
 0x3f6   : > { %1960 = vmatmul.msk.bf16.vlgmr.msra.gmra.mxu0 %vm880_vm0, %v1146_v37 }
 0x411   : > { %v1292_v15 = vpop.f32.mrf.mxu3 }
 0x412   : > { %v1293_v16 = vadd.f32 %v2179_v14, %v1292_v15 }
 0x414   : > { %v2947_v17 = vpack.c.bf16 %v1293_v16, %v1293_v16 }
 0x416   : > { %1354 = vrot.lane.b32.xlu0 %v2947_v17, %s2602_s6  ;;  %v1302_v18 = vsel %vm907_vm1, %v2947_v17, 0 }
 0x417   : > { %1311 = vmatpush.bf16.xpose.msrb.mxu2 %v1302_v18 }
 0x419   : > { %v1294_v19 = vpop.f32.mrf.mxu3 }
 0x41e   : > { %1410 = vrot.lane.b32.xlu0 %v2947_v17, %s2607_s25 }
 0x473   : > { %v1179_v40 = vpop.f32.mrf.mxu0 }
 0x474   : > { %v1180_v41 = vadd.f32 %v2176_v38, %v1179_v40 }
 0x476   : > { %v1183_v42 = vadd.f32 %v1180_v41, %v858_v39 }
 0x478   : > { %v1186_v43 = vsel %vm880_vm0, %v1183_v42, 0.0 }
 0x479   : > { %1187 = vadd.xlane.f32.xlu2 %v1186_v43 }
 0x47b   : > { %v1181_v44 = vpop.f32.mrf.mxu0 }
 0x488   : > { %v1355_v25 = vpop.permute.xlu0 %1354 }
 0x489   : > { %v1360_v26 = vsel %vm907_vm1, %v1355_v25, 0 }
 0x48a   : > { %1369 = vmatpush.bf16.xpose.msrb.mxu1 %v1360_v26 }
 0x490   : > { %v1411_v27 = vpop.permute.xlu0 %1410 }
 0x491   : > { %v1416_v28 = vsel %vm907_vm1, %v1411_v27, 0 }
 0x492   : > { %1425 = vmatpush.bf16.xpose.msra.mxu2 %v1416_v28 }
 0x4ec   : > { %v1188_v53 = vpop.xlane.xlu2 %1187 }
 0x4ed   : > { %v1196_v54 = vmul.f32 %v2926_v52, %v1188_v53 }
 0x4ef   : > { %v1197_v55 = vsub.f32 %v1183_v42, %v1196_v54 }
 0x4f1   : > { %v1198_v56 = vmul.f32 %v1197_v55, %v1197_v55 }
 0x4f3   : > { %v1199_v57 = vsel %vm880_vm0, %v1198_v56, 0.0 }
 0x4f4   : > { %1200 = vadd.xlane.f32.xlu1 %v1199_v57 }
 0x567   : > { %v1201_v61 = vpop.xlane.xlu1 %1200 }
 0x568   : > { %v1202_v62 = vmul.f32 %v1201_v61, %v2926_v52 }
 0x56a   : > { %v1203_v63 = vadd.f32 1e-05, %v1202_v62 }
 0x56c   : > { %2206 = vrsqrt.f32 %v1203_v63  ;;  %vm1210_vm8 = vweird.f32 %v1203_v63 }
 0x572   : > { %v2207_v0 = vpop.eup %2206 }
 0x573   : > { %v1205_v1 = vmul.f32 %v2207_v0, %v1203_v63  ;;  %vm1211_vm7 = vweird.f32 %v2207_v0 }
 0x574   : > { %vm1212_vm9 = vmor %vm1210_vm8, %vm1211_vm7 }
 0x575   : > { %v1206_v3 = vmul.f32 %v2207_v0, %v1205_v1 }
 0x577   : > { %v1207_v4 = vmul.f32 0.5, %v1206_v3 }
 0x579   : > { %v1208_v5 = vsub.f32 1.5, %v1207_v4 }
 0x57b   : > { %v1209_v7 = vmul.f32 %v2207_v0, %v1208_v5 }
 0x57d   : > { %v1213_v9 = vsel %vm1212_vm9, %v2207_v0, %v1209_v7 }
 0x57e   : > { %v1214_v6 = vmul.f32 %v1213_v9, %v1197_v55 }
 0x580   : > { %v1218_v11 = vmul.f32 %v2177_v8, %v1214_v6 }
 0x582   : > { %v2942_v12 = vadd.f32 %v2178_v10, %v1218_v11 }
 0x584   : > { %v1223_v13 = vpack.c.bf16 %v2942_v12, %v2942_v12 }
 0x586   : > { %1969 = vmatmul.msk.bf16.vlgmr.msra.gmra.mxu1 %vm880_vm0, %v1223_v13 }
 0x603   : > { %v1256_v21 = vpop.f32.mrf.mxu1 }
 0x604   : > { %v1257_v22 = vadd.f32 %v2180_v20, %v1256_v21 }
 0x606   : > { %v1296_v23 = vpack.c.bf16 %v1257_v22, %v1257_v22 }
 0x608   : > { %1464 = vrot.lane.b32.xlu2 %v1296_v23, %s2601_s11  ;;  %1352 = vrot.lane.b32.xlu0 %v1296_v23, %s2602_s6  ;;  %s3091_s6 = smov 8  }
 0x609   : > { %1979 = vmatmul.msk.bf16.vlgmr.msrb.gmra.mxu2 %vm907_vm1, %v1296_v23 }
 0x60b   : > { %v1258_v24 = vpop.f32.mrf.mxu1 }
 0x610   : > { %1466 = vrot.lane.b32.xlu0 %v2947_v17, %s2601_s11  ;;  %s3090_s11 = smov 80  }
 0x618   : > { %1408 = vrot.lane.b32.xlu0 %v1296_v23, %s2607_s25 }
 0x662   : > { %v1465_v32 = vpop.permute.xlu2 %1464 }
 0x67a   : > { %v1353_v29 = vpop.permute.xlu0 %1352 }
 0x67b   : > { %1981 = vmatmul.msk.bf16.vlgmr.msrb.gmra.mxu1 %vm907_vm1, %v1353_v29 }
 0x682   : > { %v1467_v30 = vpop.permute.xlu0 %1466 }
 0x683   : > { %v1472_v31 = vsel %vm907_vm1, %v1467_v30, 0 }
 0x684   : > { %1481 = vmatpush.bf16.xpose.msra.mxu1 %v1472_v31 }
 0x68a   : > { %v1409_v33 = vpop.permute.xlu0 %1408 }
 0x68b   : > { %1983 = vmatmul.msk.bf16.vlgmr.msra.gmra.mxu2 %vm907_vm1, %v1409_v33  ;;  %1985 = vmatmul.msk.bf16.vlgmr.msra.gmra.mxu1 %vm907_vm1, %v1465_v32 }
 0x68c   : > { %v1313_v34 = vpop.f32.mrf.mxu2 }
 0x68d   : > { %v1317_v35 = vsel %vm907_vm1, %v1313_v34, -inf }
 0x68e   : > { %1318 = vmax.xlane.f32.xlu0 %v1317_v35 }
 0x694   : > { %v1315_v36 = vpop.f32.mrf.mxu2 }
 0x695   : > { %v2033_v36 = vld [vmem:[%s3051_s12 + $0x8] sm:$0xff] }
 0x696   : > { %1565 = vmatpush.bf16.msrb.mxu2 %v2033_v36 }
 0x6a2   : > { %1330 = vrot.lane.b32.xlu0 %v2947_v17, %s2603_s23  ;;  %s3092_s23 = smov 16  }
 0x6aa   : > { %1499 = vrot.lane.b32.xlu0 %v2947_v17, %s2605_s0 }
 0x6f8   : > { %v1371_v37 = vpop.f32.mrf.mxu1 }
 0x6f9   : > { %v1375_v38 = vsel %vm907_vm1, %v1371_v37, -inf }
 0x6fa   : > { %1376 = vmax.xlane.f32.xlu1 %v1375_v38 }
 0x700   : > { %v1373_v39 = vpop.f32.mrf.mxu1 }
 0x701   : > { %v1319_v41 = vpop.xlane.xlu0 %1318 }
 0x702   : > { %v1320_v42 = vsub.f32 %v1313_v34, %v1319_v41 }
 0x704   : > { %v1321_v46 = vmul.f32 1.442695, %v1320_v42 }
 0x706   : > { %2208 = vpow2.f32 %v1321_v46 }
 0x708   : > { %v1483_v40 = vpop.f32.mrf.mxu1 }
 0x709   : > { %v1487_v49 = vsel %vm907_vm1, %v1483_v40, -inf }
 0x70c   : > { %v2209_v50 = vpop.eup %2208 }
 0x70d   : > { %v1323_v51 = vsel %vm907_vm1, %v2209_v50, 0.0 }
 0x70e   : > { %v1427_v43 = vpop.f32.mrf.mxu2 }
 0x70f   : > { %v1431_v44 = vsel %vm907_vm1, %v1427_v43, -inf }
 0x710   : > { %v1485_v45 = vpop.f32.mrf.mxu1  ;;  %1432 = vmax.xlane.f32.xlu1 %v1431_v44 }
 0x711   : > { %v2181_v45 = vld [vmem:[#allocation9] ss:$0 sm:$0xff] }
 0x714   : > { %v1331_v47 = vpop.permute.xlu0 %1330 }
 0x715   : > { %v1336_v2 = vsel %vm944_vm3, %v1331_v47, 0 }
 0x716   : > { %1345 = vmatpush.bf16.msrb.mxu0 %v1336_v2  ;;  %v1429_v48 = vpop.f32.mrf.mxu2 }
 0x718   : > { %1488 = vmax.xlane.f32.xlu1 %v1487_v49 }
 0x71c   : > { %v1500_v10 = vpop.permute.xlu0 %1499 }
 0x71d   : > { %v1505_v13 = vsel %vm944_vm3, %v1500_v10, 0 }
 0x720   : > { %1324 = vadd.xlane.f32.xlu1 %v1323_v51 }
 0x739   : > { %1387 = vrot.lane.b32.xlu1 %v2947_v17, %s2606_s27 }
 0x76d   : > { %v1377_v53 = vpop.xlane.xlu1 %1376 }
 0x76e   : > { %v1378_v54 = vsub.f32 %v1371_v37, %v1377_v53  ;;  %v2032_v37 = vld [vmem:[%s3051_s12] sm:$0xff] }
 0x76f   : > { %1566 = vmatpush.bf16.msrb.mxu2 %v2032_v37 }
 0x770   : > { %v1379_v55 = vmul.f32 1.442695, %v1378_v54 }
 0x772   : > { %2210 = vpow2.f32 %v1379_v55 }
 0x778   : > { %v2211_v56 = vpop.eup %2210 }
 0x779   : > { %v1381_v57 = vsel %vm907_vm1, %v2211_v56, 0.0 }
 0x77a   : > { %1382 = vadd.xlane.f32.xlu2 %v1381_v57  ;;  %v2039_v57 = vld [vmem:[%s3057_s18 + $0x18] sm:$0xff] }
 0x77b   : > { %1688 = vmatpush.bf16.msrb.mxu1 %v2039_v57 }
 0x783   : > { %v1433_v58 = vpop.xlane.xlu1 %1432 }
 0x784   : > { %v1434_v59 = vsub.f32 %v1427_v43, %v1433_v58 }
 0x786   : > { %v1435_v60 = vmul.f32 1.442695, %v1434_v59 }
 0x788   : > { %2212 = vpow2.f32 %v1435_v60  ;;  %v2038_v60 = vld [vmem:[%s3057_s18 + $0x10] sm:$0xff] }
 0x789   : > { %1689 = vmatpush.bf16.msrb.mxu1 %v2038_v60 }
 0x78b   : > { %v1489_v61 = vpop.xlane.xlu1 %1488 }
 0x78c   : > { %v1490_v62 = vsub.f32 %v1483_v40, %v1489_v61 }
 0x78e   : > { %v2213_v63 = vpop.eup %2212  ;;  %v1491_v0 = vmul.f32 1.442695, %v1490_v62 }
 0x78f   : > { %v1437_v1 = vsel %vm907_vm1, %v2213_v63, 0.0 }
 0x790   : > { %2214 = vpow2.f32 %v1491_v0  ;;  %1438 = vadd.xlane.f32.xlu2 %v1437_v1 }
 0x793   : > { %v1325_v3 = vpop.xlane.xlu1 %1324 }
 0x794   : > { %2216 = vrcp.f32 %v1325_v3 }
 0x796   : > { %v2215_v4 = vpop.eup %2214 }
 0x797   : > { %v1493_v5 = vsel %vm907_vm1, %v2215_v4, 0.0 }
 0x798   : > { %1494 = vadd.xlane.f32.xlu1 %v1493_v5  ;;  %v2182_v5 = vld [vmem:[#allocation10] ss:$0 sm:$0xff] }
 0x79a   : > { %v2217_v7 = vpop.eup %2216 }
 0x79b   : > { %v1327_v8 = vmul.f32 %v2217_v7, %v2209_v50 }
 0x79d   : > { %v1328_v9 = vpack.c.bf16 %v1327_v8, %v1327_v8  ;;  %v2183_v8 = vld [vmem:[#allocation12] ss:$0 sm:$0xff] }
 0x79f   : > { %1980 = vmatmul.msk.bf16.vlgmr.msrb.gmra.mxu0 %vm907_vm1, %v1328_v9 }
 0x7a8   : > { %1443 = vrot.lane.b32.xlu2 %v2947_v17, %s3090_s11 }
 0x7ab   : > { %v1388_v6 = vpop.permute.xlu1 %1387 }
 0x7ac   : > { %v1393_v11 = vsel %vm944_vm3, %v1388_v6, 0 }
 0x7ad   : > { %1402 = vmatpush.bf16.msrb.mxu3 %v1393_v11 }
 0x7b1   : > { %1514 = vmatpush.bf16.msra.mxu3 %v1505_v13  ;;  %v2037_v13 = vld [vmem:[%s3057_s18 + $0x8] sm:$0xff] }
 0x7b2   : > { %1690 = vmatpush.bf16.msrb.mxu1 %v2037_v13 }
 0x7ed   : > { %v1383_v14 = vpop.xlane.xlu2 %1382 }
 0x7ee   : > { %2218 = vrcp.f32 %v1383_v14  ;;  %v2036_v14 = vld [vmem:[%s3057_s18] sm:$0xff] }
 0x7ef   : > { %1691 = vmatpush.bf16.msrb.mxu1 %v2036_v14 }
 0x7f4   : > { %v2219_v15 = vpop.eup %2218 }
 0x7f5   : > { %v1385_v16 = vmul.f32 %v2219_v15, %v2211_v56  ;;  %v2035_v56 = vld [vmem:[%s3055_s16 + $0x8] sm:$0xff] }
 0x7f6   : > { %v2184_v15 = vld [vmem:[#allocation13] ss:$0 sm:$0xff] }
 0x7f7   : > { %v1386_v18 = vpack.c.bf16 %v1385_v16, %v1385_v16 }
 0x7f9   : > { %1982 = vmatmul.msk.bf16.vlgmr.msrb.gmra.mxu3 %vm907_vm1, %v1386_v18 }
 0x803   : > { %v1439_v19 = vpop.xlane.xlu2 %1438 }
 0x804   : > { %2220 = vrcp.f32 %v1439_v19 }
 0x80a   : > { %v2221_v20 = vpop.eup %2220 }
 0x80b   : > { %v1441_v21 = vmul.f32 %v2221_v20, %v2213_v63  ;;  %v1444_v17 = vpop.permute.xlu2 %1443  ;;  %v1495_v22 = vpop.xlane.xlu1 %1494 }
 0x80c   : > { %v1449_v23 = vsel %vm944_vm3, %v1444_v17, 0  ;;  %2222 = vrcp.f32 %v1495_v22  ;;  %v2185_v17 = vld [vmem:[#allocation15] ss:$0 sm:$0xff] }
 0x80d   : > { %v1442_v24 = vpack.c.bf16 %v1441_v21, %v1441_v21  ;;  %1458 = vmatpush.bf16.msra.mxu0 %v1449_v23 }
 0x810   : > { %1984 = vmatmul.msk.bf16.vlgmr.msra.gmra.mxu0 %vm907_vm1, %v1442_v24 }
 0x811   : > { %1635 = vmatpush.bf16.msrb.mxu0 %v2035_v56 }
 0x812   : > { %v2223_v25 = vpop.eup %2222 }
 0x813   : > { %v1497_v26 = vmul.f32 %v2223_v25, %v2215_v4 }
 0x815   : > { %v1498_v27 = vpack.c.bf16 %v1497_v26, %v1497_v26 }
 0x817   : > { %1986 = vmatmul.msk.bf16.vlgmr.msra.gmra.mxu3 %vm907_vm1, %v1498_v27 }
 0x81c   : > { %v1347_v28 = vpop.f32.mrf.mxu0 }
 0x824   : > { %v1349_v29 = vpop.f32.mrf.mxu0 }
 0x87c   : > { %v1404_v30 = vpop.f32.mrf.mxu3 }
 0x87d   : > { %1521 = vrot.lane.b32.xlu0 %v1404_v30, %s3091_s6 }
 0x884   : > { %v1406_v31 = vpop.f32.mrf.mxu3 }
 0x88d   : > { %v1460_v32 = vpop.f32.mrf.mxu0 }
 0x88e   : > { %1525 = vrot.lane.b32.xlu0 %v1460_v32, %s3092_s23 }
 0x895   : > { %v1462_v33 = vpop.f32.mrf.mxu0 }
 0x89a   : > { %v1516_v34 = vpop.f32.mrf.mxu3 }
 0x89b   : > { %1529 = vrot.lane.b32.xlu0 %v1516_v34, %s3093_s7 }
 0x8a2   : > { %v1518_v35 = vpop.f32.mrf.mxu3 }
 0x8ef   : > { %v1522_v38 = vpop.permute.xlu0 %1521 }
 0x8f0   : > { %v1532_v40 = vsel %vm907_vm1, %v1347_v28, %v1522_v38 }
 0x900   : > { %v1526_v39 = vpop.permute.xlu0 %1525 }
 0x901   : > { %v1533_v41 = vsel %vm1142_vm4, %v1532_v40, %v1526_v39 }
 0x90d   : > { %v1530_v42 = vpop.permute.xlu0 %1529 }
 0x90e   : > { %v1534_v43 = vsel %vm1144_vm5, %v1533_v41, %v1530_v42  ;;  %v2186_v41 = vld [vmem:[#allocation16] ss:$0 sm:$0xff] }
 0x90f   : > { %v1535_v44 = vpack.c.bf16 %v1534_v43, %v1534_v43  ;;  %v2187_v43 = vld [vmem:[#allocation18] ss:$0 sm:$0xff] }
 0x911   : > { %1995 = vmatmul.msk.bf16.vlgmr.msrb.gmra.mxu2 %vm880_vm0, %v1535_v44 }
 0x994   : > { %v1568_v46 = vpop.f32.mrf.mxu2 }
 0x995   : > { %v1569_v47 = vadd.f32 %v2181_v45, %v1568_v46 }
 0x997   : > { %v1572_v2 = vadd.f32 %v1569_v47, %v2942_v12  ;;  %v2034_v12 = vld [vmem:[%s3055_s16] sm:$0xff] }
 0x998   : > { %1636 = vmatpush.bf16.msrb.mxu0 %v2034_v12 }
 0x999   : > { %v1575_v48 = vsel %vm880_vm0, %v1572_v2, 0.0 }
 0x99a   : > { %1576 = vadd.xlane.f32.xlu2 %v1575_v48 }
 0x99c   : > { %v1570_v49 = vpop.f32.mrf.mxu2 }
 0xa0d   : > { %v1577_v50 = vpop.xlane.xlu2 %1576 }
 0xa0e   : > { %v1578_v51 = vmul.f32 %v1577_v50, %v2926_v52 }
 0xa10   : > { %v1579_v53 = vsub.f32 %v1572_v2, %v1578_v51 }
 0xa12   : > { %v1580_v54 = vmul.f32 %v1579_v53, %v1579_v53 }
 0xa14   : > { %v1581_v55 = vsel %vm880_vm0, %v1580_v54, 0.0 }
 0xa15   : > { %1582 = vadd.xlane.f32.xlu0 %v1581_v55 }
 0xa88   : > { %v1583_v58 = vpop.xlane.xlu0 %1582 }
 0xa89   : > { %v1584_v59 = vmul.f32 %v1583_v58, %v2926_v52 }
 0xa8b   : > { %v1585_v61 = vadd.f32 1e-05, %v1584_v59 }
 0xa8d   : > { %2224 = vrsqrt.f32 %v1585_v61  ;;  %vm1592_vm11 = vweird.f32 %v1585_v61 }
 0xa93   : > { %v2225_v62 = vpop.eup %2224 }
 0xa94   : > { %v1587_v63 = vmul.f32 %v2225_v62, %v1585_v61  ;;  %vm1593_vm10 = vweird.f32 %v2225_v62 }
 0xa95   : > { %vm1594_vm12 = vmor %vm1592_vm11, %vm1593_vm10 }
 0xa96   : > { %v1588_v0 = vmul.f32 %v2225_v62, %v1587_v63 }
 0xa98   : > { %v1589_v1 = vmul.f32 0.5, %v1588_v0 }
 0xa9a   : > { %v1590_v3 = vsub.f32 1.5, %v1589_v1 }
 0xa9c   : > { %v1591_v4 = vmul.f32 %v2225_v62, %v1590_v3 }
 0xa9e   : > { %v1595_v7 = vsel %vm1594_vm12, %v2225_v62, %v1591_v4 }
 0xa9f   : > { %v1596_v9 = vmul.f32 %v1595_v7, %v1579_v53 }
 0xaa1   : > { %v1600_v10 = vmul.f32 %v2182_v5, %v1596_v9 }
 0xaa3   : > { %v1604_v6 = vadd.f32 %v2183_v8, %v1600_v10 }
 0xaa5   : > { %v1605_v11 = vpack.c.bf16 %v1604_v6, %v1604_v6 }
 0xaa7   : > { %2004 = vmatmul.msk.bf16.vlgmr.msrb.gmra.mxu0 %vm880_vm0, %v1605_v11 }
 0xb24   : > { %v1638_v16 = vpop.f32.mrf.mxu0 }
 0xb25   : > { %v1639_v18 = vadd.f32 %v2184_v15, %v1638_v16 }
 0xb27   : > { %v1642_v19 = vmax.f32 %v1639_v18, 0.0 }
 0xb29   : > { %v1643_v20 = vpack.c.bf16 %v1642_v19, %v1642_v19 }
 0xb2b   : > { %2021 = vmatmul.msk.bf16.vlgmr.msrb.gmra.mxu1 %vm1680_vm13, %v1643_v20 }
 0xb2c   : > { %v1640_v21 = vpop.f32.mrf.mxu0 }
 0xba8   : > { %v1693_v22 = vpop.f32.mrf.mxu1 }
 0xba9   : > { %v1694_v23 = vadd.f32 %v2185_v17, %v1693_v22 }
 0xbab   : > { %v1697_v24 = vadd.f32 %v1694_v23, %v1604_v6 }
 0xbad   : > { %v1700_v25 = vsel %vm880_vm0, %v1697_v24, 0.0 }
 0xbae   : > { %1701 = vadd.xlane.f32.xlu1 %v1700_v25 }
 0xbb0   : > { %v1695_v26 = vpop.f32.mrf.mxu1 }
 0xc21   : > { %v1702_v27 = vpop.xlane.xlu1 %1701 }
 0xc22   : > { %v1703_v28 = vmul.f32 %v1702_v27, %v2926_v52 }
 0xc24   : > { %v1704_v29 = vsub.f32 %v1697_v24, %v1703_v28 }
 0xc26   : > { %v1705_v30 = vmul.f32 %v1704_v29, %v1704_v29 }
 0xc28   : > { %v1706_v31 = vsel %vm880_vm0, %v1705_v30, 0.0  ;;  %vm1731_vm0 = vcmask 257024  }
 0xc29   : > { %1707 = vadd.xlane.f32.xlu1 %v1706_v31 }
 0xc9c   : > { %v1708_v32 = vpop.xlane.xlu1 %1707 }
 0xc9d   : > { %v1709_v33 = vmul.f32 %v1708_v32, %v2926_v52 }
 0xc9f   : > { %v1710_v34 = vadd.f32 1e-05, %v1709_v33 }
 0xca1   : > { %2226 = vrsqrt.f32 %v1710_v34  ;;  %vm1717_vm15 = vweird.f32 %v1710_v34 }
 0xca7   : > { %v2227_v35 = vpop.eup %2226 }
 0xca8   : > { %v1712_v36 = vmul.f32 %v2227_v35, %v1710_v34  ;;  %vm1718_vm14 = vweird.f32 %v2227_v35 }
 0xca9   : > { %vm1719_vm1 = vmor %vm1717_vm15, %vm1718_vm14 }
 0xcaa   : > { %v1713_v37 = vmul.f32 %v2227_v35, %v1712_v36 }
 0xcac   : > { %v1714_v38 = vmul.f32 0.5, %v1713_v37 }
 0xcae   : > { %v1715_v39 = vsub.f32 1.5, %v1714_v38 }
 0xcb0   : > { %v1716_v40 = vmul.f32 %v2227_v35, %v1715_v39 }
 0xcb2   : > { %v1720_v42 = vsel %vm1719_vm1, %v2227_v35, %v1716_v40 }
 0xcb3   : > { %v1721_v44 = vmul.f32 %v1720_v42, %v1704_v29 }
 0xcb5   : > { %v1725_v45 = vmul.f32 %v2186_v41, %v1721_v44 }
 0xcb7   : > { %v1729_v46 = vadd.f32 %v2187_v43, %v1725_v45 }
 0xcb9   : > { %v1730_v52 = vpack.c.bf16 %v1729_v46, %v1729_v46 }
 0xcbb   : > { %1732 = vst.msk [vmem:[%s855_s30] sm:$0xf] %vm1731_vm0, %v1730_v52 }
 0xcbc PF: > { %s38_s3 = sadd.s32 1, %s2588_s3  }
 0xcbd   : > { %p35_p7 = scmp.ge.s32.totalorder %s38_s3, 4  }
 0xcbf   :  { %37 = sbr.rel (!%p35_p7) target bundleno = 17 (0x11), region = 186 }
 0xcc4   :  { %1752 = vsyncpa [#allocation3], 1 }
 0xcc5   :  { %1754 = vsyncpa [#allocation3 + $0x1], 1 }
 0xcc6   :  { %1755 = vsyncpa [#allocation5], 1 }
 0xcc7   :  { %1756 = vsyncpa [#allocation8], 1 }
 0xcc8   :  { %1757 = vsyncpa [#allocation11], 1 }
 0xcc9   :  { %1758 = vsyncpa [#allocation14], 1 }
 0xcca   :  { %1759 = vsyncpa [#allocation17], 1 }

// kernel: transformer_forward.10
= control target key start
LH: loop header
LB: loop body
LE: loop exit
PB: predicated region body
PF: predicated region fallthrough
CT: control target
= control target key end

     0   :  { %s3185_s0 = inlined_call_operand.vmem [shape: bf16[16,32], index: 0, kind: input, shape index: {}]   ;;  %s3186_s1 = inlined_call_operand.vmem [shape: bf16[16,32], index: 1, kind: input, shape index: {}]   ;;  %s3187_s2 = inlined_call_operand.vmem [shape: bf16[32,96], index: 2, kind: input, shape index: {}]   ;;  %s3188_s3 = inlined_call_operand.hbm [shape: f32[1,96], index: 3, kind: input, shape index: {}]   ;;  %s3189_s4 = inlined_call_operand.vmem [shape: bf16[32,32], index: 4, kind: input, shape index: {}]   ;;  %s3190_s5 = inlined_call_operand.hbm [shape: f32[1,32], index: 5, kind: input, shape index: {}]   ;;  %s3191_s6 = inlined_call_operand.hbm [shape: f32[1,32], index: 6, kind: input, shape index: {}]   ;;  %s3192_s7 = inlined_call_operand.hbm [shape: f32[1,32], index: 7, kind: input, shape index: {}]   ;;  %s3193_s8 = inlined_call_operand.vmem [shape: bf16[32,32], index: 8, kind: input, shape index: {}]   ;;  %s3194_s9 = inlined_call_operand.hbm [shape: f32[1,32], index: 9, kind: input, shape index: {}]   ;;  %s3195_s10 = inlined_call_operand.vmem [shape: bf16[32,64], index: 10, kind: input, shape index: {}]   ;;  %s3196_s11 = inlined_call_operand.hbm [shape: f32[1,64], index: 11, kind: input, shape index: {}]   ;;  %s3197_s12 = inlined_call_operand.vmem [shape: bf16[32,32], index: 12, kind: input, shape index: {}]   ;;  %s3198_s13 = inlined_call_operand.hbm [shape: f32[1,32], index: 13, kind: input, shape index: {}]   ;;  %s3199_s14 = inlined_call_operand.hbm [shape: f32[1,32], index: 14, kind: input, shape index: {}]   ;;  %s3200_s15 = inlined_call_operand.hbm [shape: f32[1,32], index: 15, kind: input, shape index: {}]   ;;  %s3201_s16 = inlined_call_operand.vmem [shape: bf16[32,64], index: 16, kind: input, shape index: {}]   ;;  %s3202_s17 = inlined_call_operand.hbm [shape: f32[1,64], index: 17, kind: input, shape index: {}]   ;;  %s3203_s18 = inlined_call_operand.vmem [shape: bf16[64,32], index: 18, kind: input, shape index: {}]   ;;  %s3204_s19 = inlined_call_operand.hbm [shape: f32[1,32], index: 19, kind: input, shape index: {}]   ;;  %s3205_s20 = inlined_call_operand.hbm [shape: f32[1,32], index: 20, kind: input, shape index: {}]   ;;  %s3206_s21 = inlined_call_operand.hbm [shape: f32[1,32], index: 21, kind: input, shape index: {}]   ;;  %s3207_s22 = inlined_call_operand.vmem [shape: bf16[16,32], index: 22, kind: output, shape index: {}]  }
   0x1   :  { %3214 = sst [smem:[#allocation30_spill]] %s3185_s0 }
   0x2   :  { %3215 = sst [smem:[#allocation31_spill]] %s3186_s1 }
   0x3   :  { %3216 = sst [smem:[#allocation32_spill]] %s3187_s2 }
   0x4   :  { %3217 = sst [smem:[#allocation33_spill]] %s3188_s3 }
   0x5   :  { %3218 = sst [smem:[#allocation34_spill]] %s3189_s4 }
   0x6   :  { %3219 = sst [smem:[#allocation35_spill]] %s3190_s5 }
   0x7   :  { %3220 = sst [smem:[#allocation36_spill]] %s3191_s6 }
   0x8   :  { %3221 = sst [smem:[#allocation37_spill]] %s3192_s7 }
   0x9   :  { %3222 = sst [smem:[#allocation38_spill]] %s3196_s11 }
   0xa   :  { %3223 = sst [smem:[#allocation39_spill]] %s3199_s14 }
   0xb   :  { %27 = vsyncpa [#allocation3], 0 }
   0xc   :  { %28 = vsyncpa [#allocation5], 0 }
   0xd   :  { %29 = vsyncpa [#allocation8], 0 }
   0xe   :  { %30 = vsyncpa [#allocation11], 0 }
   0xf   :  { %31 = vsyncpa [#allocation14], 0 }
  0x10   :  { %32 = vsyncpa [#allocation17], 0 }
  0x11   :  { %33 = vsyncpa [#allocation20], 0  ;;  %s2870_s3 = smov 0  }
  0x12 LB: > { %3224 = sst [smem:[#allocation29_spill]] %s2724_s3  ;;  %s2879_s0 = sadd.s32 4294967295, %s2724_s3   ;;  %s2724_s3 = sphi %s2870_s3, %s39_s3  }
  0x13   : > { %s3225_s30 = sld [smem:[#allocation35_spill]]  ;;  %p1955_p0 = scmp.ge.s32.totalorder %s2724_s3, 1 }
  0x14   : > { %p542_p1 = scmp.lt.s32.totalorder %s2724_s3, 3  ;;  %p2184_p2 = scmp.eq.s32.totalorder %s2879_s0, 0 }
  0x15   : > { %s2726_s1 = smov [#allocation4]   ;;  %s3227_s7 = sld [smem:[#allocation37_spill]] }
  0x16   : > { %p2884_p3 = pnand %p1955_p0, %p542_p1  ;;  %s574_s5 = sshll.u32 %s2726_s1, 4  ;;  %s575_s5 = int_to_ptr.vmem [resolvable:$true] %s574_s5 }
  0x17   : > { %s3228_s11 = sld [smem:[#allocation38_spill]]  ;;  %s2727_s29 = smov [#allocation7]  }
  0x18   : > { %p2144_p4 = pneg %p2884_p3  ;;  %s2728_s1 = smov [#allocation10]  }
  0x19   : > { %s572_s4 = sshll.u32 %s3225_s30, 4  ;;  %s598_s30 = sshll.u32 %s2727_s29, 4  ;;  %s573_s4 = int_to_ptr.hbm [resolvable:$true] %s572_s4  ;;  %s599_s30 = int_to_ptr.vmem [resolvable:$true] %s598_s30 }
  0x1a   : > { %p2898_p5 = pnand %p2184_p2, %p2144_p4  ;;  %s628_s24 = sshll.u32 %s2728_s1, 4  ;;  %s629_s24 = int_to_ptr.vmem [resolvable:$true] %s628_s24 }
  0x1b   : > { %s596_s25 = sshll.u32 %s3227_s7, 4  ;;  %s3230_s14 = sld [smem:[#allocation39_spill]]  ;;  %s597_s25 = int_to_ptr.hbm [resolvable:$true] %s596_s25 }
  0x1c   : > { %2150 = dma.hbm_to_vmem [thread:$0]  (!%p2898_p5), %s573_s4, 16, %s575_s5, [#allocation5]  }
  0x1d   : > { %s626_s27 = sshll.u32 %s3228_s11, 4  ;;  %s680_s11 = sshll.u32 %s3202_s17, 4  ;;  %s627_s27 = int_to_ptr.hbm [resolvable:$true] %s626_s27  ;;  %s681_s11 = int_to_ptr.hbm [resolvable:$true] %s680_s11 }
  0x1e   : > { %2156 = dma.hbm_to_vmem [thread:$0]  (!%p2898_p5), %s597_s25, 16, %s599_s30, [#allocation8]  }
  0x1f   : > { %2162 = dma.hbm_to_vmem [thread:$0]  (!%p2898_p5), %s627_s27, 16, %s629_s24, [#allocation11]  }
  0x20   : > { %s2729_s3 = smov [#allocation13]   ;;  %s2730_s5 = smov [#allocation16]  }
  0x21   : > { %s653_s2 = sshll.u32 %s3230_s14, 4  ;;  %s655_s4 = sshll.u32 %s2729_s3, 4  ;;  %s654_s2 = int_to_ptr.hbm [resolvable:$true] %s653_s2  ;;  %s656_s4 = int_to_ptr.vmem [resolvable:$true] %s655_s4 }
  0x22   : > { %2168 = dma.hbm_to_vmem [thread:$0]  (!%p2898_p5), %s654_s2, 16, %s656_s4, [#allocation14]  }
  0x23   : > { %s682_s25 = sshll.u32 %s2730_s5, 4  ;;  %s707_s6 = sshll.u32 %s3205_s20, 4  ;;  %s683_s25 = int_to_ptr.vmem [resolvable:$true] %s682_s25  ;;  %s708_s6 = int_to_ptr.hbm [resolvable:$true] %s707_s6 }
  0x24   : > { %2174 = dma.hbm_to_vmem [thread:$0]  (!%p2898_p5), %s681_s11, 16, %s683_s25, [#allocation17]  }
  0x25   : > { %s3231_s24 = sld [smem:[#allocation33_spill]]  ;;  %s2731_s3 = smov [#allocation19]  }
  0x26   : > { %s709_s29 = sshll.u32 %s2731_s3, 4  ;;  %s2732_s2 = smov [#allocation2]   ;;  %s710_s29 = int_to_ptr.vmem [resolvable:$true] %s709_s29 }
  0x27   : > { %2180 = dma.hbm_to_vmem [thread:$0]  (!%p2898_p5), %s708_s6, 16, %s710_s29, [#allocation20]  }
  0x28   : > { %s559_s4 = sshll.u32 %s2732_s2, 4  ;;  %s3232_s1 = sld [smem:[#allocation36_spill]]  ;;  %s560_s4 = int_to_ptr.vmem [resolvable:$true] %s559_s4 }
  0x29   : > { %s611_s7 = sshll.u32 %s3194_s9, 4  ;;  %s2733_s27 = smov [#allocation6]   ;;  %s612_s7 = int_to_ptr.hbm [resolvable:$true] %s611_s7 }
  0x2a   : > { %s2734_s6 = smov [#allocation9]   ;;  %s641_s5 = sshll.u32 %s3198_s13, 4  ;;  %s642_s5 = int_to_ptr.hbm [resolvable:$true] %s641_s5 }
  0x2b   : > { %s557_s26 = sshll.u32 %s3231_s24, 4  ;;  %s586_s24 = sshll.u32 %s2733_s27, 4  ;;  %s558_s26 = int_to_ptr.hbm [resolvable:$true] %s557_s26  ;;  %s587_s24 = int_to_ptr.vmem [resolvable:$true] %s586_s24 }
  0x2c   : > { %2147 = dma.hbm_to_vmem [thread:$0]  (!%p2898_p5), %s558_s26, 16, %s560_s4, [#allocation3]  }
  0x2d   : > { %s613_s3 = sshll.u32 %s2734_s6, 4  ;;  %s665_s30 = sshll.u32 %s3200_s15, 4  ;;  %s614_s3 = int_to_ptr.vmem [resolvable:$true] %s613_s3  ;;  %s666_s30 = int_to_ptr.hbm [resolvable:$true] %s665_s30 }
  0x2e   : > { %s584_s14 = sshll.u32 %s3232_s1, 4  ;;  %s2735_s1 = smov [#allocation12]   ;;  %s585_s14 = int_to_ptr.hbm [resolvable:$true] %s584_s14 }
  0x2f   : > { %2153 = dma.hbm_to_vmem [thread:$0]  (!%p2898_p5), %s585_s14, 16, %s587_s24, [#allocation5]  }
  0x30   : > { %2159 = dma.hbm_to_vmem [thread:$0]  (!%p2898_p5), %s612_s7, 16, %s614_s3, [#allocation8]  }
  0x31   : > { %s643_s11 = sshll.u32 %s2735_s1, 4  ;;  %s2736_s14 = smov [#allocation15]   ;;  %s644_s11 = int_to_ptr.vmem [resolvable:$true] %s643_s11 }
  0x32   : > { %2165 = dma.hbm_to_vmem [thread:$0]  (!%p2898_p5), %s642_s5, 16, %s644_s11, [#allocation11]  }
  0x33   : > { %s667_s25 = sshll.u32 %s2736_s14, 4  ;;  %s695_s6 = sshll.u32 %s3204_s19, 4  ;;  %s668_s25 = int_to_ptr.vmem [resolvable:$true] %s667_s25  ;;  %s696_s6 = int_to_ptr.hbm [resolvable:$true] %s695_s6 }
  0x34   : > { %2171 = dma.hbm_to_vmem [thread:$0]  (!%p2898_p5), %s666_s30, 16, %s668_s25, [#allocation14]  }
  0x35   : > { %s719_s29 = sshll.u32 %s3206_s21, 4  ;;  %s2737_s2 = smov [#allocation18]   ;;  %s720_s29 = int_to_ptr.hbm [resolvable:$true] %s719_s29 }
  0x36   : > { %s697_s26 = sshll.u32 %s2737_s2, 4  ;;  %s2738_s5 = smov [#allocation21]   ;;  %s698_s26 = int_to_ptr.vmem [resolvable:$true] %s697_s26 }
  0x37   : > { %2177 = dma.hbm_to_vmem [thread:$0]  (!%p2898_p5), %s696_s6, 16, %s698_s26, [#allocation17]  }
  0x38   : > { %s721_s4 = sshll.u32 %s2738_s5, 4  ;;  %748 = sbr.rel (%p2884_p3) target bundleno = 3268 (0xcc4), region = 108  ;;  %s722_s4 = int_to_ptr.vmem [resolvable:$true] %s721_s4 }
  0x39   : > { %2183 = dma.hbm_to_vmem [thread:$0]  (!%p2898_p5), %s720_s29, 16, %s722_s4, [#allocation20]  }
  0x3d   : > { %2695 = dma.done.wait (%p2184_p2), [#allocation3], 16  }
  0x3e   : > { %2697 = vsyncadd (%p2184_p2), [#allocation3], 4294967280 }
  0x3f   : > { %2699 = dma.done.wait (%p2184_p2), [#allocation5], 32  }
  0x40   : > { %2701 = vsyncadd (%p2184_p2), [#allocation5], 4294967264 }
  0x41   : > { %2703 = dma.done.wait (%p2184_p2), [#allocation8], 32  }
  0x42   : > { %2705 = vsyncadd (%p2184_p2), [#allocation8], 4294967264 }
  0x43   : > { %2707 = dma.done.wait (%p2184_p2), [#allocation11], 32  }
  0x44   : > { %2709 = vsyncadd (%p2184_p2), [#allocation11], 4294967264 }
  0x45   : > { %2711 = dma.done.wait (%p2184_p2), [#allocation14], 32  }
  0x46   : > { %2713 = vsyncadd (%p2184_p2), [#allocation14], 4294967264 }
  0x47   : > { %2715 = dma.done.wait (%p2184_p2), [#allocation17], 32  }
  0x48   : > { %2717 = vsyncadd (%p2184_p2), [#allocation17], 4294967264 }
  0x49   : > { %2719 = dma.done.wait (%p2184_p2), [#allocation20], 32  }
  0x4a   : > { %2721 = vsyncadd (%p2184_p2), [#allocation20], 4294967264  ;;  %p873_p6 = scmp.lt.s32.totalorder %s2879_s0, 1  ;;  %s3233_s30 = sld [smem:[#allocation32_spill]]  ;;  %vm909_vm0 = vcmask 261120   ;;  %vm936_vm1 = vcmask 64512   ;;  %v926_v19 = vlaneseq }
  0x4b   : > { %s3234_s24 = sld [smem:[#allocation30_spill]]  ;;  %v2247_v3 = vld [vmem:[#allocation2] ss:$0 sm:$0xff]  ;;  %s2740_s7 = smov 120   ;;  %v2746_v22 = vmov -inf   ;;  %vm973_vm3 = vcmask 1043456  }
  0x4c   : > { %s3242_s0 = smov (!%p873_p6, %s2879_s0), 1  ;;  %s2741_s3 = smov 96   ;;  %v927_v20 = vshrl.u32 %v926_v19, 7  ;;  %v929_v21 = vand.u32 127, %v926_v19  ;;  %vm1171_vm4 = vcmask 130048   ;;  %vm1173_vm5 = vcmask 195584  }
  0x4d   : > { %s2993_s1 = sshll.u32 %s3242_s0, 2  ;;  %s2739_s0 = smov 104   ;;  %vm1709_vm13 = vcmask 523264  }
  0x4e   : > { %s2742_s29 = smov 80   ;;  %s2743_s2 = smov 72   ;;  %vm930_vm2 = vcmp.le.s32.totalorder %v929_v21, %v927_v20 }
  0x4f   : > { %s2744_s26 = smov 88   ;;  %s2745_s5 = smov 112   ;;  %v931_v23 = vsel %vm930_vm2, 0.0, %v2746_v22 }
  0x50   : > { %v2077_v0 = vld [vmem:[%s3233_s30 + $0x8] sm:$0xff]  ;;  %v2076_v1 = vld [vmem:[%s3233_s30] sm:$0xff]  ;;  %s2747_s4 = smov 64   ;;  %s2748_s23 = smov 40  }
  0x51   : > { %919 = vmatpush.bf16.msra.mxu0 %v2077_v0  ;;  %s876_s6 = scalar_lea.vmem %s3234_s24, %s2993_s1  ;;  %s2749_s28 = smov 56  }
  0x52   : > { %v3002_v2 = vld [vmem:[%s876_s6] sm:$0xf]  ;;  %s2750_s11 = smov 48   ;;  %s3213_s14 = smov 8  }
  0x53   : > { %s3212_s25 = smov 16   ;;  %s3211_s27 = smov 24  }
  0x54   : > { %s3236_s24 = sld [smem:[#allocation31_spill]] }
  0x55   : > { %920 = vmatpush.bf16.msra.mxu0 %v2076_v1 }
  0x58   : > { %1995 = vmatmul.msk.bf16.vlgmr.msra.gmra.mxu0 %vm909_vm0, %v3002_v2 }
  0x5a   : > { %s880_s6 = scalar_lea.vmem %s3236_s24, %s2993_s1 }
  0xd5   : > { %v922_v4 = vpop.f32.mrf.mxu0 }
  0xd6   : > { %v923_v5 = vadd.f32 %v2247_v3, %v922_v4 }
  0xd8   : > { %v3006_v6 = vpack.c.bf16 %v923_v5, %v923_v5 }
  0xda   : > { %1102 = vrot.lane.b32.xlu2 %v3006_v6, %s2739_s0  ;;  %990 = vrot.lane.b32.xlu1 %v3006_v6, %s2740_s7 }
  0xdb   : > { %934 = vrot.lane.b32.xlu0 %v3006_v6, %s2741_s3 }
  0xdd   : > { %v924_v7 = vpop.f32.mrf.mxu0 }
  0xe2   : > { %1048 = vrot.lane.b32.xlu2 %v3006_v6, %s2742_s29  ;;  %1104 = vrot.lane.b32.xlu1 %v3006_v6, %s2743_s2 }
  0xe3   : > { %992 = vrot.lane.b32.xlu0 %v3006_v6, %s2744_s26 }
  0xeb   : > { %1046 = vrot.lane.b32.xlu0 %v3006_v6, %s2745_s5 }
 0x134   : > { %v1103_v8 = vpop.permute.xlu2 %1102 }
 0x13c   : > { %v1049_v9 = vpop.permute.xlu2 %1048 }
 0x13d   : > { %v1054_v10 = vsel %vm936_vm1, %v1049_v9, 0 }
 0x13e   : > { %1063 = vmatpush.bf16.xpose.msrb.mxu0 %v1054_v10 }
 0x14c   : > { %v991_v11 = vpop.permute.xlu1 %990 }
 0x14d   : > { %v935_v12 = vpop.permute.xlu0 %934 }
 0x14e   : > { %v941_v13 = vsel %vm936_vm1, %v935_v12, 0 }
 0x14f   : > { %950 = vmatpush.bf16.xpose.msra.mxu1 %v941_v13 }
 0x154   : > { %v1105_v14 = vpop.permute.xlu1 %1104 }
 0x155   : > { %v993_v15 = vpop.permute.xlu0 %992  ;;  %v1110_v16 = vsel %vm936_vm1, %v1105_v14, 0 }
 0x156   : > { %1996 = vmatmul.msk.bf16.vlgmr.msra.gmra.mxu1 %vm936_vm1, %v3006_v6  ;;  %v998_v17 = vsel %vm936_vm1, %v993_v15, 0 }
 0x157   : > { %1007 = vmatpush.bf16.xpose.msra.mxu3 %v998_v17 }
 0x15d   : > { %v1047_v18 = vpop.permute.xlu0 %1046 }
 0x15e   : > { %1998 = vmatmul.msk.bf16.vlgmr.msra.gmra.mxu3 %vm936_vm1, %v991_v11  ;;  %2000 = vmatmul.msk.bf16.vlgmr.msrb.gmra.mxu0 %vm936_vm1, %v1047_v18 }
 0x15f   : > { %1119 = vmatpush.bf16.xpose.msrb.mxu3 %v1110_v16 }
 0x16e   : > { %2002 = vmatmul.msk.bf16.vlgmr.msrb.gmra.mxu3 %vm936_vm1, %v1103_v8 }
 0x1d3   : > { %v952_v24 = vpop.f32.mrf.mxu1 }
 0x1d4   : > { %v953_v25 = vadd.f32 %v952_v24, %v931_v23 }
 0x1d6   : > { %v956_v26 = vsel %vm936_vm1, %v953_v25, -inf }
 0x1d7   : > { %957 = vmax.xlane.f32.xlu1 %v956_v26 }
 0x1db   : > { %v954_v27 = vpop.f32.mrf.mxu1  ;;  %v1065_v28 = vpop.f32.mrf.mxu0 }
 0x1dc   : > { %v1066_v33 = vadd.f32 %v1065_v28, %v931_v23 }
 0x1de   : > { %v1069_v35 = vsel %vm936_vm1, %v1066_v33, -inf }
 0x1e1   : > { %v1009_v29 = vpop.f32.mrf.mxu3 }
 0x1e2   : > { %v1010_v30 = vadd.f32 %v1009_v29, %v931_v23 }
 0x1e3   : > { %v1067_v31 = vpop.f32.mrf.mxu0 }
 0x1e4   : > { %v1013_v32 = vsel %vm936_vm1, %v1010_v30, -inf }
 0x1e5   : > { %1014 = vmax.xlane.f32.xlu2 %v1013_v32 }
 0x1e9   : > { %v1011_v34 = vpop.f32.mrf.mxu3 }
 0x1ed   : > { %1070 = vmax.xlane.f32.xlu2 %v1069_v35 }
 0x1f1   : > { %v1121_v36 = vpop.f32.mrf.mxu3 }
 0x1f2   : > { %v1122_v37 = vadd.f32 %v1121_v36, %v931_v23 }
 0x1f4   : > { %v1125_v38 = vsel %vm936_vm1, %v1122_v37, -inf }
 0x1f5   : > { %1126 = vmax.xlane.f32.xlu0 %v1125_v38  ;;  %v2248_v38 = vld [vmem:[#allocation4] ss:$0 sm:$0xff] }
 0x1f9   : > { %v1123_v39 = vpop.f32.mrf.mxu3 }
 0x1fa   : > { %v887_v39 = vunpack.c.l.bf16 %v3002_v2 }
 0x205   : > { %968 = vrot.lane.b32.xlu2 %v3006_v6, %s2747_s4  ;;  %s3235_s4 = sld [smem:[#allocation34_spill]] }
 0x20b   : > { %v2079_v29 = vld [vmem:[%s3235_s4 + $0x8] sm:$0xff] }
 0x20c   : > { %1205 = vmatpush.bf16.msra.mxu0 %v2079_v29 }
 0x20d   : > { %1137 = vrot.lane.b32.xlu2 %v3006_v6, %s2748_s23 }
 0x24a   : > { %v958_v40 = vpop.xlane.xlu1 %957 }
 0x24b   : > { %v959_v41 = vsub.f32 %v953_v25, %v958_v40 }
 0x24d   : > { %v960_v42 = vmul.f32 1.442695, %v959_v41 }
 0x24f   : > { %2260 = vpow2.f32 %v960_v42 }
 0x255   : > { %v2261_v43 = vpop.eup %2260 }
 0x256   : > { %v962_v44 = vsel %vm936_vm1, %v2261_v43, 0.0 }
 0x257   : > { %963 = vadd.xlane.f32.xlu1 %v962_v44 }
 0x258   : > { %v1015_v45 = vpop.xlane.xlu2 %1014 }
 0x259   : > { %v1016_v48 = vsub.f32 %v1010_v30, %v1015_v45  ;;  %v2078_v30 = vld [vmem:[%s3235_s4] sm:$0xff]  ;;  %v2754_v45 = vmov 32.0  }
 0x25a   : > { %1206 = vmatpush.bf16.msra.mxu0 %v2078_v30 }
 0x25b   : > { %v1017_v50 = vmul.f32 1.442695, %v1016_v48 }
 0x260   : > { %v1071_v46 = vpop.xlane.xlu2 %1070 }
 0x261   : > { %v1072_v47 = vsub.f32 %v1066_v33, %v1071_v46  ;;  %v2083_v46 = vld [vmem:[%s3195_s10 + $0x8] sm:$0xff] }
 0x262   : > { %1318 = vmatpush.bf16.msra.mxu3 %v2083_v46 }
 0x263   : > { %v1073_v49 = vmul.f32 1.442695, %v1072_v47  ;;  %v2082_v47 = vld [vmem:[%s3195_s10] sm:$0xff] }
 0x265   : > { %2262 = vpow2.f32 %v1073_v49 }
 0x266   : > { %2264 = vpow2.f32 %v1017_v50  ;;  %1319 = vmatpush.bf16.msra.mxu3 %v2082_v47 }
 0x268   : > { %v969_v51 = vpop.permute.xlu2 %968  ;;  %v1127_v52 = vpop.xlane.xlu0 %1126 }
 0x269   : > { %v975_v53 = vsel %vm973_vm3, %v969_v51, 0  ;;  %v1128_v55 = vsub.f32 %v1122_v37, %v1127_v52 }
 0x26a   : > { %984 = vmatpush.bf16.msra.mxu2 %v975_v53 }
 0x26b   : > { %v2263_v54 = vpop.eup %2262  ;;  %v1129_v57 = vmul.f32 1.442695, %v1128_v55 }
 0x26c   : > { %v1075_v56 = vsel %vm936_vm1, %v2263_v54, 0.0  ;;  %v2265_v58 = vpop.eup %2264 }
 0x26d   : > { %1076 = vadd.xlane.f32.xlu0 %v1075_v56  ;;  %2266 = vpow2.f32 %v1129_v57  ;;  %v1019_v59 = vsel %vm936_vm1, %v2265_v58, 0.0 }
 0x270   : > { %1025 = vrot.lane.b32.xlu1 %v3006_v6, %s2749_s28  ;;  %v1138_v4 = vpop.permute.xlu2 %1137 }
 0x271   : > { %v1143_v8 = vsel %vm973_vm3, %v1138_v4, 0 }
 0x273   : > { %v2267_v60 = vpop.eup %2266 }
 0x274   : > { %v1131_v61 = vsel %vm936_vm1, %v2267_v60, 0.0 }
 0x275   : > { %1020 = vadd.xlane.f32.xlu0 %v1019_v59  ;;  %v2081_v59 = vld [vmem:[%s3193_s8 + $0x8] sm:$0xff] }
 0x27d   : > { %1132 = vadd.xlane.f32.xlu0 %v1131_v61 }
 0x291   : > { %1081 = vrot.lane.b32.xlu0 %v3006_v6, %s2750_s11 }
 0x2ca   : > { %v964_v62 = vpop.xlane.xlu1 %963 }
 0x2cb   : > { %2268 = vrcp.f32 %v964_v62 }
 0x2d1   : > { %v2269_v63 = vpop.eup %2268 }
 0x2d2   : > { %v966_v0 = vmul.f32 %v2269_v63, %v2261_v43 }
 0x2d4   : > { %v967_v1 = vpack.c.bf16 %v966_v0, %v966_v0 }
 0x2d6   : > { %1997 = vmatmul.msk.bf16.vlgmr.msra.gmra.mxu2 %vm936_vm1, %v967_v1 }
 0x2e0   : > { %v1077_v3 = vpop.xlane.xlu0 %1076 }
 0x2e2   : > { %v1026_v5 = vpop.permute.xlu1 %1025 }
 0x2e3   : > { %v1031_v7 = vsel %vm973_vm3, %v1026_v5, 0 }
 0x2e4   : > { %1040 = vmatpush.bf16.msrb.mxu2 %v1031_v7 }
 0x2e8   : > { %1152 = vmatpush.bf16.msra.mxu2 %v1143_v8  ;;  %v1021_v9 = vpop.xlane.xlu0 %1020  ;;  %v2249_v8 = vld [vmem:[#allocation6] ss:$0 sm:$0xff] }
 0x2e9   : > { %2270 = vrcp.f32 %v1021_v9 }
 0x2ef   : > { %v2271_v10 = vpop.eup %2270 }
 0x2f0   : > { %v1023_v6 = vmul.f32 %v2271_v10, %v2265_v58  ;;  %v1133_v11 = vpop.xlane.xlu0 %1132  ;;  %v888_v58 = vld [vmem:[%s880_s6] sm:$0xf]  ;;  %v2250_v10 = vld [vmem:[#allocation7] ss:$0 sm:$0xff] }
 0x2f1   : > { %2272 = vrcp.f32 %v1133_v11  ;;  %2030 = vmatmul.msk.bf16.vlgmr.msra.gmra.mxu3 %vm909_vm0, %v888_v58 }
 0x2f2   : > { %v1024_v12 = vpack.c.bf16 %v1023_v6, %v1023_v6  ;;  %2274 = vrcp.f32 %v1077_v3 }
 0x2f3   : > { %2276 = vrcp.f32 %v2754_v45 }
 0x2f4   : > { %1999 = vmatmul.msk.bf16.vlgmr.msrb.gmra.mxu2 %vm936_vm1, %v1024_v12 }
 0x2f7   : > { %v2273_v13 = vpop.eup %2272 }
 0x2f8   : > { %v1135_v14 = vmul.f32 %v2273_v13, %v2267_v60  ;;  %v2275_v15 = vpop.eup %2274  ;;  %v2080_v60 = vld [vmem:[%s3193_s8] sm:$0xff] }
 0x2f9   : > { %v1079_v16 = vmul.f32 %v2275_v15, %v2263_v54  ;;  %v2277_v2 = vpop.eup %2276 }
 0x2fa   : > { %v1136_v17 = vpack.c.bf16 %v1135_v14, %v1135_v14  ;;  %v1219_v48 = vmul.f32 32.0, %v2277_v2  ;;  %vm1223_vm6 = vweird.f32 %v2277_v2  ;;  %v2251_v14 = vld [vmem:[#allocation10] ss:$0 sm:$0xff] }
 0x2fb   : > { %v1080_v20 = vpack.c.bf16 %v1079_v16, %v1079_v16 }
 0x2fc   : > { %v1220_v49 = vsub.f32 1.0, %v1219_v48 }
 0x2fe   : > { %v1221_v50 = vmul.f32 %v2277_v2, %v1220_v49 }
 0x300   : > { %v1222_v51 = vadd.f32 %v2277_v2, %v1221_v50 }
 0x302   : > { %v3072_v52 = vsel %vm1223_vm6, %v2277_v2, %v1222_v51 }
 0x303   : > { %v1082_v18 = vpop.permute.xlu0 %1081 }
 0x304   : > { %2003 = vmatmul.msk.bf16.vlgmr.msra.gmra.mxu2 %vm936_vm1, %v1136_v17  ;;  %v1087_v19 = vsel %vm973_vm3, %v1082_v18, 0 }
 0x305   : > { %1096 = vmatpush.bf16.msrb.mxu1 %v1087_v19 }
 0x308   : > { %2001 = vmatmul.msk.bf16.vlgmr.msrb.gmra.mxu1 %vm936_vm1, %v1080_v20  ;;  %v2252_v20 = vld [vmem:[#allocation9] ss:$0 sm:$0xff] }
 0x309   : > { %1282 = vmatpush.bf16.msra.mxu1 %v2081_v59 }
 0x30d   : > { %1283 = vmatpush.bf16.msra.mxu1 %v2080_v60 }
 0x359   : > { %v986_v21 = vpop.f32.mrf.mxu2 }
 0x361   : > { %v988_v22 = vpop.f32.mrf.mxu2 }
 0x374   : > { %v1321_v15 = vpop.f32.mrf.mxu3 }
 0x375   : > { %v1322_v16 = vadd.f32 %v2251_v14, %v1321_v15 }
 0x377   : > { %v1042_v23 = vpop.f32.mrf.mxu2  ;;  %v3093_v17 = vpack.c.bf16 %v1322_v16, %v1322_v16 }
 0x378   : > { %1159 = vrot.lane.b32.xlu1 %v1042_v23, %s3213_s14 }
 0x379   : > { %1383 = vrot.lane.b32.xlu0 %v3093_v17, %s2740_s7  ;;  %v1331_v18 = vsel %vm936_vm1, %v3093_v17, 0 }
 0x37a   : > { %1340 = vmatpush.bf16.xpose.msrb.mxu2 %v1331_v18 }
 0x37c   : > { %v1323_v19 = vpop.f32.mrf.mxu3 }
 0x37f   : > { %v1044_v24 = vpop.f32.mrf.mxu2 }
 0x381   : > { %1439 = vrot.lane.b32.xlu0 %v3093_v17, %s2745_s5 }
 0x385   : > { %v1098_v25 = vpop.f32.mrf.mxu1 }
 0x386   : > { %1163 = vrot.lane.b32.xlu2 %v1098_v25, %s3212_s25 }
 0x387   : > { %v1154_v26 = vpop.f32.mrf.mxu2 }
 0x388   : > { %1167 = vrot.lane.b32.xlu1 %v1154_v26, %s3211_s27 }
 0x38d   : > { %v1100_v27 = vpop.f32.mrf.mxu1 }
 0x38f   : > { %v1156_v28 = vpop.f32.mrf.mxu2 }
 0x3e0   : > { %v1164_v33 = vpop.permute.xlu2 %1163 }
 0x3ea   : > { %v1160_v31 = vpop.permute.xlu1 %1159 }
 0x3eb   : > { %v1170_v32 = vsel %vm936_vm1, %v986_v21, %v1160_v31  ;;  %v1384_v25 = vpop.permute.xlu0 %1383 }
 0x3ec   : > { %v1172_v35 = vsel %vm1171_vm4, %v1170_v32, %v1164_v33  ;;  %v1389_v26 = vsel %vm936_vm1, %v1384_v25, 0 }
 0x3ed   : > { %1398 = vmatpush.bf16.xpose.msrb.mxu1 %v1389_v26 }
 0x3f3   : > { %v1440_v27 = vpop.permute.xlu0 %1439 }
 0x3f4   : > { %v1445_v28 = vsel %vm936_vm1, %v1440_v27, 0 }
 0x3f5   : > { %1454 = vmatpush.bf16.xpose.msra.mxu2 %v1445_v28 }
 0x3fa   : > { %v1168_v34 = vpop.permute.xlu1 %1167 }
 0x3fb   : > { %v1174_v36 = vsel %vm1173_vm5, %v1172_v35, %v1168_v34 }
 0x3fc   : > { %v1175_v37 = vpack.c.bf16 %v1174_v36, %v1174_v36 }
 0x3fe   : > { %2012 = vmatmul.msk.bf16.vlgmr.msra.gmra.mxu0 %vm909_vm0, %v1175_v37 }
 0x47b   : > { %v1208_v40 = vpop.f32.mrf.mxu0 }
 0x47c   : > { %v1209_v41 = vadd.f32 %v2248_v38, %v1208_v40 }
 0x47e   : > { %v1212_v42 = vadd.f32 %v1209_v41, %v887_v39 }
 0x480   : > { %v1215_v43 = vsel %vm909_vm0, %v1212_v42, 0.0 }
 0x481   : > { %1216 = vadd.xlane.f32.xlu2 %v1215_v43 }
 0x483   : > { %v1210_v44 = vpop.f32.mrf.mxu0 }
 0x4f4   : > { %v1217_v53 = vpop.xlane.xlu2 %1216 }
 0x4f5   : > { %v1225_v54 = vmul.f32 %v3072_v52, %v1217_v53 }
 0x4f7   : > { %v1226_v55 = vsub.f32 %v1212_v42, %v1225_v54 }
 0x4f9   : > { %v1227_v56 = vmul.f32 %v1226_v55, %v1226_v55 }
 0x4fb   : > { %v1228_v57 = vsel %vm909_vm0, %v1227_v56, 0.0 }
 0x4fc   : > { %1229 = vadd.xlane.f32.xlu1 %v1228_v57 }
 0x56f   : > { %v1230_v61 = vpop.xlane.xlu1 %1229 }
 0x570   : > { %v1231_v62 = vmul.f32 %v1230_v61, %v3072_v52 }
 0x572   : > { %v1232_v63 = vadd.f32 1e-05, %v1231_v62 }
 0x574   : > { %2278 = vrsqrt.f32 %v1232_v63  ;;  %vm1239_vm8 = vweird.f32 %v1232_v63 }
 0x57a   : > { %v2279_v0 = vpop.eup %2278 }
 0x57b   : > { %v1234_v1 = vmul.f32 %v2279_v0, %v1232_v63  ;;  %vm1240_vm7 = vweird.f32 %v2279_v0 }
 0x57c   : > { %vm1241_vm9 = vmor %vm1239_vm8, %vm1240_vm7 }
 0x57d   : > { %v1235_v3 = vmul.f32 %v2279_v0, %v1234_v1 }
 0x57f   : > { %v1236_v4 = vmul.f32 0.5, %v1235_v3 }
 0x581   : > { %v1237_v5 = vsub.f32 1.5, %v1236_v4 }
 0x583   : > { %v1238_v7 = vmul.f32 %v2279_v0, %v1237_v5 }
 0x585   : > { %v1242_v9 = vsel %vm1241_vm9, %v2279_v0, %v1238_v7 }
 0x586   : > { %v1243_v6 = vmul.f32 %v1242_v9, %v1226_v55 }
 0x588   : > { %v1247_v11 = vmul.f32 %v2249_v8, %v1243_v6 }
 0x58a   : > { %v3088_v12 = vadd.f32 %v2250_v10, %v1247_v11 }
 0x58c   : > { %v1252_v13 = vpack.c.bf16 %v3088_v12, %v3088_v12 }
 0x58e   : > { %2021 = vmatmul.msk.bf16.vlgmr.msra.gmra.mxu1 %vm909_vm0, %v1252_v13 }
 0x60b   : > { %v1285_v21 = vpop.f32.mrf.mxu1 }
 0x60c   : > { %v1286_v22 = vadd.f32 %v2252_v20, %v1285_v21 }
 0x60e   : > { %v1325_v23 = vpack.c.bf16 %v1286_v22, %v1286_v22 }
 0x610   : > { %1493 = vrot.lane.b32.xlu2 %v1325_v23, %s2739_s0  ;;  %1381 = vrot.lane.b32.xlu0 %v1325_v23, %s2740_s7  ;;  %s3238_s7 = smov 16  }
 0x611   : > { %2031 = vmatmul.msk.bf16.vlgmr.msrb.gmra.mxu2 %vm936_vm1, %v1325_v23 }
 0x613   : > { %v1287_v24 = vpop.f32.mrf.mxu1 }
 0x618   : > { %1495 = vrot.lane.b32.xlu0 %v3093_v17, %s2739_s0  ;;  %s3237_s0 = smov 8  }
 0x620   : > { %1437 = vrot.lane.b32.xlu0 %v1325_v23, %s2745_s5  ;;  %s884_s5 = scalar_lea.vmem %s3207_s22, %s2993_s1 }
 0x66a   : > { %v1494_v32 = vpop.permute.xlu2 %1493 }
 0x682   : > { %v1382_v29 = vpop.permute.xlu0 %1381 }
 0x683   : > { %2033 = vmatmul.msk.bf16.vlgmr.msrb.gmra.mxu1 %vm936_vm1, %v1382_v29 }
 0x68a   : > { %v1496_v30 = vpop.permute.xlu0 %1495 }
 0x68b   : > { %v1501_v31 = vsel %vm936_vm1, %v1496_v30, 0 }
 0x68c   : > { %1510 = vmatpush.bf16.xpose.msra.mxu1 %v1501_v31 }
 0x692   : > { %v1438_v33 = vpop.permute.xlu0 %1437 }
 0x693   : > { %2035 = vmatmul.msk.bf16.vlgmr.msra.gmra.mxu2 %vm936_vm1, %v1438_v33  ;;  %2037 = vmatmul.msk.bf16.vlgmr.msra.gmra.mxu1 %vm936_vm1, %v1494_v32 }
 0x694   : > { %v1342_v34 = vpop.f32.mrf.mxu2 }
 0x695   : > { %v1346_v35 = vsel %vm936_vm1, %v1342_v34, -inf }
 0x696   : > { %1347 = vmax.xlane.f32.xlu0 %v1346_v35 }
 0x69c   : > { %v1344_v36 = vpop.f32.mrf.mxu2 }
 0x69d   : > { %v2085_v36 = vld [vmem:[%s3197_s12 + $0x8] sm:$0xff] }
 0x69e   : > { %1594 = vmatpush.bf16.msrb.mxu2 %v2085_v36 }
 0x6aa   : > { %1359 = vrot.lane.b32.xlu0 %v3093_v17, %s2741_s3  ;;  %s3239_s3 = smov 24  }
 0x6b2   : > { %1528 = vrot.lane.b32.xlu0 %v3093_v17, %s2743_s2 }
 0x700   : > { %v1400_v37 = vpop.f32.mrf.mxu1 }
 0x701   : > { %v1404_v38 = vsel %vm936_vm1, %v1400_v37, -inf }
 0x702   : > { %1405 = vmax.xlane.f32.xlu1 %v1404_v38 }
 0x708   : > { %v1402_v39 = vpop.f32.mrf.mxu1 }
 0x709   : > { %v1348_v41 = vpop.xlane.xlu0 %1347 }
 0x70a   : > { %v1349_v42 = vsub.f32 %v1342_v34, %v1348_v41 }
 0x70c   : > { %v1350_v46 = vmul.f32 1.442695, %v1349_v42 }
 0x70e   : > { %2280 = vpow2.f32 %v1350_v46 }
 0x710   : > { %v1512_v40 = vpop.f32.mrf.mxu1 }
 0x711   : > { %v1516_v49 = vsel %vm936_vm1, %v1512_v40, -inf }
 0x714   : > { %v2281_v50 = vpop.eup %2280 }
 0x715   : > { %v1352_v51 = vsel %vm936_vm1, %v2281_v50, 0.0 }
 0x716   : > { %v1456_v43 = vpop.f32.mrf.mxu2 }
 0x717   : > { %v1460_v44 = vsel %vm936_vm1, %v1456_v43, -inf }
 0x718   : > { %v1514_v45 = vpop.f32.mrf.mxu1  ;;  %1461 = vmax.xlane.f32.xlu1 %v1460_v44 }
 0x719   : > { %v2253_v45 = vld [vmem:[#allocation12] ss:$0 sm:$0xff] }
 0x71c   : > { %v1360_v47 = vpop.permute.xlu0 %1359 }
 0x71d   : > { %v1365_v2 = vsel %vm973_vm3, %v1360_v47, 0 }
 0x71e   : > { %1374 = vmatpush.bf16.msrb.mxu0 %v1365_v2  ;;  %v1458_v48 = vpop.f32.mrf.mxu2 }
 0x720   : > { %1517 = vmax.xlane.f32.xlu1 %v1516_v49 }
 0x724   : > { %v1529_v10 = vpop.permute.xlu0 %1528 }
 0x725   : > { %v1534_v13 = vsel %vm973_vm3, %v1529_v10, 0 }
 0x728   : > { %1353 = vadd.xlane.f32.xlu1 %v1352_v51 }
 0x741   : > { %1416 = vrot.lane.b32.xlu1 %v3093_v17, %s2744_s26 }
 0x775   : > { %v1406_v53 = vpop.xlane.xlu1 %1405 }
 0x776   : > { %v1407_v54 = vsub.f32 %v1400_v37, %v1406_v53  ;;  %v2084_v37 = vld [vmem:[%s3197_s12] sm:$0xff] }
 0x777   : > { %1595 = vmatpush.bf16.msrb.mxu2 %v2084_v37 }
 0x778   : > { %v1408_v55 = vmul.f32 1.442695, %v1407_v54 }
 0x77a   : > { %2282 = vpow2.f32 %v1408_v55 }
 0x780   : > { %v2283_v56 = vpop.eup %2282 }
 0x781   : > { %v1410_v57 = vsel %vm936_vm1, %v2283_v56, 0.0 }
 0x782   : > { %1411 = vadd.xlane.f32.xlu2 %v1410_v57  ;;  %v2091_v57 = vld [vmem:[%s3203_s18 + $0x18] sm:$0xff] }
 0x783   : > { %1717 = vmatpush.bf16.msrb.mxu1 %v2091_v57 }
 0x78b   : > { %v1462_v58 = vpop.xlane.xlu1 %1461 }
 0x78c   : > { %v1463_v59 = vsub.f32 %v1456_v43, %v1462_v58 }
 0x78e   : > { %v1464_v60 = vmul.f32 1.442695, %v1463_v59 }
 0x790   : > { %2284 = vpow2.f32 %v1464_v60  ;;  %v2090_v60 = vld [vmem:[%s3203_s18 + $0x10] sm:$0xff] }
 0x791   : > { %1718 = vmatpush.bf16.msrb.mxu1 %v2090_v60 }
 0x793   : > { %v1518_v61 = vpop.xlane.xlu1 %1517 }
 0x794   : > { %v1519_v62 = vsub.f32 %v1512_v40, %v1518_v61 }
 0x796   : > { %v2285_v63 = vpop.eup %2284  ;;  %v1520_v0 = vmul.f32 1.442695, %v1519_v62 }
 0x797   : > { %v1466_v1 = vsel %vm936_vm1, %v2285_v63, 0.0 }
 0x798   : > { %2286 = vpow2.f32 %v1520_v0  ;;  %1467 = vadd.xlane.f32.xlu2 %v1466_v1 }
 0x79b   : > { %v1354_v3 = vpop.xlane.xlu1 %1353 }
 0x79c   : > { %2288 = vrcp.f32 %v1354_v3 }
 0x79e   : > { %v2287_v4 = vpop.eup %2286 }
 0x79f   : > { %v1522_v5 = vsel %vm936_vm1, %v2287_v4, 0.0 }
 0x7a0   : > { %1523 = vadd.xlane.f32.xlu1 %v1522_v5  ;;  %v2254_v5 = vld [vmem:[#allocation13] ss:$0 sm:$0xff] }
 0x7a2   : > { %v2289_v7 = vpop.eup %2288 }
 0x7a3   : > { %v1356_v8 = vmul.f32 %v2289_v7, %v2281_v50 }
 0x7a5   : > { %v1357_v9 = vpack.c.bf16 %v1356_v8, %v1356_v8  ;;  %v2255_v8 = vld [vmem:[#allocation15] ss:$0 sm:$0xff] }
 0x7a7   : > { %2032 = vmatmul.msk.bf16.vlgmr.msrb.gmra.mxu0 %vm936_vm1, %v1357_v9 }
 0x7b0   : > { %1472 = vrot.lane.b32.xlu2 %v3093_v17, %s2742_s29 }
 0x7b3   : > { %v1417_v6 = vpop.permute.xlu1 %1416 }
 0x7b4   : > { %v1422_v11 = vsel %vm973_vm3, %v1417_v6, 0 }
 0x7b5   : > { %1431 = vmatpush.bf16.msrb.mxu3 %v1422_v11 }
 0x7b9   : > { %1543 = vmatpush.bf16.msra.mxu3 %v1534_v13  ;;  %v2089_v13 = vld [vmem:[%s3203_s18 + $0x8] sm:$0xff] }
 0x7ba   : > { %1719 = vmatpush.bf16.msrb.mxu1 %v2089_v13 }
 0x7f5   : > { %v1412_v14 = vpop.xlane.xlu2 %1411 }
 0x7f6   : > { %2290 = vrcp.f32 %v1412_v14  ;;  %v2088_v14 = vld [vmem:[%s3203_s18] sm:$0xff] }
 0x7f7   : > { %1720 = vmatpush.bf16.msrb.mxu1 %v2088_v14 }
 0x7fc   : > { %v2291_v15 = vpop.eup %2290 }
 0x7fd   : > { %v1414_v16 = vmul.f32 %v2291_v15, %v2283_v56  ;;  %v2087_v56 = vld [vmem:[%s3201_s16 + $0x8] sm:$0xff]  ;;  %v2256_v15 = vld [vmem:[#allocation16] ss:$0 sm:$0xff] }
 0x7ff   : > { %v1415_v18 = vpack.c.bf16 %v1414_v16, %v1414_v16 }
 0x801   : > { %2034 = vmatmul.msk.bf16.vlgmr.msrb.gmra.mxu3 %vm936_vm1, %v1415_v18 }
 0x80b   : > { %v1468_v19 = vpop.xlane.xlu2 %1467 }
 0x80c   : > { %2292 = vrcp.f32 %v1468_v19 }
 0x812   : > { %v2293_v20 = vpop.eup %2292 }
 0x813   : > { %v1470_v21 = vmul.f32 %v2293_v20, %v2285_v63  ;;  %v1473_v17 = vpop.permute.xlu2 %1472  ;;  %v1524_v22 = vpop.xlane.xlu1 %1523 }
 0x814   : > { %v1478_v23 = vsel %vm973_vm3, %v1473_v17, 0  ;;  %2294 = vrcp.f32 %v1524_v22  ;;  %v2257_v17 = vld [vmem:[#allocation18] ss:$0 sm:$0xff] }
 0x815   : > { %v1471_v24 = vpack.c.bf16 %v1470_v21, %v1470_v21  ;;  %1487 = vmatpush.bf16.msra.mxu0 %v1478_v23 }
 0x818   : > { %2036 = vmatmul.msk.bf16.vlgmr.msra.gmra.mxu0 %vm936_vm1, %v1471_v24 }
 0x819   : > { %1664 = vmatpush.bf16.msrb.mxu0 %v2087_v56 }
 0x81a   : > { %v2295_v25 = vpop.eup %2294 }
 0x81b   : > { %v1526_v26 = vmul.f32 %v2295_v25, %v2287_v4 }
 0x81d   : > { %v1527_v27 = vpack.c.bf16 %v1526_v26, %v1526_v26 }
 0x81f   : > { %2038 = vmatmul.msk.bf16.vlgmr.msra.gmra.mxu3 %vm936_vm1, %v1527_v27 }
 0x824   : > { %v1376_v28 = vpop.f32.mrf.mxu0 }
 0x82c   : > { %v1378_v29 = vpop.f32.mrf.mxu0 }
 0x884   : > { %v1433_v30 = vpop.f32.mrf.mxu3 }
 0x885   : > { %1550 = vrot.lane.b32.xlu0 %v1433_v30, %s3237_s0 }
 0x88c   : > { %v1435_v31 = vpop.f32.mrf.mxu3 }
 0x895   : > { %v1489_v32 = vpop.f32.mrf.mxu0 }
 0x896   : > { %1554 = vrot.lane.b32.xlu0 %v1489_v32, %s3238_s7 }
 0x89d   : > { %v1491_v33 = vpop.f32.mrf.mxu0 }
 0x8a2   : > { %v1545_v34 = vpop.f32.mrf.mxu3 }
 0x8a3   : > { %1558 = vrot.lane.b32.xlu0 %v1545_v34, %s3239_s3 }
 0x8aa   : > { %v1547_v35 = vpop.f32.mrf.mxu3 }
 0x8f7   : > { %v1551_v38 = vpop.permute.xlu0 %1550 }
 0x8f8   : > { %v1561_v40 = vsel %vm936_vm1, %v1376_v28, %v1551_v38 }
 0x908   : > { %v1555_v39 = vpop.permute.xlu0 %1554 }
 0x909   : > { %v1562_v41 = vsel %vm1171_vm4, %v1561_v40, %v1555_v39 }
 0x915   : > { %v1559_v42 = vpop.permute.xlu0 %1558 }
 0x916   : > { %v1563_v43 = vsel %vm1173_vm5, %v1562_v41, %v1559_v42  ;;  %v2258_v41 = vld [vmem:[#allocation19] ss:$0 sm:$0xff] }
 0x917   : > { %v1564_v44 = vpack.c.bf16 %v1563_v43, %v1563_v43  ;;  %v2259_v43 = vld [vmem:[#allocation21] ss:$0 sm:$0xff] }
 0x919   : > { %2047 = vmatmul.msk.bf16.vlgmr.msrb.gmra.mxu2 %vm909_vm0, %v1564_v44 }
 0x99c   : > { %v1597_v46 = vpop.f32.mrf.mxu2 }
 0x99d   : > { %v1598_v47 = vadd.f32 %v2253_v45, %v1597_v46 }
 0x99f   : > { %v1601_v2 = vadd.f32 %v1598_v47, %v3088_v12  ;;  %v2086_v12 = vld [vmem:[%s3201_s16] sm:$0xff] }
 0x9a0   : > { %1665 = vmatpush.bf16.msrb.mxu0 %v2086_v12 }
 0x9a1   : > { %v1604_v48 = vsel %vm909_vm0, %v1601_v2, 0.0 }
 0x9a2   : > { %1605 = vadd.xlane.f32.xlu2 %v1604_v48 }
 0x9a4   : > { %v1599_v49 = vpop.f32.mrf.mxu2 }
 0xa15   : > { %v1606_v50 = vpop.xlane.xlu2 %1605 }
 0xa16   : > { %v1607_v51 = vmul.f32 %v1606_v50, %v3072_v52 }
 0xa18   : > { %v1608_v53 = vsub.f32 %v1601_v2, %v1607_v51 }
 0xa1a   : > { %v1609_v54 = vmul.f32 %v1608_v53, %v1608_v53 }
 0xa1c   : > { %v1610_v55 = vsel %vm909_vm0, %v1609_v54, 0.0 }
 0xa1d   : > { %1611 = vadd.xlane.f32.xlu0 %v1610_v55 }
 0xa90   : > { %v1612_v58 = vpop.xlane.xlu0 %1611 }
 0xa91   : > { %v1613_v59 = vmul.f32 %v1612_v58, %v3072_v52 }
 0xa93   : > { %v1614_v61 = vadd.f32 1e-05, %v1613_v59 }
 0xa95   : > { %2296 = vrsqrt.f32 %v1614_v61  ;;  %vm1621_vm11 = vweird.f32 %v1614_v61 }
 0xa9b   : > { %v2297_v62 = vpop.eup %2296 }
 0xa9c   : > { %v1616_v63 = vmul.f32 %v2297_v62, %v1614_v61  ;;  %vm1622_vm10 = vweird.f32 %v2297_v62 }
 0xa9d   : > { %vm1623_vm12 = vmor %vm1621_vm11, %vm1622_vm10 }
 0xa9e   : > { %v1617_v0 = vmul.f32 %v2297_v62, %v1616_v63 }
 0xaa0   : > { %v1618_v1 = vmul.f32 0.5, %v1617_v0 }
 0xaa2   : > { %v1619_v3 = vsub.f32 1.5, %v1618_v1 }
 0xaa4   : > { %v1620_v4 = vmul.f32 %v2297_v62, %v1619_v3 }
 0xaa6   : > { %v1624_v7 = vsel %vm1623_vm12, %v2297_v62, %v1620_v4 }
 0xaa7   : > { %v1625_v9 = vmul.f32 %v1624_v7, %v1608_v53 }
 0xaa9   : > { %v1629_v10 = vmul.f32 %v2254_v5, %v1625_v9 }
 0xaab   : > { %v1633_v6 = vadd.f32 %v2255_v8, %v1629_v10 }
 0xaad   : > { %v1634_v11 = vpack.c.bf16 %v1633_v6, %v1633_v6 }
 0xaaf   : > { %2056 = vmatmul.msk.bf16.vlgmr.msrb.gmra.mxu0 %vm909_vm0, %v1634_v11 }
 0xb2c   : > { %v1667_v16 = vpop.f32.mrf.mxu0 }
 0xb2d   : > { %v1668_v18 = vadd.f32 %v2256_v15, %v1667_v16 }
 0xb2f   : > { %v1671_v19 = vmax.f32 %v1668_v18, 0.0 }
 0xb31   : > { %v1672_v20 = vpack.c.bf16 %v1671_v19, %v1671_v19 }
 0xb33   : > { %2073 = vmatmul.msk.bf16.vlgmr.msrb.gmra.mxu1 %vm1709_vm13, %v1672_v20 }
 0xb34   : > { %v1669_v21 = vpop.f32.mrf.mxu0 }
 0xbb0   : > { %v1722_v22 = vpop.f32.mrf.mxu1 }
 0xbb1   : > { %v1723_v23 = vadd.f32 %v2257_v17, %v1722_v22 }
 0xbb3   : > { %v1726_v24 = vadd.f32 %v1723_v23, %v1633_v6 }
 0xbb5   : > { %v1729_v25 = vsel %vm909_vm0, %v1726_v24, 0.0 }
 0xbb6   : > { %1730 = vadd.xlane.f32.xlu1 %v1729_v25 }
 0xbb8   : > { %v1724_v26 = vpop.f32.mrf.mxu1 }
 0xc29   : > { %v1731_v27 = vpop.xlane.xlu1 %1730 }
 0xc2a   : > { %v1732_v28 = vmul.f32 %v1731_v27, %v3072_v52 }
 0xc2c   : > { %v1733_v29 = vsub.f32 %v1726_v24, %v1732_v28 }
 0xc2e   : > { %v1734_v30 = vmul.f32 %v1733_v29, %v1733_v29 }
 0xc30   : > { %v1735_v31 = vsel %vm909_vm0, %v1734_v30, 0.0  ;;  %vm1760_vm0 = vcmask 257024  }
 0xc31   : > { %1736 = vadd.xlane.f32.xlu1 %v1735_v31 }
 0xca4   : > { %v1737_v32 = vpop.xlane.xlu1 %1736 }
 0xca5   : > { %v1738_v33 = vmul.f32 %v1737_v32, %v3072_v52 }
 0xca7   : > { %v1739_v34 = vadd.f32 1e-05, %v1738_v33 }
 0xca9   : > { %2298 = vrsqrt.f32 %v1739_v34  ;;  %vm1746_vm15 = vweird.f32 %v1739_v34 }
 0xcaf   : > { %v2299_v35 = vpop.eup %2298 }
 0xcb0   : > { %v1741_v36 = vmul.f32 %v2299_v35, %v1739_v34  ;;  %vm1747_vm14 = vweird.f32 %v2299_v35 }
 0xcb1   : > { %vm1748_vm1 = vmor %vm1746_vm15, %vm1747_vm14 }
 0xcb2   : > { %v1742_v37 = vmul.f32 %v2299_v35, %v1741_v36 }
 0xcb4   : > { %v1743_v38 = vmul.f32 0.5, %v1742_v37 }
 0xcb6   : > { %v1744_v39 = vsub.f32 1.5, %v1743_v38 }
 0xcb8   : > { %v1745_v40 = vmul.f32 %v2299_v35, %v1744_v39 }
 0xcba   : > { %v1749_v42 = vsel %vm1748_vm1, %v2299_v35, %v1745_v40 }
 0xcbb   : > { %v1750_v44 = vmul.f32 %v1749_v42, %v1733_v29 }
 0xcbd   : > { %v1754_v45 = vmul.f32 %v2258_v41, %v1750_v44 }
 0xcbf   : > { %v1758_v46 = vadd.f32 %v2259_v43, %v1754_v45 }
 0xcc1   : > { %v1759_v52 = vpack.c.bf16 %v1758_v46, %v1758_v46 }
 0xcc3   : > { %1761 = vst.msk [vmem:[%s884_s5] sm:$0xf] %vm1760_vm0, %v1759_v52 }
 0xcc4 PF: > { %s3240_s14 = sld [smem:[#allocation29_spill]] }
 0xcca   : > { %s39_s3 = sadd.s32 1, %s3240_s14  }
 0xccb   : > { %p36_p7 = scmp.ge.s32.totalorder %s39_s3, 4  }
 0xccd   :  { %38 = sbr.rel (!%p36_p7) target bundleno = 18 (0x12), region = 194 }
 0xcd2   :  { %1781 = vsyncpa [#allocation3], 1 }
 0xcd3   :  { %1783 = vsyncpa [#allocation3 + $0x1], 1 }
 0xcd4   :  { %1784 = vsyncpa [#allocation5], 1 }
 0xcd5   :  { %1785 = vsyncpa [#allocation8], 1 }
 0xcd6   :  { %1786 = vsyncpa [#allocation11], 1 }
 0xcd7   :  { %1787 = vsyncpa [#allocation14], 1 }
 0xcd8   :  { %1788 = vsyncpa [#allocation17], 1 }
 0xcd9   :  { %1789 = vsyncpa [#allocation20], 1 }

// kernel: transformer_forward.11
= control target key start
LH: loop header
LB: loop body
LE: loop exit
PB: predicated region body
PF: predicated region fallthrough
CT: control target
= control target key end

     0   :  { %10 = vsyncpa [#allocation3], 0  ;;  %s346_s0 = inlined_call_operand.vmem [shape: bf16[16,32], index: 0, kind: input, shape index: {}]   ;;  %s347_s1 = inlined_call_operand.vmem [shape: f32[1,32], index: 1, kind: input, shape index: {}]   ;;  %s348_s2 = inlined_call_operand.vmem [shape: f32[1,32], index: 2, kind: input, shape index: {}]   ;;  %s349_s3 = inlined_call_operand.vmem [shape: bf16[32,40], index: 3, kind: input, shape index: {}]   ;;  %s350_s4 = inlined_call_operand.hbm [shape: f32[1,40], index: 4, kind: input, shape index: {}]   ;;  %s351_s5 = inlined_call_operand.hbm [shape: f32[16,40], index: 5, kind: output, shape index: {}]  }
   0x1   :  { %11 = vsyncpa [#allocation4], 0  ;;  %s25_s20 = sshll.u32 %s350_s4, 4  ;;  %s279_s21 = smov [#allocation2]   ;;  %s26_s20 = int_to_ptr.hbm [resolvable:$true] %s25_s20 }
   0x2   :  { %s27_s22 = sshll.u32 %s279_s21, 4  ;;  %s28_s22 = int_to_ptr.vmem [resolvable:$true] %s27_s22 }
   0x3   :  { %30 = dma.hbm_to_vmem [thread:$0]  %s26_s20, 16, %s28_s22, [#allocation3]  }
   0x4   :  { %275 = dma.done.wait [#allocation3], 16  }
   0x5   :  { %276 = vsyncadd [#allocation3], 4294967280  ;;  %v202_v0 = vld [vmem:[%s346_s0] sm:$0xff]   ;;  %vm42_vm0 = vcmask 261120   ;;  %v280_v5 = vmov 32.0   ;;  %v200_v22 = vld [vmem:[%s349_s3 + $0x8] sm:$0xff] }
   0x6   :  { %v203_v1 = vunpack.c.l.bf16 %v202_v0  ;;  %v204_v3 = vunpack.c.h.bf16 %v202_v0  ;;  %213 = vrcp.f32 %v280_v5  ;;  %134 = vmatpush.bf16.msra.mxu0 %v200_v22  ;;  %v199_v24 = vld [vmem:[%s349_s3] sm:$0xff]  ;;  %vm142_vm8 = vcmask 326656   ;;  %s177_s7 = sshll.u32 %s351_s5, 4  ;;  %s282_s8 = smov 128   ;;  %s178_s7 = int_to_ptr.hbm [resolvable:$true] %s177_s7 }
   0x7   :  { %v210_v43 = vld [vmem:[%s347_s1] ss:$0 sm:$0xff]  ;;  %s281_s1 = smov [#allocation5]   ;;  %s283_s9 = smov 8  }
   0x8   :  { %v43_v2 = vsel %vm42_vm0, %v203_v1, 0.0  ;;  %v46_v4 = vsel %vm42_vm0, %v204_v3, 0.0  ;;  %v211_v48 = vld [vmem:[%s348_s2] ss:$0 sm:$0xff]  ;;  %s175_s2 = sshll.u32 %s281_s1, 4  ;;  %s176_s2 = int_to_ptr.vmem [resolvable:$true] %s175_s2 }
   0x9   :  { %44 = vadd.xlane.f32.xlu0 %v43_v2  ;;  %v212_v53 = vld [vmem:[#allocation2] ss:$0 sm:$0xff] }
   0xa   :  { %135 = vmatpush.bf16.msra.mxu0 %v199_v24 }
   0xc   :  { %v214_v6 = vpop.eup %213 }
   0xd   :  { %v50_v7 = vmul.f32 32.0, %v214_v6  ;;  %vm54_vm1 = vweird.f32 %v214_v6 }
   0xf   :  { %v51_v8 = vsub.f32 1.0, %v50_v7 }
  0x11   :  { %47 = vadd.xlane.f32.xlu0 %v46_v4  ;;  %v52_v9 = vmul.f32 %v214_v6, %v51_v8 }
  0x13   :  { %v53_v10 = vadd.f32 %v214_v6, %v52_v9 }
  0x15   :  { %v55_v11 = vsel %vm54_vm1, %v214_v6, %v53_v10 }
  0x7c   :  { %v45_v12 = vpop.xlane.xlu0 %44 }
  0x7d   :  { %v56_v13 = vmul.f32 %v55_v11, %v45_v12 }
  0x7f   :  { %v58_v14 = vsub.f32 %v203_v1, %v56_v13 }
  0x81   :  { %v60_v15 = vmul.f32 %v58_v14, %v58_v14 }
  0x83   :  { %v62_v16 = vsel %vm42_vm0, %v60_v15, 0.0 }
  0x84   :  { %63 = vadd.xlane.f32.xlu1 %v62_v16  ;;  %v48_v17 = vpop.xlane.xlu0 %47 }
  0x85   :  { %v57_v18 = vmul.f32 %v55_v11, %v48_v17 }
  0x87   :  { %v59_v19 = vsub.f32 %v204_v3, %v57_v18 }
  0x89   :  { %v61_v20 = vmul.f32 %v59_v19, %v59_v19 }
  0x8b   :  { %v65_v21 = vsel %vm42_vm0, %v61_v20, 0.0 }
  0x8c   :  { %66 = vadd.xlane.f32.xlu1 %v65_v21 }
  0xf7   :  { %v64_v23 = vpop.xlane.xlu1 %63 }
  0xf8   :  { %v68_v25 = vmul.f32 %v64_v23, %v55_v11 }
  0xfa   :  { %v70_v26 = vadd.f32 1e-05, %v68_v25 }
  0xfc   :  { %215 = vrsqrt.f32 %v70_v26  ;;  %vm78_vm3 = vweird.f32 %v70_v26 }
  0xff   :  { %v67_v27 = vpop.xlane.xlu1 %66 }
 0x100   :  { %v69_v28 = vmul.f32 %v67_v27, %v55_v11 }
 0x102   :  { %v216_v29 = vpop.eup %215  ;;  %v71_v30 = vadd.f32 1e-05, %v69_v28 }
 0x103   :  { %v73_v31 = vmul.f32 %v216_v29, %v70_v26  ;;  %vm79_vm2 = vweird.f32 %v216_v29 }
 0x104   :  { %217 = vrsqrt.f32 %v71_v30  ;;  %vm80_vm4 = vmor %vm78_vm3, %vm79_vm2  ;;  %vm88_vm6 = vweird.f32 %v71_v30 }
 0x105   :  { %v74_v32 = vmul.f32 %v216_v29, %v73_v31 }
 0x107   :  { %v75_v33 = vmul.f32 0.5, %v74_v32 }
 0x109   :  { %v76_v34 = vsub.f32 1.5, %v75_v33 }
 0x10a   :  { %v218_v35 = vpop.eup %217 }
 0x10b   :  { %v77_v36 = vmul.f32 %v216_v29, %v76_v34  ;;  %v83_v37 = vmul.f32 %v218_v35, %v71_v30  ;;  %vm89_vm5 = vweird.f32 %v218_v35 }
 0x10c   :  { %vm90_vm7 = vmor %vm88_vm6, %vm89_vm5 }
 0x10d   :  { %v84_v38 = vmul.f32 %v218_v35, %v83_v37  ;;  %v81_v39 = vsel %vm80_vm4, %v216_v29, %v77_v36 }
 0x10e   :  { %v92_v42 = vmul.f32 %v81_v39, %v58_v14 }
 0x10f   :  { %v85_v40 = vmul.f32 0.5, %v84_v38 }
 0x110   :  { %v97_v47 = vmul.f32 %v210_v43, %v92_v42 }
 0x111   :  { %v86_v41 = vsub.f32 1.5, %v85_v40 }
 0x112   :  { %v102_v50 = vadd.f32 %v211_v48, %v97_v47 }
 0x113   :  { %v87_v44 = vmul.f32 %v218_v35, %v86_v41 }
 0x115   :  { %v91_v45 = vsel %vm90_vm7, %v218_v35, %v87_v44 }
 0x116   :  { %v93_v46 = vmul.f32 %v91_v45, %v59_v19 }
 0x118   :  { %v98_v49 = vmul.f32 %v210_v43, %v93_v46 }
 0x11a   :  { %v103_v51 = vadd.f32 %v211_v48, %v98_v49 }
 0x11c   :  { %v104_v52 = vpack.c.bf16 %v103_v51, %v102_v50 }
 0x11e   :  { %198 = vmatmul.msk.bf16.vlgmr.msra.gmra.mxu0 %vm42_vm0, %v104_v52 }
 0x19b   :  { %v137_v54 = vpop.f32.mrf.mxu0 }
 0x19c   :  { %v138_v55 = vadd.f32 %v212_v53, %v137_v54 }
 0x19e   :  { %v143_v56 = vsel %vm142_vm8, %v138_v55, -inf }
 0x19f   :  { %144 = vmax.xlane.f32.xlu2 %v143_v56 }
 0x1a3   :  { %v139_v57 = vpop.f32.mrf.mxu0 }
 0x1a4   :  { %v140_v58 = vadd.f32 %v212_v53, %v139_v57 }
 0x1a6   :  { %v146_v59 = vsel %vm142_vm8, %v140_v58, -inf }
 0x1a7   :  { %147 = vmax.xlane.f32.xlu2 %v146_v59 }
 0x212   :  { %v145_v60 = vpop.xlane.xlu2 %144 }
 0x213   :  { %v149_v61 = vsub.f32 %v138_v55, %v145_v60 }
 0x215   :  { %v151_v62 = vmul.f32 1.442695, %v149_v61 }
 0x217   :  { %219 = vpow2.f32 %v151_v62 }
 0x21a   :  { %v148_v63 = vpop.xlane.xlu2 %147 }
 0x21b   :  { %v150_v0 = vsub.f32 %v140_v58, %v148_v63 }
 0x21d   :  { %v220_v1 = vpop.eup %219  ;;  %v153_v2 = vmul.f32 1.442695, %v150_v0 }
 0x21e   :  { %v155_v3 = vsel %vm142_vm8, %v220_v1, 0.0 }
 0x21f   :  { %221 = vpow2.f32 %v153_v2  ;;  %156 = vadd.xlane.f32.xlu0 %v155_v3 }
 0x225   :  { %v222_v4 = vpop.eup %221 }
 0x226   :  { %v158_v5 = vsel %vm142_vm8, %v222_v4, 0.0 }
 0x227   :  { %159 = vadd.xlane.f32.xlu1 %v158_v5 }
 0x292   :  { %v157_v6 = vpop.xlane.xlu0 %156 }
 0x293   :  { %223 = vlog2.f32 %v157_v6 }
 0x299   :  { %v224_v7 = vpop.eup %223 }
 0x29a   :  { %v162_v8 = vmul.f32 0.6931472, %v224_v7  ;;  %v160_v9 = vpop.xlane.xlu1 %159 }
 0x29b   :  { %225 = vlog2.f32 %v160_v9 }
 0x29c   :  { %v165_v10 = vadd.f32 %v162_v8, %v145_v60 }
 0x29e   :  { %v167_v11 = vsub.f32 %v138_v55, %v165_v10 }
 0x2a0   :  { %169 = vst.msk [vmem:[#allocation5] sm:$0xff] %vm142_vm8, %v167_v11 }
 0x2a1   :  { %v226_v12 = vpop.eup %225 }
 0x2a2   :  { %v164_v13 = vmul.f32 0.6931472, %v226_v12 }
 0x2a4   :  { %v166_v14 = vadd.f32 %v164_v13, %v148_v63 }
 0x2a6   :  { %v168_v15 = vsub.f32 %v140_v58, %v166_v14 }
 0x2a8   :  { %170 = vst.msk [vmem:[#allocation5 + $0x8] sm:$0xff] %vm142_vm8, %v168_v15 }
 0x2a9   :  { %183 = dma.vmem_to_hbm [thread:$0]  %s176_s2, 256, %s178_s7, [#allocation4], %s282_s8, %s282_s8, %s283_s9  }
 0x2aa   :  { %277 = dma.done.wait [#allocation4], 256  }
 0x2ab   :  { %278 = vsyncadd [#allocation4], 4294967040 }
 0x2ac   :  { %188 = vsyncpa [#allocation3], 1 }
 0x2ad   :  { %189 = vsyncpa [#allocation4], 1 }

</bundles_post_ra>
